<compile_context>
chip_gen: v7x
topology: tpu7x:2x2x1
jax: 0.10.0
libtpu: 0.0.40
codegen_flags: <defaults>
</compile_context>

<pallas_src>
import functools

import jax
import jax.numpy as jnp
from jax.experimental import pallas as pl
from jax.experimental.pallas import tpu as pltpu

LN_EPS = 1e-5                      # nn.LayerNorm default
_INV_SQRT2 = 0.7071067811865476
_NEG_INF = -1e30
_VMEM_LIMIT = 48 * 1024 * 1024     # <= v7x 64 MiB physical; fine on v5e/v6e


def _layernorm(x, w, b):
    mu = jnp.mean(x, axis=-1, keepdims=True)
    var = jnp.mean((x - mu) ** 2, axis=-1, keepdims=True)
    return (x - mu) * jax.lax.rsqrt(var + LN_EPS) * w + b


def _gelu_exact(x):
    # nn.GELU() default (approximate='none'): 0.5*x*(1+erf(x/sqrt(2)))
    # TODO(synk): on v5e the erf polynomial is pure VALU work; tanh-approx
    # GELU would use the EUP slot but changes numerics vs the reference.
    return 0.5 * x * (1.0 + jax.lax.erf(x * _INV_SQRT2))


# --------------------------------------------------------------------------
# Patch embedding: Conv2d(k=s=patch) as matmul, fused with cls / pos / pad.
# Grid over batch ("parallel") -> >=2 grid steps so both v7x cores are used.
# --------------------------------------------------------------------------
def _embed_kernel(p_ref, w_ref, b_ref, cls_ref, pos_ref, o_ref, *, num_patches):
    emb = (jnp.dot(p_ref[...].astype(jnp.bfloat16), w_ref[...],
                   preferred_element_type=jnp.float32)
           + b_ref[...])                                   # (num_patches, D) f32
    # Assemble the padded sequence for this batch element:
    #   row 0            : cls token + pos[0]
    #   rows 1..P        : patch embeddings + pos[1:P+1]
    #   rows P+1..S_pad-1: exact zeros (padding; masked as keys downstream)
    o_ref[...] = jnp.zeros_like(o_ref)
    o_ref[0:1, :] = cls_ref[...] + pos_ref[0:1, :]
    o_ref[1:1 + num_patches, :] = emb + pos_ref[1:1 + num_patches, :]


def patch_embed_seq(patches, patch_w, patch_b, cls, pos_pad, *, s_pad):
    B, num_patches, K = patches.shape
    D = patch_w.shape[1]
    kern = functools.partial(_embed_kernel, num_patches=num_patches)
    return pl.pallas_call(
        kern,
        out_shape=jax.ShapeDtypeStruct((B * s_pad, D), jnp.float32),
        grid=(B,),
        in_specs=[
            pl.BlockSpec((pl.Squeezed(), num_patches, K), lambda b: (b, 0, 0)),
            pl.BlockSpec((K, D), lambda b: (0, 0)),
            pl.BlockSpec((1, D), lambda b: (0, 0)),
            pl.BlockSpec((1, D), lambda b: (0, 0)),
            pl.BlockSpec((s_pad, D), lambda b: (0, 0)),
        ],
        out_specs=pl.BlockSpec((s_pad, D), lambda b: (b, 0)),
        compiler_params=pltpu.CompilerParams(
            dimension_semantics=("parallel",),
            vmem_limit_bytes=_VMEM_LIMIT),
    )(patches, patch_w, patch_b, cls, pos_pad)


# --------------------------------------------------------------------------
# Fused encoder stack + classification head.
# Grid = (layers,), "arbitrary"; residual stream resident in VMEM scratch.
# --------------------------------------------------------------------------
def _encoder_stack_kernel(x_ref,
                          ln1w_ref, ln1b_ref, wqkv_ref, wproj_ref, bproj_ref,
                          ln2w_ref, ln2b_ref, w1_ref, b1_ref, w2_ref, b2_ref,
                          hlnw_ref, hlnb_ref, hw_ref, hb_ref,
                          logits_ref, xres_ref,
                          *, num_heads, head_dim, seq_valid, seq, batch):
    l = pl.program_id(0)

    @pl.when(l == 0)
    def _():
        xres_ref[...] = x_ref[...]          # load the token stream once

    S = seq
    D = xres_ref.shape[1]
    x = xres_ref[...]                       # (B*S, D) f32 residual stream

    # ---- attention (pre-LN) ----
    y = _layernorm(x, ln1w_ref[...], ln1b_ref[...])
    # fused QKV: one (B*S, D) @ (D, 3D) bf16 MXU matmul, f32 accumulation.
    # The softmax scale is pre-folded into the q columns of wqkv at init.
    qkv = jnp.dot(y.astype(jnp.bfloat16), wqkv_ref[...],
                  preferred_element_type=jnp.float32).astype(jnp.bfloat16)

    if seq_valid < S:
        col_ids = jax.lax.broadcasted_iota(jnp.int32, (1, S), 1)
        key_bias = jnp.where(col_ids < seq_valid,
                             jnp.float32(0.0), jnp.float32(_NEG_INF))
    else:
        key_bias = None

    wproj = wproj_ref[...]                  # (D, D) bf16, resident
    ctx_rows = []
    for b in range(batch):
        r0 = b * S
        qkv_b = qkv[r0:r0 + S, :]           # (S, 3D), sublane-aligned slice
        acc_b = jnp.zeros((S, D), jnp.float32)
        for h in range(num_heads):
            q_h = qkv_b[:, h * head_dim:(h + 1) * head_dim]
            k_h = qkv_b[:, D + h * head_dim:D + (h + 1) * head_dim]
            v_h = qkv_b[:, 2 * D + h * head_dim:2 * D + (h + 1) * head_dim]
            s = jax.lax.dot_general(q_h, k_h, (((1,), (1,)), ((), ())),
                                    preferred_element_type=jnp.float32)  # (S,S)
            if key_bias is not None:
                s = s + key_bias
            s = s - jnp.max(s, axis=-1, keepdims=True)
            e = jnp.exp(s)
            inv = pl.reciprocal(jnp.sum(e, axis=-1, keepdims=True), approx=True)
            o_h = jnp.dot((e * inv).astype(jnp.bfloat16), v_h,
                          preferred_element_type=jnp.float32)            # (S,hd)
            # output projection folded per head: no lane concat of heads
            acc_b = acc_b + jnp.dot(
                o_h.astype(jnp.bfloat16),
                wproj[h * head_dim:(h + 1) * head_dim, :],
                preferred_element_type=jnp.float32)
        ctx_rows.append(acc_b)
    attn_out = jnp.concatenate(ctx_rows, axis=0) + bproj_ref[...]        # (BS,D)

    x1 = x + attn_out                       # residual 1 (f32)

    # ---- MLP (pre-LN) ----
    y2 = _layernorm(x1, ln2w_ref[...], ln2b_ref[...])
    h1 = _gelu_exact(
        jnp.dot(y2.astype(jnp.bfloat16), w1_ref[...],
                preferred_element_type=jnp.float32) + b1_ref[...])
    m = (jnp.dot(h1.astype(jnp.bfloat16), w2_ref[...],
                 preferred_element_type=jnp.float32) + b2_ref[...])
    x2 = x1 + m                             # residual 2 (f32)
    xres_ref[...] = x2

    # ---- classification head, fused into the last layer step ----
    @pl.when(l == pl.num_programs(0) - 1)
    def _():
        cls = jnp.concatenate(
            [x2[b * S:b * S + 1, :] for b in range(batch)], axis=0)      # (B, D)
        yc = _layernorm(cls, hlnw_ref[...], hlnb_ref[...])
        logits_ref[...] = (
            jnp.dot(yc.astype(jnp.bfloat16), hw_ref[...],
                    preferred_element_type=jnp.float32) + hb_ref[...])


def encoder_stack(xflat, params, *, num_heads, head_dim, seq_valid, s_pad, batch):
    BS, D = xflat.shape
    L = params["wqkv"].shape[0]
    Hd = params["w1"].shape[2]
    C = params["head_w"].shape[1]
    S = s_pad

    kern = functools.partial(_encoder_stack_kernel, num_heads=num_heads,
                             head_dim=head_dim, seq_valid=seq_valid,
                             seq=S, batch=batch)

    def per_layer(shape):
        nd = len(shape)
        return pl.BlockSpec((pl.Squeezed(),) + shape,
                            lambda l, _nd=nd: (l,) + (0,) * _nd)

    def const(shape):
        nd = len(shape)
        return pl.BlockSpec(shape, lambda l, _nd=nd: (0,) * _nd)

    # advisory cost estimate so XLA can schedule glue ops around the call
    flops_layer = (2 * BS * D * 3 * D                                   # fused QKV
                   + batch * num_heads * (4 * S * S * head_dim          # scores + attn@v
                                          + 2 * S * head_dim * D)       # folded proj
                   + 4 * BS * D * Hd)                                   # MLP
    flops = L * flops_layer + 2 * batch * D * C
    transcendentals = L * (batch * num_heads * S * S + BS * Hd)
    bytes_accessed = (BS * D * 4 + batch * C * 4
                      + L * (2 * (D * 3 * D + D * D + D * Hd + Hd * D)  # bf16 weights
                             + 4 * (6 * D + Hd)))                       # f32 LN / biases
    ce = pl.CostEstimate(flops=int(flops), transcendentals=int(transcendentals),
                         bytes_accessed=int(bytes_accessed))

    return pl.pallas_call(
        kern,
        out_shape=jax.ShapeDtypeStruct((batch, C), jnp.float32),
        grid=(L,),
        in_specs=[
            pl.BlockSpec((BS, D), lambda l: (0, 0)),     # token stream (read once)
            per_layer((1, D)), per_layer((1, D)),        # ln1 w, b
            per_layer((D, 3 * D)),                       # fused QKV weight (bf16)
            per_layer((D, D)), per_layer((1, D)),        # Wproj (bf16), bproj
            per_layer((1, D)), per_layer((1, D)),        # ln2 w, b
            per_layer((D, Hd)), per_layer((1, Hd)),      # fc1 (bf16), b1
            per_layer((Hd, D)), per_layer((1, D)),       # fc2 (bf16), b2
            const((1, D)), const((1, D)),                # head LN w, b
            const((D, C)), const((1, C)),                # head W (bf16), b
        ],
        out_specs=pl.BlockSpec((batch, C), lambda l: (0, 0)),
        scratch_shapes=[pltpu.VMEM((BS, D), jnp.float32)],   # resident residual stream
        compiler_params=pltpu.CompilerParams(
            dimension_semantics=("arbitrary",),
            vmem_limit_bytes=_VMEM_LIMIT),
        cost_estimate=ce,
    )(xflat,
      params["ln1w"], params["ln1b"], params["wqkv"], params["wproj"],
      params["bproj"], params["ln2w"], params["ln2b"],
      params["w1"], params["b1"], params["w2"], params["b2"],
      params["head_lnw"], params["head_lnb"], params["head_w"], params["head_b"])


# --------------------------------------------------------------------------
# Parameters (deterministic synthetic init). Matmul weights stored in bf16
# ONCE here (no per-forward casts); per-layer weights stacked along a leading
# layer dim so the encoder stack can stream them with a single pallas_call.
# --------------------------------------------------------------------------
def init_params(key, *, image_channels, patch_size, dim, num_heads, num_classes,
                num_patches, layers, hidden):
    head_dim = dim // num_heads
    seq = num_patches + 1
    s_pad = ((seq + 7) // 8) * 8
    keys = iter(jax.random.split(key, 16))

    def nrm(shape, scale=0.02):
        return (scale * jax.random.normal(next(keys), shape)).astype(jnp.float32)

    # fused QKV weight (L, D, 3D): columns ordered [q | k | v], each chunk laid
    # out [head][head_dim] (matches the PyTorch rearrange).  The 1/sqrt(hd)
    # attention scale is folded into the q columns (one-time, exact algebra).
    wqkv = nrm((layers, dim, 3 * dim))
    wqkv = wqkv.at[:, :, :dim].multiply(head_dim ** -0.5)

    pos = nrm((seq, dim))
    pos_pad = jnp.zeros((s_pad, dim), jnp.float32).at[:seq, :].set(pos)

    params = {
        # Conv2d weight (dim, C, p, p) flattened over (c, ph, pw) -> (C*p*p, dim)
        "patch_w": nrm((image_channels * patch_size * patch_size, dim)
                       ).astype(jnp.bfloat16),
        "patch_b": nrm((1, dim)),
        "cls": nrm((1, dim)),
        "pos_pad": pos_pad,
        # encoder stack (leading layer dim)
        "ln1w": jnp.ones((layers, 1, dim), jnp.float32),
        "ln1b": jnp.zeros((layers, 1, dim), jnp.float32),
        "wqkv": wqkv.astype(jnp.bfloat16),
        "wproj": nrm((layers, dim, dim)).astype(jnp.bfloat16),   # == proj.weight.T
        "bproj": jnp.zeros((layers, 1, dim), jnp.float32),
        "ln2w": jnp.ones((layers, 1, dim), jnp.float32),
        "ln2b": jnp.zeros((layers, 1, dim), jnp.float32),
        "w1": nrm((layers, dim, hidden)).astype(jnp.bfloat16),
        "b1": jnp.zeros((layers, 1, hidden), jnp.float32),
        "w2": nrm((layers, hidden, dim)).astype(jnp.bfloat16),
        "b2": jnp.zeros((layers, 1, dim), jnp.float32),
        # head
        "head_lnw": jnp.ones((1, dim), jnp.float32),
        "head_lnb": jnp.zeros((1, dim), jnp.float32),
        "head_w": nrm((dim, num_classes)).astype(jnp.bfloat16),
        "head_b": jnp.zeros((1, num_classes), jnp.float32),
    }
    return params


# --------------------------------------------------------------------------
# Full ViT forward.
# --------------------------------------------------------------------------
def vit_forward(x, params, *, patch_size, num_heads):
    B, C, Himg, Wimg = x.shape
    p = patch_size
    nH, nW = Himg // p, Wimg // p
    dim = params["patch_w"].shape[1]
    head_dim = dim // num_heads
    num_patches = nH * nW
    seq = num_patches + 1
    s_pad = ((seq + 7) // 8) * 8

    # Conv2d(kernel=stride=patch) == per-patch matmul; patch flattened (c, ph, pw)
    patches = (x.reshape(B, C, nH, p, nW, p)
                 .transpose(0, 2, 4, 1, 3, 5)
                 .reshape(B, num_patches, C * p * p))

    # kernel 1: patch embed + cls + pos + pad -> flat (B*S_pad, dim) tokens
    xflat = patch_embed_seq(patches, params["patch_w"], params["patch_b"],
                            params["cls"], params["pos_pad"], s_pad=s_pad)
    # TODO(synk): dropout layers are identity (drop_ratio=0.0 in module defaults)

    # kernel 2: all encoder layers + classification head
    return encoder_stack(xflat, params, num_heads=num_heads, head_dim=head_dim,
                         seq_valid=seq, s_pad=s_pad, batch=B)


if __name__ == "__main__":
    # small shapes consistent with the module's forward; lane/sublane aligned dims
    B, C, IMG, P = 2, 4, 16, 4            # -> 16 patches, seq = 17 (padded to 24)
    DIM, HEADS, CLASSES, LAYERS = 128, 4, 16, 2
    num_patches = (IMG // P) ** 2
    hidden = DIM * 4

    key = jax.random.PRNGKey(0)
    kx, kp = jax.random.split(key)
    x = jax.random.normal(kx, (B, C, IMG, IMG), dtype=jnp.float32)

    params = init_params(kp, image_channels=C, patch_size=P, dim=DIM,
                         num_heads=HEADS, num_classes=CLASSES,
                         num_patches=num_patches, layers=LAYERS, hidden=hidden)

    fwd = jax.jit(functools.partial(vit_forward, patch_size=P, num_heads=HEADS))
    out = fwd(x, params)
    out = jax.block_until_ready(out)
    assert out.shape == (B, CLASSES) and out.dtype == jnp.float32
    print("KERNEL_OK")
</pallas_src>

<mosaic_0001>
module attributes {stable_mosaic.version = 11 : i64} {
  func.func @_embed_kernel(%arg0: i32, %arg1: memref<1x16x64xf32, #tpu.memory_space<vmem>>, %arg2: memref<64x128xbf16, #tpu.memory_space<vmem>>, %arg3: memref<1x128xf32, #tpu.memory_space<vmem>>, %arg4: memref<1x128xf32, #tpu.memory_space<vmem>>, %arg5: memref<24x128xf32, #tpu.memory_space<vmem>>, %arg6: memref<24x128xf32, #tpu.memory_space<vmem>>) attributes {dimension_semantics = [#tpu.dimension_semantics<parallel>], iteration_bounds = array<i64: 2>, scalar_prefetch = 0 : i64, scratch_operands = 0 : i64, tpu.core_type = #tpu.core_type<tc>, window_params = [{transform_indices = @transform_0, window_bounds = array<i64: 1, 16, 64>}, {pipeline_mode = #tpu.pipeline_mode<synchronous>, transform_indices = @transform_1, window_bounds = array<i64: 64, 128>}, {pipeline_mode = #tpu.pipeline_mode<synchronous>, transform_indices = @transform_2, window_bounds = array<i64: 1, 128>}, {pipeline_mode = #tpu.pipeline_mode<synchronous>, transform_indices = @transform_3, window_bounds = array<i64: 1, 128>}, {pipeline_mode = #tpu.pipeline_mode<synchronous>, transform_indices = @transform_4, window_bounds = array<i64: 24, 128>}, {transform_indices = @transform_5, window_bounds = array<i64: 24, 128>}]} {
    %c0 = arith.constant 0 : index
    %c0_0 = arith.constant 0 : index
    %c0_1 = arith.constant 0 : index
    %0 = vector.load %arg1[%c0, %c0_0, %c0_1] : memref<1x16x64xf32, #tpu.memory_space<vmem>>, vector<1x16x64xf32>
    %1 = vector.shape_cast %0 : vector<1x16x64xf32> to vector<16x64xf32>
    %2 = arith.truncf %1 : vector<16x64xf32> to vector<16x64xbf16>
    %c0_2 = arith.constant 0 : index
    %c0_3 = arith.constant 0 : index
    %3 = vector.load %arg2[%c0_2, %c0_3] : memref<64x128xbf16, #tpu.memory_space<vmem>>, vector<64x128xbf16>
    %cst = arith.constant dense<0.000000e+00> : vector<16x128xf32>
    %4 = tpu.matmul %2, %3, %cst {dimension_numbers = #tpu.dot_dimension_numbers<[1], [0], [0], [1], [0, 0, 1, 1], [], []>} : vector<16x64xbf16>, vector<64x128xbf16>, vector<16x128xf32> -> vector<16x128xf32>
    %c0_4 = arith.constant 0 : index
    %c0_5 = arith.constant 0 : index
    %5 = vector.load %arg3[%c0_4, %c0_5] : memref<1x128xf32, #tpu.memory_space<vmem>>, vector<1x128xf32>
    %6 = vector.broadcast %5 : vector<1x128xf32> to vector<16x128xf32>
    %7 = arith.addf %4, %6 : vector<16x128xf32>
    %cst_6 = arith.constant 0.000000e+00 : f32
    %8 = vector.broadcast %cst_6 : f32 to vector<24x128xf32>
    %c0_7 = arith.constant 0 : index
    %c0_8 = arith.constant 0 : index
    %9 = vector.load %arg6[%c0_7, %c0_8] : memref<24x128xf32, #tpu.memory_space<vmem>>, vector<24x128xf32>
    tpu.vector_store %arg6[%c0_7, %c0_8], %8 {strides = array<i32>} : memref<24x128xf32, #tpu.memory_space<vmem>>, vector<24x128xf32>,
    %c0_9 = arith.constant 0 : index
    %c0_10 = arith.constant 0 : index
    %10 = vector.load %arg4[%c0_9, %c0_10] : memref<1x128xf32, #tpu.memory_space<vmem>>, vector<1x128xf32>
    %c0_11 = arith.constant 0 : index
    %c0_12 = arith.constant 0 : index
    %11 = vector.load %arg5[%c0_11, %c0_12] : memref<24x128xf32, #tpu.memory_space<vmem>>, vector<1x128xf32>
    %12 = arith.addf %10, %11 : vector<1x128xf32>
    %c0_13 = arith.constant 0 : index
    %c0_14 = arith.constant 0 : index
    %13 = vector.load %arg6[%c0_13, %c0_14] : memref<24x128xf32, #tpu.memory_space<vmem>>, vector<1x128xf32>
    tpu.vector_store %arg6[%c0_13, %c0_14], %12 {strides = array<i32>} : memref<24x128xf32, #tpu.memory_space<vmem>>, vector<1x128xf32>,
    %c1 = arith.constant 1 : index
    %c0_15 = arith.constant 0 : index
    %14 = vector.load %arg5[%c1, %c0_15] : memref<24x128xf32, #tpu.memory_space<vmem>>, vector<16x128xf32>
    %15 = arith.addf %7, %14 : vector<16x128xf32>
    %c1_16 = arith.constant 1 : index
    %c0_17 = arith.constant 0 : index
    %16 = vector.load %arg6[%c1_16, %c0_17] : memref<24x128xf32, #tpu.memory_space<vmem>>, vector<16x128xf32>
    tpu.vector_store %arg6[%c1_16, %c0_17], %15 {strides = array<i32>} : memref<24x128xf32, #tpu.memory_space<vmem>>, vector<16x128xf32>,
    return
  }
  func.func @transform_0(%arg0: i32) -> (i32, i32, i32) {
    %c0_i32 = arith.constant 0 : i32
    %c0_i32_0 = arith.constant 0 : i32
    %c0_i32_1 = arith.constant 0 : i32
    return %arg0, %c0_i32, %c0_i32_0 : i32, i32, i32
  }
  func.func @transform_1(%arg0: i32) -> (i32, i32) {
    %c0_i32 = arith.constant 0 : i32
    %c0_i32_0 = arith.constant 0 : i32
    %c0_i32_1 = arith.constant 0 : i32
    return %c0_i32, %c0_i32_0 : i32, i32
  }
  func.func @transform_2(%arg0: i32) -> (i32, i32) {
    %c0_i32 = arith.constant 0 : i32
    %c0_i32_0 = arith.constant 0 : i32
    %c0_i32_1 = arith.constant 0 : i32
    return %c0_i32, %c0_i32_0 : i32, i32
  }
  func.func @transform_3(%arg0: i32) -> (i32, i32) {
    %c0_i32 = arith.constant 0 : i32
    %c0_i32_0 = arith.constant 0 : i32
    %c0_i32_1 = arith.constant 0 : i32
    return %c0_i32, %c0_i32_0 : i32, i32
  }
  func.func @transform_4(%arg0: i32) -> (i32, i32) {
    %c0_i32 = arith.constant 0 : i32
    %c0_i32_0 = arith.constant 0 : i32
    %c0_i32_1 = arith.constant 0 : i32
    return %c0_i32, %c0_i32_0 : i32, i32
  }
  func.func @transform_5(%arg0: i32) -> (i32, i32) {
    %c0_i32 = arith.constant 0 : i32
    %c0_i32_0 = arith.constant 0 : i32
    return %arg0, %c0_i32 : i32, i32
  }
}

module attributes {stable_mosaic.version = 11 : i64} {
  func.func @_encoder_stack_kernel(%arg0: i32, %arg1: memref<48x128xf32, #tpu.memory_space<vmem>>, %arg2: memref<1x1x128xf32, #tpu.memory_space<vmem>>, %arg3: memref<1x1x128xf32, #tpu.memory_space<vmem>>, %arg4: memref<1x128x384xbf16, #tpu.memory_space<vmem>>, %arg5: memref<1x128x128xbf16, #tpu.memory_space<vmem>>, %arg6: memref<1x1x128xf32, #tpu.memory_space<vmem>>, %arg7: memref<1x1x128xf32, #tpu.memory_space<vmem>>, %arg8: memref<1x1x128xf32, #tpu.memory_space<vmem>>, %arg9: memref<1x128x512xbf16, #tpu.memory_space<vmem>>, %arg10: memref<1x1x512xf32, #tpu.memory_space<vmem>>, %arg11: memref<1x512x128xbf16, #tpu.memory_space<vmem>>, %arg12: memref<1x1x128xf32, #tpu.memory_space<vmem>>, %arg13: memref<1x128xf32, #tpu.memory_space<vmem>>, %arg14: memref<1x128xf32, #tpu.memory_space<vmem>>, %arg15: memref<128x16xbf16, #tpu.memory_space<vmem>>, %arg16: memref<1x16xf32, #tpu.memory_space<vmem>>, %arg17: memref<2x16xf32, #tpu.memory_space<vmem>>, %arg18: memref<48x128xf32, #tpu.memory_space<vmem>>) attributes {dimension_semantics = [#tpu.dimension_semantics<arbitrary>], iteration_bounds = array<i64: 2>, scalar_prefetch = 0 : i64, scratch_operands = 1 : i64, tpu.core_type = #tpu.core_type<tc>, window_params = [{pipeline_mode = #tpu.pipeline_mode<synchronous>, transform_indices = @transform_0, window_bounds = array<i64: 48, 128>}, {transform_indices = @transform_1, window_bounds = array<i64: 1, 1, 128>}, {transform_indices = @transform_2, window_bounds = array<i64: 1, 1, 128>}, {transform_indices = @transform_3, window_bounds = array<i64: 1, 128, 384>}, {transform_indices = @transform_4, window_bounds = array<i64: 1, 128, 128>}, {transform_indices = @transform_5, window_bounds = array<i64: 1, 1, 128>}, {transform_indices = @transform_6, window_bounds = array<i64: 1, 1, 128>}, {transform_indices = @transform_7, window_bounds = array<i64: 1, 1, 128>}, {transform_indices = @transform_8, window_bounds = array<i64: 1, 128, 512>}, {transform_indices = @transform_9, window_bounds = array<i64: 1, 1, 512>}, {transform_indices = @transform_10, window_bounds = array<i64: 1, 512, 128>}, {transform_indices = @transform_11, window_bounds = array<i64: 1, 1, 128>}, {pipeline_mode = #tpu.pipeline_mode<synchronous>, transform_indices = @transform_12, window_bounds = array<i64: 1, 128>}, {pipeline_mode = #tpu.pipeline_mode<synchronous>, transform_indices = @transform_13, window_bounds = array<i64: 1, 128>}, {pipeline_mode = #tpu.pipeline_mode<synchronous>, transform_indices = @transform_14, window_bounds = array<i64: 128, 16>}, {pipeline_mode = #tpu.pipeline_mode<synchronous>, transform_indices = @transform_15, window_bounds = array<i64: 1, 16>}, {pipeline_mode = #tpu.pipeline_mode<synchronous>, transform_indices = @transform_16, window_bounds = array<i64: 2, 16>}]} {
    %c0_i32 = arith.constant 0 : i32
    %0 = arith.cmpi eq, %arg0, %c0_i32 : i32
    %1 = arith.extui %0 : i1 to i32
    %c0_i32_0 = arith.constant 0 : i32
    %2 = arith.cmpi ne, %1, %c0_i32_0 : i32
    scf.if %2 {
      %c0_97 = arith.constant 0 : index
      %c0_98 = arith.constant 0 : index
      %284 = vector.load %arg1[%c0_97, %c0_98] : memref<48x128xf32, #tpu.memory_space<vmem>>, vector<48x128xf32>
      %c0_99 = arith.constant 0 : index
      %c0_100 = arith.constant 0 : index
      %285 = vector.load %arg18[%c0_99, %c0_100] : memref<48x128xf32, #tpu.memory_space<vmem>>, vector<48x128xf32>
      tpu.vector_store %arg18[%c0_99, %c0_100], %284 {strides = array<i32>} : memref<48x128xf32, #tpu.memory_space<vmem>>, vector<48x128xf32>,
    } else {
    }
    %c0 = arith.constant 0 : index
    %c0_1 = arith.constant 0 : index
    %3 = vector.load %arg18[%c0, %c0_1] : memref<48x128xf32, #tpu.memory_space<vmem>>, vector<48x128xf32>
    %c0_2 = arith.constant 0 : index
    %c0_3 = arith.constant 0 : index
    %c0_4 = arith.constant 0 : index
    %4 = vector.load %arg2[%c0_2, %c0_3, %c0_4] : memref<1x1x128xf32, #tpu.memory_space<vmem>>, vector<1x1x128xf32>
    %5 = vector.shape_cast %4 : vector<1x1x128xf32> to vector<1x128xf32>
    %c0_5 = arith.constant 0 : index
    %c0_6 = arith.constant 0 : index
    %c0_7 = arith.constant 0 : index
    %6 = vector.load %arg3[%c0_5, %c0_6, %c0_7] : memref<1x1x128xf32, #tpu.memory_space<vmem>>, vector<1x1x128xf32>
    %7 = vector.shape_cast %6 : vector<1x1x128xf32> to vector<1x128xf32>
    %cst = arith.constant dense<0.000000e+00> : vector<48xf32>
    %8 = vector.multi_reduction <add>, %3, %cst [1] : vector<48x128xf32> to vector<48xf32>
    %9 = vector.shape_cast %8 : vector<48xf32> to vector<48x1xf32>
    %cst_8 = arith.constant 1.280000e+02 : f32
    %10 = vector.broadcast %cst_8 : f32 to vector<48x1xf32>
    %11 = arith.divf %9, %10 : vector<48x1xf32>
    %12 = vector.broadcast %11 : vector<48x1xf32> to vector<48x128xf32>
    %13 = arith.subf %3, %12 : vector<48x128xf32>
    %14 = arith.mulf %13, %13 : vector<48x128xf32>
    %cst_9 = arith.constant dense<0.000000e+00> : vector<48xf32>
    %15 = vector.multi_reduction <add>, %14, %cst_9 [1] : vector<48x128xf32> to vector<48xf32>
    %16 = vector.shape_cast %15 : vector<48xf32> to vector<48x1xf32>
    %cst_10 = arith.constant 1.280000e+02 : f32
    %17 = vector.broadcast %cst_10 : f32 to vector<48x1xf32>
    %18 = arith.divf %16, %17 : vector<48x1xf32>
    %19 = vector.broadcast %11 : vector<48x1xf32> to vector<48x128xf32>
    %20 = arith.subf %3, %19 : vector<48x128xf32>
    %cst_11 = arith.constant 9.99999974E-6 : f32
    %21 = vector.broadcast %cst_11 : f32 to vector<48x1xf32>
    %22 = arith.addf %18, %21 : vector<48x1xf32>
    %23 = math.rsqrt %22 : vector<48x1xf32>
    %24 = vector.broadcast %23 : vector<48x1xf32> to vector<48x128xf32>
    %25 = arith.mulf %20, %24 : vector<48x128xf32>
    %26 = vector.broadcast %5 : vector<1x128xf32> to vector<48x128xf32>
    %27 = arith.mulf %25, %26 : vector<48x128xf32>
    %28 = vector.broadcast %7 : vector<1x128xf32> to vector<48x128xf32>
    %29 = arith.addf %27, %28 : vector<48x128xf32>
    %30 = arith.truncf %29 : vector<48x128xf32> to vector<48x128xbf16>
    %c0_12 = arith.constant 0 : index
    %c0_13 = arith.constant 0 : index
    %c0_14 = arith.constant 0 : index
    %31 = vector.load %arg4[%c0_12, %c0_13, %c0_14] : memref<1x128x384xbf16, #tpu.memory_space<vmem>>, vector<1x128x384xbf16>
    %32 = vector.shape_cast %31 : vector<1x128x384xbf16> to vector<128x384xbf16>
    %cst_15 = arith.constant dense<0.000000e+00> : vector<48x384xf32>
    %33 = tpu.matmul %30, %32, %cst_15 {dimension_numbers = #tpu.dot_dimension_numbers<[1], [0], [0], [1], [0, 0, 1, 1], [], []>} : vector<48x128xbf16>, vector<128x384xbf16>, vector<48x384xf32> -> vector<48x384xf32>
    %34 = arith.truncf %33 : vector<48x384xf32> to vector<48x384xbf16>
    %35 = tpu.iota {dimensions = array<i32: 1>} : vector<1x24xi32>
    %c17_i32 = arith.constant 17 : i32
    %36 = vector.broadcast %c17_i32 : i32 to vector<1x24xi32>
    %37 = arith.cmpi slt, %35, %36 : vector<1x24xi32>
    %cst_16 = arith.constant 0.000000e+00 : f32
    %cst_17 = arith.constant -1.000000e+30 : f32
    %38 = vector.broadcast %cst_16 : f32 to vector<1x24xf32>
    %39 = vector.broadcast %cst_17 : f32 to vector<1x24xf32>
    %40 = arith.select %37, %38, %39 : vector<1x24xi1>, vector<1x24xf32>
    %c0_18 = arith.constant 0 : index
    %c0_19 = arith.constant 0 : index
    %c0_20 = arith.constant 0 : index
    %41 = vector.load %arg5[%c0_18, %c0_19, %c0_20] : memref<1x128x128xbf16, #tpu.memory_space<vmem>>, vector<1x128x128xbf16>
    %42 = vector.shape_cast %41 : vector<1x128x128xbf16> to vector<128x128xbf16>
    %43 = vector.extract_strided_slice %34 {offsets = [0, 0], sizes = [24, 384], strides = [1, 1]} : vector<48x384xbf16> to vector<24x384xbf16>
    %cst_21 = arith.constant 0.000000e+00 : f32
    %44 = vector.broadcast %cst_21 : f32 to vector<24x128xf32>
    %45 = vector.extract_strided_slice %43 {offsets = [0, 0], sizes = [24, 32], strides = [1, 1]} : vector<24x384xbf16> to vector<24x32xbf16>
    %46 = vector.extract_strided_slice %43 {offsets = [0, 128], sizes = [24, 32], strides = [1, 1]} : vector<24x384xbf16> to vector<24x32xbf16>
    %47 = vector.extract_strided_slice %43 {offsets = [0, 256], sizes = [24, 32], strides = [1, 1]} : vector<24x384xbf16> to vector<24x32xbf16>
    %cst_22 = arith.constant dense<0.000000e+00> : vector<24x24xf32>
    %48 = tpu.matmul %45, %46, %cst_22 {dimension_numbers = #tpu.dot_dimension_numbers<[1], [1], [0], [0], [0, 0, 1, 0], [], []>} : vector<24x32xbf16>, vector<24x32xbf16>, vector<24x24xf32> -> vector<24x24xf32>
    %49 = vector.broadcast %40 : vector<1x24xf32> to vector<24x24xf32>
    %50 = arith.addf %48, %49 : vector<24x24xf32>
    %cst_23 = arith.constant dense<0xFF800000> : vector<24xf32>
    %51 = vector.multi_reduction <maximumf>, %50, %cst_23 [1] : vector<24x24xf32> to vector<24xf32>
    %52 = vector.shape_cast %51 : vector<24xf32> to vector<24x1xf32>
    %53 = vector.broadcast %52 : vector<24x1xf32> to vector<24x24xf32>
    %54 = arith.subf %50, %53 : vector<24x24xf32>
    %55 = math.exp %54 : vector<24x24xf32>
    %cst_24 = arith.constant dense<0.000000e+00> : vector<24xf32>
    %56 = vector.multi_reduction <add>, %55, %cst_24 [1] : vector<24x24xf32> to vector<24xf32>
    %57 = vector.shape_cast %56 : vector<24xf32> to vector<24x1xf32>
    %58 = tpu.reciprocal %57 {approx = true} : vector<24x1xf32> -> vector<24x1xf32>
    %59 = vector.broadcast %58 : vector<24x1xf32> to vector<24x24xf32>
    %60 = arith.mulf %55, %59 : vector<24x24xf32>
    %61 = arith.truncf %60 : vector<24x24xf32> to vector<24x24xbf16>
    %cst_25 = arith.constant dense<0.000000e+00> : vector<24x32xf32>
    %62 = tpu.matmul %61, %47, %cst_25 {dimension_numbers = #tpu.dot_dimension_numbers<[1], [0], [0], [1], [0, 0, 1, 1], [], []>} : vector<24x24xbf16>, vector<24x32xbf16>, vector<24x32xf32> -> vector<24x32xf32>
    %63 = arith.truncf %62 : vector<24x32xf32> to vector<24x32xbf16>
    %64 = vector.extract_strided_slice %42 {offsets = [0, 0], sizes = [32, 128], strides = [1, 1]} : vector<128x128xbf16> to vector<32x128xbf16>
    %cst_26 = arith.constant dense<0.000000e+00> : vector<24x128xf32>
    %65 = tpu.matmul %63, %64, %cst_26 {dimension_numbers = #tpu.dot_dimension_numbers<[1], [0], [0], [1], [0, 0, 1, 1], [], []>} : vector<24x32xbf16>, vector<32x128xbf16>, vector<24x128xf32> -> vector<24x128xf32>
    %66 = arith.addf %44, %65 : vector<24x128xf32>
    %67 = vector.extract_strided_slice %43 {offsets = [0, 32], sizes = [24, 32], strides = [1, 1]} : vector<24x384xbf16> to vector<24x32xbf16>
    %68 = vector.extract_strided_slice %43 {offsets = [0, 160], sizes = [24, 32], strides = [1, 1]} : vector<24x384xbf16> to vector<24x32xbf16>
    %69 = vector.extract_strided_slice %43 {offsets = [0, 288], sizes = [24, 32], strides = [1, 1]} : vector<24x384xbf16> to vector<24x32xbf16>
    %cst_27 = arith.constant dense<0.000000e+00> : vector<24x24xf32>
    %70 = tpu.matmul %67, %68, %cst_27 {dimension_numbers = #tpu.dot_dimension_numbers<[1], [1], [0], [0], [0, 0, 1, 0], [], []>} : vector<24x32xbf16>, vector<24x32xbf16>, vector<24x24xf32> -> vector<24x24xf32>
    %71 = vector.broadcast %40 : vector<1x24xf32> to vector<24x24xf32>
    %72 = arith.addf %70, %71 : vector<24x24xf32>
    %cst_28 = arith.constant dense<0xFF800000> : vector<24xf32>
    %73 = vector.multi_reduction <maximumf>, %72, %cst_28 [1] : vector<24x24xf32> to vector<24xf32>
    %74 = vector.shape_cast %73 : vector<24xf32> to vector<24x1xf32>
    %75 = vector.broadcast %74 : vector<24x1xf32> to vector<24x24xf32>
    %76 = arith.subf %72, %75 : vector<24x24xf32>
    %77 = math.exp %76 : vector<24x24xf32>
    %cst_29 = arith.constant dense<0.000000e+00> : vector<24xf32>
    %78 = vector.multi_reduction <add>, %77, %cst_29 [1] : vector<24x24xf32> to vector<24xf32>
    %79 = vector.shape_cast %78 : vector<24xf32> to vector<24x1xf32>
    %80 = tpu.reciprocal %79 {approx = true} : vector<24x1xf32> -> vector<24x1xf32>
    %81 = vector.broadcast %80 : vector<24x1xf32> to vector<24x24xf32>
    %82 = arith.mulf %77, %81 : vector<24x24xf32>
    %83 = arith.truncf %82 : vector<24x24xf32> to vector<24x24xbf16>
    %cst_30 = arith.constant dense<0.000000e+00> : vector<24x32xf32>
    %84 = tpu.matmul %83, %69, %cst_30 {dimension_numbers = #tpu.dot_dimension_numbers<[1], [0], [0], [1], [0, 0, 1, 1], [], []>} : vector<24x24xbf16>, vector<24x32xbf16>, vector<24x32xf32> -> vector<24x32xf32>
    %85 = arith.truncf %84 : vector<24x32xf32> to vector<24x32xbf16>
    %86 = vector.extract_strided_slice %42 {offsets = [32, 0], sizes = [32, 128], strides = [1, 1]} : vector<128x128xbf16> to vector<32x128xbf16>
    %cst_31 = arith.constant dense<0.000000e+00> : vector<24x128xf32>
    %87 = tpu.matmul %85, %86, %cst_31 {dimension_numbers = #tpu.dot_dimension_numbers<[1], [0], [0], [1], [0, 0, 1, 1], [], []>} : vector<24x32xbf16>, vector<32x128xbf16>, vector<24x128xf32> -> vector<24x128xf32>
    %88 = arith.addf %66, %87 : vector<24x128xf32>
    %89 = vector.extract_strided_slice %43 {offsets = [0, 64], sizes = [24, 32], strides = [1, 1]} : vector<24x384xbf16> to vector<24x32xbf16>
    %90 = vector.extract_strided_slice %43 {offsets = [0, 192], sizes = [24, 32], strides = [1, 1]} : vector<24x384xbf16> to vector<24x32xbf16>
    %91 = vector.extract_strided_slice %43 {offsets = [0, 320], sizes = [24, 32], strides = [1, 1]} : vector<24x384xbf16> to vector<24x32xbf16>
    %cst_32 = arith.constant dense<0.000000e+00> : vector<24x24xf32>
    %92 = tpu.matmul %89, %90, %cst_32 {dimension_numbers = #tpu.dot_dimension_numbers<[1], [1], [0], [0], [0, 0, 1, 0], [], []>} : vector<24x32xbf16>, vector<24x32xbf16>, vector<24x24xf32> -> vector<24x24xf32>
    %93 = vector.broadcast %40 : vector<1x24xf32> to vector<24x24xf32>
    %94 = arith.addf %92, %93 : vector<24x24xf32>
    %cst_33 = arith.constant dense<0xFF800000> : vector<24xf32>
    %95 = vector.multi_reduction <maximumf>, %94, %cst_33 [1] : vector<24x24xf32> to vector<24xf32>
    %96 = vector.shape_cast %95 : vector<24xf32> to vector<24x1xf32>
    %97 = vector.broadcast %96 : vector<24x1xf32> to vector<24x24xf32>
    %98 = arith.subf %94, %97 : vector<24x24xf32>
    %99 = math.exp %98 : vector<24x24xf32>
    %cst_34 = arith.constant dense<0.000000e+00> : vector<24xf32>
    %100 = vector.multi_reduction <add>, %99, %cst_34 [1] : vector<24x24xf32> to vector<24xf32>
    %101 = vector.shape_cast %100 : vector<24xf32> to vector<24x1xf32>
    %102 = tpu.reciprocal %101 {approx = true} : vector<24x1xf32> -> vector<24x1xf32>
    %103 = vector.broadcast %102 : vector<24x1xf32> to vector<24x24xf32>
    %104 = arith.mulf %99, %103 : vector<24x24xf32>
    %105 = arith.truncf %104 : vector<24x24xf32> to vector<24x24xbf16>
    %cst_35 = arith.constant dense<0.000000e+00> : vector<24x32xf32>
    %106 = tpu.matmul %105, %91, %cst_35 {dimension_numbers = #tpu.dot_dimension_numbers<[1], [0], [0], [1], [0, 0, 1, 1], [], []>} : vector<24x24xbf16>, vector<24x32xbf16>, vector<24x32xf32> -> vector<24x32xf32>
    %107 = arith.truncf %106 : vector<24x32xf32> to vector<24x32xbf16>
    %108 = vector.extract_strided_slice %42 {offsets = [64, 0], sizes = [32, 128], strides = [1, 1]} : vector<128x128xbf16> to vector<32x128xbf16>
    %cst_36 = arith.constant dense<0.000000e+00> : vector<24x128xf32>
    %109 = tpu.matmul %107, %108, %cst_36 {dimension_numbers = #tpu.dot_dimension_numbers<[1], [0], [0], [1], [0, 0, 1, 1], [], []>} : vector<24x32xbf16>, vector<32x128xbf16>, vector<24x128xf32> -> vector<24x128xf32>
    %110 = arith.addf %88, %109 : vector<24x128xf32>
    %111 = vector.extract_strided_slice %43 {offsets = [0, 96], sizes = [24, 32], strides = [1, 1]} : vector<24x384xbf16> to vector<24x32xbf16>
    %112 = vector.extract_strided_slice %43 {offsets = [0, 224], sizes = [24, 32], strides = [1, 1]} : vector<24x384xbf16> to vector<24x32xbf16>
    %113 = vector.extract_strided_slice %43 {offsets = [0, 352], sizes = [24, 32], strides = [1, 1]} : vector<24x384xbf16> to vector<24x32xbf16>
    %cst_37 = arith.constant dense<0.000000e+00> : vector<24x24xf32>
    %114 = tpu.matmul %111, %112, %cst_37 {dimension_numbers = #tpu.dot_dimension_numbers<[1], [1], [0], [0], [0, 0, 1, 0], [], []>} : vector<24x32xbf16>, vector<24x32xbf16>, vector<24x24xf32> -> vector<24x24xf32>
    %115 = vector.broadcast %40 : vector<1x24xf32> to vector<24x24xf32>
    %116 = arith.addf %114, %115 : vector<24x24xf32>
    %cst_38 = arith.constant dense<0xFF800000> : vector<24xf32>
    %117 = vector.multi_reduction <maximumf>, %116, %cst_38 [1] : vector<24x24xf32> to vector<24xf32>
    %118 = vector.shape_cast %117 : vector<24xf32> to vector<24x1xf32>
    %119 = vector.broadcast %118 : vector<24x1xf32> to vector<24x24xf32>
    %120 = arith.subf %116, %119 : vector<24x24xf32>
    %121 = math.exp %120 : vector<24x24xf32>
    %cst_39 = arith.constant dense<0.000000e+00> : vector<24xf32>
    %122 = vector.multi_reduction <add>, %121, %cst_39 [1] : vector<24x24xf32> to vector<24xf32>
    %123 = vector.shape_cast %122 : vector<24xf32> to vector<24x1xf32>
    %124 = tpu.reciprocal %123 {approx = true} : vector<24x1xf32> -> vector<24x1xf32>
    %125 = vector.broadcast %124 : vector<24x1xf32> to vector<24x24xf32>
    %126 = arith.mulf %121, %125 : vector<24x24xf32>
    %127 = arith.truncf %126 : vector<24x24xf32> to vector<24x24xbf16>
    %cst_40 = arith.constant dense<0.000000e+00> : vector<24x32xf32>
    %128 = tpu.matmul %127, %113, %cst_40 {dimension_numbers = #tpu.dot_dimension_numbers<[1], [0], [0], [1], [0, 0, 1, 1], [], []>} : vector<24x24xbf16>, vector<24x32xbf16>, vector<24x32xf32> -> vector<24x32xf32>
    %129 = arith.truncf %128 : vector<24x32xf32> to vector<24x32xbf16>
    %130 = vector.extract_strided_slice %42 {offsets = [96, 0], sizes = [32, 128], strides = [1, 1]} : vector<128x128xbf16> to vector<32x128xbf16>
    %cst_41 = arith.constant dense<0.000000e+00> : vector<24x128xf32>
    %131 = tpu.matmul %129, %130, %cst_41 {dimension_numbers = #tpu.dot_dimension_numbers<[1], [0], [0], [1], [0, 0, 1, 1], [], []>} : vector<24x32xbf16>, vector<32x128xbf16>, vector<24x128xf32> -> vector<24x128xf32>
    %132 = arith.addf %110, %131 : vector<24x128xf32>
    %133 = vector.extract_strided_slice %34 {offsets = [24, 0], sizes = [24, 384], strides = [1, 1]} : vector<48x384xbf16> to vector<24x384xbf16>
    %cst_42 = arith.constant 0.000000e+00 : f32
    %134 = vector.broadcast %cst_42 : f32 to vector<24x128xf32>
    %135 = vector.extract_strided_slice %133 {offsets = [0, 0], sizes = [24, 32], strides = [1, 1]} : vector<24x384xbf16> to vector<24x32xbf16>
    %136 = vector.extract_strided_slice %133 {offsets = [0, 128], sizes = [24, 32], strides = [1, 1]} : vector<24x384xbf16> to vector<24x32xbf16>
    %137 = vector.extract_strided_slice %133 {offsets = [0, 256], sizes = [24, 32], strides = [1, 1]} : vector<24x384xbf16> to vector<24x32xbf16>
    %cst_43 = arith.constant dense<0.000000e+00> : vector<24x24xf32>
    %138 = tpu.matmul %135, %136, %cst_43 {dimension_numbers = #tpu.dot_dimension_numbers<[1], [1], [0], [0], [0, 0, 1, 0], [], []>} : vector<24x32xbf16>, vector<24x32xbf16>, vector<24x24xf32> -> vector<24x24xf32>
    %139 = vector.broadcast %40 : vector<1x24xf32> to vector<24x24xf32>
    %140 = arith.addf %138, %139 : vector<24x24xf32>
    %cst_44 = arith.constant dense<0xFF800000> : vector<24xf32>
    %141 = vector.multi_reduction <maximumf>, %140, %cst_44 [1] : vector<24x24xf32> to vector<24xf32>
    %142 = vector.shape_cast %141 : vector<24xf32> to vector<24x1xf32>
    %143 = vector.broadcast %142 : vector<24x1xf32> to vector<24x24xf32>
    %144 = arith.subf %140, %143 : vector<24x24xf32>
    %145 = math.exp %144 : vector<24x24xf32>
    %cst_45 = arith.constant dense<0.000000e+00> : vector<24xf32>
    %146 = vector.multi_reduction <add>, %145, %cst_45 [1] : vector<24x24xf32> to vector<24xf32>
    %147 = vector.shape_cast %146 : vector<24xf32> to vector<24x1xf32>
    %148 = tpu.reciprocal %147 {approx = true} : vector<24x1xf32> -> vector<24x1xf32>
    %149 = vector.broadcast %148 : vector<24x1xf32> to vector<24x24xf32>
    %150 = arith.mulf %145, %149 : vector<24x24xf32>
    %151 = arith.truncf %150 : vector<24x24xf32> to vector<24x24xbf16>
    %cst_46 = arith.constant dense<0.000000e+00> : vector<24x32xf32>
    %152 = tpu.matmul %151, %137, %cst_46 {dimension_numbers = #tpu.dot_dimension_numbers<[1], [0], [0], [1], [0, 0, 1, 1], [], []>} : vector<24x24xbf16>, vector<24x32xbf16>, vector<24x32xf32> -> vector<24x32xf32>
    %153 = arith.truncf %152 : vector<24x32xf32> to vector<24x32xbf16>
    %154 = vector.extract_strided_slice %42 {offsets = [0, 0], sizes = [32, 128], strides = [1, 1]} : vector<128x128xbf16> to vector<32x128xbf16>
    %cst_47 = arith.constant dense<0.000000e+00> : vector<24x128xf32>
    %155 = tpu.matmul %153, %154, %cst_47 {dimension_numbers = #tpu.dot_dimension_numbers<[1], [0], [0], [1], [0, 0, 1, 1], [], []>} : vector<24x32xbf16>, vector<32x128xbf16>, vector<24x128xf32> -> vector<24x128xf32>
    %156 = arith.addf %134, %155 : vector<24x128xf32>
    %157 = vector.extract_strided_slice %133 {offsets = [0, 32], sizes = [24, 32], strides = [1, 1]} : vector<24x384xbf16> to vector<24x32xbf16>
    %158 = vector.extract_strided_slice %133 {offsets = [0, 160], sizes = [24, 32], strides = [1, 1]} : vector<24x384xbf16> to vector<24x32xbf16>
    %159 = vector.extract_strided_slice %133 {offsets = [0, 288], sizes = [24, 32], strides = [1, 1]} : vector<24x384xbf16> to vector<24x32xbf16>
    %cst_48 = arith.constant dense<0.000000e+00> : vector<24x24xf32>
    %160 = tpu.matmul %157, %158, %cst_48 {dimension_numbers = #tpu.dot_dimension_numbers<[1], [1], [0], [0], [0, 0, 1, 0], [], []>} : vector<24x32xbf16>, vector<24x32xbf16>, vector<24x24xf32> -> vector<24x24xf32>
    %161 = vector.broadcast %40 : vector<1x24xf32> to vector<24x24xf32>
    %162 = arith.addf %160, %161 : vector<24x24xf32>
    %cst_49 = arith.constant dense<0xFF800000> : vector<24xf32>
    %163 = vector.multi_reduction <maximumf>, %162, %cst_49 [1] : vector<24x24xf32> to vector<24xf32>
    %164 = vector.shape_cast %163 : vector<24xf32> to vector<24x1xf32>
    %165 = vector.broadcast %164 : vector<24x1xf32> to vector<24x24xf32>
    %166 = arith.subf %162, %165 : vector<24x24xf32>
    %167 = math.exp %166 : vector<24x24xf32>
    %cst_50 = arith.constant dense<0.000000e+00> : vector<24xf32>
    %168 = vector.multi_reduction <add>, %167, %cst_50 [1] : vector<24x24xf32> to vector<24xf32>
    %169 = vector.shape_cast %168 : vector<24xf32> to vector<24x1xf32>
    %170 = tpu.reciprocal %169 {approx = true} : vector<24x1xf32> -> vector<24x1xf32>
    %171 = vector.broadcast %170 : vector<24x1xf32> to vector<24x24xf32>
    %172 = arith.mulf %167, %171 : vector<24x24xf32>
    %173 = arith.truncf %172 : vector<24x24xf32> to vector<24x24xbf16>
    %cst_51 = arith.constant dense<0.000000e+00> : vector<24x32xf32>
    %174 = tpu.matmul %173, %159, %cst_51 {dimension_numbers = #tpu.dot_dimension_numbers<[1], [0], [0], [1], [0, 0, 1, 1], [], []>} : vector<24x24xbf16>, vector<24x32xbf16>, vector<24x32xf32> -> vector<24x32xf32>
    %175 = arith.truncf %174 : vector<24x32xf32> to vector<24x32xbf16>
    %176 = vector.extract_strided_slice %42 {offsets = [32, 0], sizes = [32, 128], strides = [1, 1]} : vector<128x128xbf16> to vector<32x128xbf16>
    %cst_52 = arith.constant dense<0.000000e+00> : vector<24x128xf32>
    %177 = tpu.matmul %175, %176, %cst_52 {dimension_numbers = #tpu.dot_dimension_numbers<[1], [0], [0], [1], [0, 0, 1, 1], [], []>} : vector<24x32xbf16>, vector<32x128xbf16>, vector<24x128xf32> -> vector<24x128xf32>
    %178 = arith.addf %156, %177 : vector<24x128xf32>
    %179 = vector.extract_strided_slice %133 {offsets = [0, 64], sizes = [24, 32], strides = [1, 1]} : vector<24x384xbf16> to vector<24x32xbf16>
    %180 = vector.extract_strided_slice %133 {offsets = [0, 192], sizes = [24, 32], strides = [1, 1]} : vector<24x384xbf16> to vector<24x32xbf16>
    %181 = vector.extract_strided_slice %133 {offsets = [0, 320], sizes = [24, 32], strides = [1, 1]} : vector<24x384xbf16> to vector<24x32xbf16>
    %cst_53 = arith.constant dense<0.000000e+00> : vector<24x24xf32>
    %182 = tpu.matmul %179, %180, %cst_53 {dimension_numbers = #tpu.dot_dimension_numbers<[1], [1], [0], [0], [0, 0, 1, 0], [], []>} : vector<24x32xbf16>, vector<24x32xbf16>, vector<24x24xf32> -> vector<24x24xf32>
    %183 = vector.broadcast %40 : vector<1x24xf32> to vector<24x24xf32>
    %184 = arith.addf %182, %183 : vector<24x24xf32>
    %cst_54 = arith.constant dense<0xFF800000> : vector<24xf32>
    %185 = vector.multi_reduction <maximumf>, %184, %cst_54 [1] : vector<24x24xf32> to vector<24xf32>
    %186 = vector.shape_cast %185 : vector<24xf32> to vector<24x1xf32>
    %187 = vector.broadcast %186 : vector<24x1xf32> to vector<24x24xf32>
    %188 = arith.subf %184, %187 : vector<24x24xf32>
    %189 = math.exp %188 : vector<24x24xf32>
    %cst_55 = arith.constant dense<0.000000e+00> : vector<24xf32>
    %190 = vector.multi_reduction <add>, %189, %cst_55 [1] : vector<24x24xf32> to vector<24xf32>
    %191 = vector.shape_cast %190 : vector<24xf32> to vector<24x1xf32>
    %192 = tpu.reciprocal %191 {approx = true} : vector<24x1xf32> -> vector<24x1xf32>
    %193 = vector.broadcast %192 : vector<24x1xf32> to vector<24x24xf32>
    %194 = arith.mulf %189, %193 : vector<24x24xf32>
    %195 = arith.truncf %194 : vector<24x24xf32> to vector<24x24xbf16>
    %cst_56 = arith.constant dense<0.000000e+00> : vector<24x32xf32>
    %196 = tpu.matmul %195, %181, %cst_56 {dimension_numbers = #tpu.dot_dimension_numbers<[1], [0], [0], [1], [0, 0, 1, 1], [], []>} : vector<24x24xbf16>, vector<24x32xbf16>, vector<24x32xf32> -> vector<24x32xf32>
    %197 = arith.truncf %196 : vector<24x32xf32> to vector<24x32xbf16>
    %198 = vector.extract_strided_slice %42 {offsets = [64, 0], sizes = [32, 128], strides = [1, 1]} : vector<128x128xbf16> to vector<32x128xbf16>
    %cst_57 = arith.constant dense<0.000000e+00> : vector<24x128xf32>
    %199 = tpu.matmul %197, %198, %cst_57 {dimension_numbers = #tpu.dot_dimension_numbers<[1], [0], [0], [1], [0, 0, 1, 1], [], []>} : vector<24x32xbf16>, vector<32x128xbf16>, vector<24x128xf32> -> vector<24x128xf32>
    %200 = arith.addf %178, %199 : vector<24x128xf32>
    %201 = vector.extract_strided_slice %133 {offsets = [0, 96], sizes = [24, 32], strides = [1, 1]} : vector<24x384xbf16> to vector<24x32xbf16>
    %202 = vector.extract_strided_slice %133 {offsets = [0, 224], sizes = [24, 32], strides = [1, 1]} : vector<24x384xbf16> to vector<24x32xbf16>
    %203 = vector.extract_strided_slice %133 {offsets = [0, 352], sizes = [24, 32], strides = [1, 1]} : vector<24x384xbf16> to vector<24x32xbf16>
    %cst_58 = arith.constant dense<0.000000e+00> : vector<24x24xf32>
    %204 = tpu.matmul %201, %202, %cst_58 {dimension_numbers = #tpu.dot_dimension_numbers<[1], [1], [0], [0], [0, 0, 1, 0], [], []>} : vector<24x32xbf16>, vector<24x32xbf16>, vector<24x24xf32> -> vector<24x24xf32>
    %205 = vector.broadcast %40 : vector<1x24xf32> to vector<24x24xf32>
    %206 = arith.addf %204, %205 : vector<24x24xf32>
    %cst_59 = arith.constant dense<0xFF800000> : vector<24xf32>
    %207 = vector.multi_reduction <maximumf>, %206, %cst_59 [1] : vector<24x24xf32> to vector<24xf32>
    %208 = vector.shape_cast %207 : vector<24xf32> to vector<24x1xf32>
    %209 = vector.broadcast %208 : vector<24x1xf32> to vector<24x24xf32>
    %210 = arith.subf %206, %209 : vector<24x24xf32>
    %211 = math.exp %210 : vector<24x24xf32>
    %cst_60 = arith.constant dense<0.000000e+00> : vector<24xf32>
    %212 = vector.multi_reduction <add>, %211, %cst_60 [1] : vector<24x24xf32> to vector<24xf32>
    %213 = vector.shape_cast %212 : vector<24xf32> to vector<24x1xf32>
    %214 = tpu.reciprocal %213 {approx = true} : vector<24x1xf32> -> vector<24x1xf32>
    %215 = vector.broadcast %214 : vector<24x1xf32> to vector<24x24xf32>
    %216 = arith.mulf %211, %215 : vector<24x24xf32>
    %217 = arith.truncf %216 : vector<24x24xf32> to vector<24x24xbf16>
    %cst_61 = arith.constant dense<0.000000e+00> : vector<24x32xf32>
    %218 = tpu.matmul %217, %203, %cst_61 {dimension_numbers = #tpu.dot_dimension_numbers<[1], [0], [0], [1], [0, 0, 1, 1], [], []>} : vector<24x24xbf16>, vector<24x32xbf16>, vector<24x32xf32> -> vector<24x32xf32>
    %219 = arith.truncf %218 : vector<24x32xf32> to vector<24x32xbf16>
    %220 = vector.extract_strided_slice %42 {offsets = [96, 0], sizes = [32, 128], strides = [1, 1]} : vector<128x128xbf16> to vector<32x128xbf16>
    %cst_62 = arith.constant dense<0.000000e+00> : vector<24x128xf32>
    %221 = tpu.matmul %219, %220, %cst_62 {dimension_numbers = #tpu.dot_dimension_numbers<[1], [0], [0], [1], [0, 0, 1, 1], [], []>} : vector<24x32xbf16>, vector<32x128xbf16>, vector<24x128xf32> -> vector<24x128xf32>
    %222 = arith.addf %200, %221 : vector<24x128xf32>
    %223 = tpu.concatenate %132, %222 in 0 : vector<24x128xf32>, vector<24x128xf32> -> vector<48x128xf32>
    %c0_63 = arith.constant 0 : index
    %c0_64 = arith.constant 0 : index
    %c0_65 = arith.constant 0 : index
    %224 = vector.load %arg6[%c0_63, %c0_64, %c0_65] : memref<1x1x128xf32, #tpu.memory_space<vmem>>, vector<1x1x128xf32>
    %225 = vector.shape_cast %224 : vector<1x1x128xf32> to vector<1x128xf32>
    %226 = vector.broadcast %225 : vector<1x128xf32> to vector<48x128xf32>
    %227 = arith.addf %223, %226 : vector<48x128xf32>
    %228 = arith.addf %3, %227 : vector<48x128xf32>
    %c0_66 = arith.constant 0 : index
    %c0_67 = arith.constant 0 : index
    %c0_68 = arith.constant 0 : index
    %229 = vector.load %arg7[%c0_66, %c0_67, %c0_68] : memref<1x1x128xf32, #tpu.memory_space<vmem>>, vector<1x1x128xf32>
    %230 = vector.shape_cast %229 : vector<1x1x128xf32> to vector<1x128xf32>
    %c0_69 = arith.constant 0 : index
    %c0_70 = arith.constant 0 : index
    %c0_71 = arith.constant 0 : index
    %231 = vector.load %arg8[%c0_69, %c0_70, %c0_71] : memref<1x1x128xf32, #tpu.memory_space<vmem>>, vector<1x1x128xf32>
    %232 = vector.shape_cast %231 : vector<1x1x128xf32> to vector<1x128xf32>
    %cst_72 = arith.constant dense<0.000000e+00> : vector<48xf32>
    %233 = vector.multi_reduction <add>, %228, %cst_72 [1] : vector<48x128xf32> to vector<48xf32>
    %234 = vector.shape_cast %233 : vector<48xf32> to vector<48x1xf32>
    %cst_73 = arith.constant 1.280000e+02 : f32
    %235 = vector.broadcast %cst_73 : f32 to vector<48x1xf32>
    %236 = arith.divf %234, %235 : vector<48x1xf32>
    %237 = vector.broadcast %236 : vector<48x1xf32> to vector<48x128xf32>
    %238 = arith.subf %228, %237 : vector<48x128xf32>
    %239 = arith.mulf %238, %238 : vector<48x128xf32>
    %cst_74 = arith.constant dense<0.000000e+00> : vector<48xf32>
    %240 = vector.multi_reduction <add>, %239, %cst_74 [1] : vector<48x128xf32> to vector<48xf32>
    %241 = vector.shape_cast %240 : vector<48xf32> to vector<48x1xf32>
    %cst_75 = arith.constant 1.280000e+02 : f32
    %242 = vector.broadcast %cst_75 : f32 to vector<48x1xf32>
    %243 = arith.divf %241, %242 : vector<48x1xf32>
    %244 = vector.broadcast %236 : vector<48x1xf32> to vector<48x128xf32>
    %245 = arith.subf %228, %244 : vector<48x128xf32>
    %cst_76 = arith.constant 9.99999974E-6 : f32
    %246 = vector.broadcast %cst_76 : f32 to vector<48x1xf32>
    %247 = arith.addf %243, %246 : vector<48x1xf32>
    %248 = math.rsqrt %247 : vector<48x1xf32>
    %249 = vector.broadcast %248 : vector<48x1xf32> to vector<48x128xf32>
    %250 = arith.mulf %245, %249 : vector<48x128xf32>
    %251 = vector.broadcast %230 : vector<1x128xf32> to vector<48x128xf32>
    %252 = arith.mulf %250, %251 : vector<48x128xf32>
    %253 = vector.broadcast %232 : vector<1x128xf32> to vector<48x128xf32>
    %254 = arith.addf %252, %253 : vector<48x128xf32>
    %255 = arith.truncf %254 : vector<48x128xf32> to vector<48x128xbf16>
    %c0_77 = arith.constant 0 : index
    %c0_78 = arith.constant 0 : index
    %c0_79 = arith.constant 0 : index
    %256 = vector.load %arg9[%c0_77, %c0_78, %c0_79] : memref<1x128x512xbf16, #tpu.memory_space<vmem>>, vector<1x128x512xbf16>
    %257 = vector.shape_cast %256 : vector<1x128x512xbf16> to vector<128x512xbf16>
    %cst_80 = arith.constant dense<0.000000e+00> : vector<48x512xf32>
    %258 = tpu.matmul %255, %257, %cst_80 {dimension_numbers = #tpu.dot_dimension_numbers<[1], [0], [0], [1], [0, 0, 1, 1], [], []>} : vector<48x128xbf16>, vector<128x512xbf16>, vector<48x512xf32> -> vector<48x512xf32>
    %c0_81 = arith.constant 0 : index
    %c0_82 = arith.constant 0 : index
    %c0_83 = arith.constant 0 : index
    %259 = vector.load %arg10[%c0_81, %c0_82, %c0_83] : memref<1x1x512xf32, #tpu.memory_space<vmem>>, vector<1x1x512xf32>
    %260 = vector.shape_cast %259 : vector<1x1x512xf32> to vector<1x512xf32>
    %261 = vector.broadcast %260 : vector<1x512xf32> to vector<48x512xf32>
    %262 = arith.addf %258, %261 : vector<48x512xf32>
    %cst_84 = arith.constant 5.000000e-01 : f32
    %263 = vector.broadcast %cst_84 : f32 to vector<48x512xf32>
    %264 = arith.mulf %263, %262 : vector<48x512xf32>
    %cst_85 = arith.constant 0.707106769 : f32
    %265 = vector.broadcast %cst_85 : f32 to vector<48x512xf32>
    %266 = arith.mulf %262, %265 : vector<48x512xf32>
    %267 = math.erf %266 : vector<48x512xf32>
    %cst_86 = arith.constant 1.000000e+00 : f32
    %268 = vector.broadcast %cst_86 : f32 to vector<48x512xf32>
    %269 = arith.addf %268, %267 : vector<48x512xf32>
    %270 = arith.mulf %264, %269 : vector<48x512xf32>
    %271 = arith.truncf %270 : vector<48x512xf32> to vector<48x512xbf16>
    %c0_87 = arith.constant 0 : index
    %c0_88 = arith.constant 0 : index
    %c0_89 = arith.constant 0 : index
    %272 = vector.load %arg11[%c0_87, %c0_88, %c0_89] : memref<1x512x128xbf16, #tpu.memory_space<vmem>>, vector<1x512x128xbf16>
    %273 = vector.shape_cast %272 : vector<1x512x128xbf16> to vector<512x128xbf16>
    %cst_90 = arith.constant dense<0.000000e+00> : vector<48x128xf32>
    %274 = tpu.matmul %271, %273, %cst_90 {dimension_numbers = #tpu.dot_dimension_numbers<[1], [0], [0], [1], [0, 0, 1, 1], [], []>} : vector<48x512xbf16>, vector<512x128xbf16>, vector<48x128xf32> -> vector<48x128xf32>
    %c0_91 = arith.constant 0 : index
    %c0_92 = arith.constant 0 : index
    %c0_93 = arith.constant 0 : index
    %275 = vector.load %arg12[%c0_91, %c0_92, %c0_93] : memref<1x1x128xf32, #tpu.memory_space<vmem>>, vector<1x1x128xf32>
    %276 = vector.shape_cast %275 : vector<1x1x128xf32> to vector<1x128xf32>
    %277 = vector.broadcast %276 : vector<1x128xf32> to vector<48x128xf32>
    %278 = arith.addf %274, %277 : vector<48x128xf32>
    %279 = arith.addf %228, %278 : vector<48x128xf32>
    %c0_94 = arith.constant 0 : index
    %c0_95 = arith.constant 0 : index
    %280 = vector.load %arg18[%c0_94, %c0_95] : memref<48x128xf32, #tpu.memory_space<vmem>>, vector<48x128xf32>
    tpu.vector_store %arg18[%c0_94, %c0_95], %279 {strides = array<i32>} : memref<48x128xf32, #tpu.memory_space<vmem>>, vector<48x128xf32>,
    %c1_i32 = arith.constant 1 : i32
    %281 = arith.cmpi eq, %arg0, %c1_i32 : i32
    %282 = arith.extui %281 : i1 to i32
    %c0_i32_96 = arith.constant 0 : i32
    %283 = arith.cmpi ne, %282, %c0_i32_96 : i32
    scf.if %283 {
      %284 = vector.extract_strided_slice %279 {offsets = [0, 0], sizes = [1, 128], strides = [1, 1]} : vector<48x128xf32> to vector<1x128xf32>
      %285 = vector.extract_strided_slice %279 {offsets = [24, 0], sizes = [1, 128], strides = [1, 1]} : vector<48x128xf32> to vector<1x128xf32>
      %286 = tpu.concatenate %284, %285 in 0 : vector<1x128xf32>, vector<1x128xf32> -> vector<2x128xf32>
      %c0_97 = arith.constant 0 : index
      %c0_98 = arith.constant 0 : index
      %287 = vector.load %arg13[%c0_97, %c0_98] : memref<1x128xf32, #tpu.memory_space<vmem>>, vector<1x128xf32>
      %c0_99 = arith.constant 0 : index
      %c0_100 = arith.constant 0 : index
      %288 = vector.load %arg14[%c0_99, %c0_100] : memref<1x128xf32, #tpu.memory_space<vmem>>, vector<1x128xf32>
      %cst_101 = arith.constant dense<0.000000e+00> : vector<2xf32>
      %289 = vector.multi_reduction <add>, %286, %cst_101 [1] : vector<2x128xf32> to vector<2xf32>
      %290 = vector.shape_cast %289 : vector<2xf32> to vector<2x1xf32>
      %cst_102 = arith.constant 1.280000e+02 : f32
      %291 = vector.broadcast %cst_102 : f32 to vector<2x1xf32>
      %292 = arith.divf %290, %291 : vector<2x1xf32>
      %293 = vector.broadcast %292 : vector<2x1xf32> to vector<2x128xf32>
      %294 = arith.subf %286, %293 : vector<2x128xf32>
      %295 = arith.mulf %294, %294 : vector<2x128xf32>
      %cst_103 = arith.constant dense<0.000000e+00> : vector<2xf32>
      %296 = vector.multi_reduction <add>, %295, %cst_103 [1] : vector<2x128xf32> to vector<2xf32>
      %297 = vector.shape_cast %296 : vector<2xf32> to vector<2x1xf32>
      %cst_104 = arith.constant 1.280000e+02 : f32
      %298 = vector.broadcast %cst_104 : f32 to vector<2x1xf32>
      %299 = arith.divf %297, %298 : vector<2x1xf32>
      %300 = vector.broadcast %292 : vector<2x1xf32> to vector<2x128xf32>
      %301 = arith.subf %286, %300 : vector<2x128xf32>
      %cst_105 = arith.constant 9.99999974E-6 : f32
      %302 = vector.broadcast %cst_105 : f32 to vector<2x1xf32>
      %303 = arith.addf %299, %302 : vector<2x1xf32>
      %304 = math.rsqrt %303 : vector<2x1xf32>
      %305 = vector.broadcast %304 : vector<2x1xf32> to vector<2x128xf32>
      %306 = arith.mulf %301, %305 : vector<2x128xf32>
      %307 = vector.broadcast %287 : vector<1x128xf32> to vector<2x128xf32>
      %308 = arith.mulf %306, %307 : vector<2x128xf32>
      %309 = vector.broadcast %288 : vector<1x128xf32> to vector<2x128xf32>
      %310 = arith.addf %308, %309 : vector<2x128xf32>
      %311 = arith.truncf %310 : vector<2x128xf32> to vector<2x128xbf16>
      %c0_106 = arith.constant 0 : index
      %c0_107 = arith.constant 0 : index
      %312 = vector.load %arg15[%c0_106, %c0_107] : memref<128x16xbf16, #tpu.memory_space<vmem>>, vector<128x16xbf16>
      %cst_108 = arith.constant dense<0.000000e+00> : vector<2x16xf32>
      %313 = tpu.matmul %311, %312, %cst_108 {dimension_numbers = #tpu.dot_dimension_numbers<[1], [0], [0], [1], [0, 0, 1, 1], [], []>} : vector<2x128xbf16>, vector<128x16xbf16>, vector<2x16xf32> -> vector<2x16xf32>
      %c0_109 = arith.constant 0 : index
      %c0_110 = arith.constant 0 : index
      %314 = vector.load %arg16[%c0_109, %c0_110] : memref<1x16xf32, #tpu.memory_space<vmem>>, vector<1x16xf32>
      %315 = vector.broadcast %314 : vector<1x16xf32> to vector<2x16xf32>
      %316 = arith.addf %313, %315 : vector<2x16xf32>
      %c0_111 = arith.constant 0 : index
      %c0_112 = arith.constant 0 : index
      %317 = vector.load %arg17[%c0_111, %c0_112] : memref<2x16xf32, #tpu.memory_space<vmem>>, vector<2x16xf32>
      tpu.vector_store %arg17[%c0_111, %c0_112], %316 {strides = array<i32>} : memref<2x16xf32, #tpu.memory_space<vmem>>, vector<2x16xf32>,
    } else {
    }
    return
  }
  func.func @transform_0(%arg0: i32) -> (i32, i32) {
    %c0_i32 = arith.constant 0 : i32
    %c0_i32_0 = arith.constant 0 : i32
    %c0_i32_1 = arith.constant 0 : i32
    return %c0_i32, %c0_i32_0 : i32, i32
  }
  func.func @transform_1(%arg0: i32) -> (i32, i32, i32) {
    %c0_i32 = arith.constant 0 : i32
    %c0_i32_0 = arith.constant 0 : i32
    %c0_i32_1 = arith.constant 0 : i32
    return %arg0, %c0_i32, %c0_i32_0 : i32, i32, i32
  }
  func.func @transform_2(%arg0: i32) -> (i32, i32, i32) {
    %c0_i32 = arith.constant 0 : i32
    %c0_i32_0 = arith.constant 0 : i32
    %c0_i32_1 = arith.constant 0 : i32
    return %arg0, %c0_i32, %c0_i32_0 : i32, i32, i32
  }
  func.func @transform_3(%arg0: i32) -> (i32, i32, i32) {
    %c0_i32 = arith.constant 0 : i32
    %c0_i32_0 = arith.constant 0 : i32
    %c0_i32_1 = arith.constant 0 : i32
    return %arg0, %c0_i32, %c0_i32_0 : i32, i32, i32
  }
  func.func @transform_4(%arg0: i32) -> (i32, i32, i32) {
    %c0_i32 = arith.constant 0 : i32
    %c0_i32_0 = arith.constant 0 : i32
    %c0_i32_1 = arith.constant 0 : i32
    return %arg0, %c0_i32, %c0_i32_0 : i32, i32, i32
  }
  func.func @transform_5(%arg0: i32) -> (i32, i32, i32) {
    %c0_i32 = arith.constant 0 : i32
    %c0_i32_0 = arith.constant 0 : i32
    %c0_i32_1 = arith.constant 0 : i32
    return %arg0, %c0_i32, %c0_i32_0 : i32, i32, i32
  }
  func.func @transform_6(%arg0: i32) -> (i32, i32, i32) {
    %c0_i32 = arith.constant 0 : i32
    %c0_i32_0 = arith.constant 0 : i32
    %c0_i32_1 = arith.constant 0 : i32
    return %arg0, %c0_i32, %c0_i32_0 : i32, i32, i32
  }
  func.func @transform_7(%arg0: i32) -> (i32, i32, i32) {
    %c0_i32 = arith.constant 0 : i32
    %c0_i32_0 = arith.constant 0 : i32
    %c0_i32_1 = arith.constant 0 : i32
    return %arg0, %c0_i32, %c0_i32_0 : i32, i32, i32
  }
  func.func @transform_8(%arg0: i32) -> (i32, i32, i32) {
    %c0_i32 = arith.constant 0 : i32
    %c0_i32_0 = arith.constant 0 : i32
    %c0_i32_1 = arith.constant 0 : i32
    return %arg0, %c0_i32, %c0_i32_0 : i32, i32, i32
  }
  func.func @transform_9(%arg0: i32) -> (i32, i32, i32) {
    %c0_i32 = arith.constant 0 : i32
    %c0_i32_0 = arith.constant 0 : i32
    %c0_i32_1 = arith.constant 0 : i32
    return %arg0, %c0_i32, %c0_i32_0 : i32, i32, i32
  }
  func.func @transform_10(%arg0: i32) -> (i32, i32, i32) {
    %c0_i32 = arith.constant 0 : i32
    %c0_i32_0 = arith.constant 0 : i32
    %c0_i32_1 = arith.constant 0 : i32
    return %arg0, %c0_i32, %c0_i32_0 : i32, i32, i32
  }
  func.func @transform_11(%arg0: i32) -> (i32, i32, i32) {
    %c0_i32 = arith.constant 0 : i32
    %c0_i32_0 = arith.constant 0 : i32
    %c0_i32_1 = arith.constant 0 : i32
    return %arg0, %c0_i32, %c0_i32_0 : i32, i32, i32
  }
  func.func @transform_12(%arg0: i32) -> (i32, i32) {
    %c0_i32 = arith.constant 0 : i32
    %c0_i32_0 = arith.constant 0 : i32
    %c0_i32_1 = arith.constant 0 : i32
    return %c0_i32, %c0_i32_0 : i32, i32
  }
  func.func @transform_13(%arg0: i32) -> (i32, i32) {
    %c0_i32 = arith.constant 0 : i32
    %c0_i32_0 = arith.constant 0 : i32
    %c0_i32_1 = arith.constant 0 : i32
    return %c0_i32, %c0_i32_0 : i32, i32
  }
  func.func @transform_14(%arg0: i32) -> (i32, i32) {
    %c0_i32 = arith.constant 0 : i32
    %c0_i32_0 = arith.constant 0 : i32
    %c0_i32_1 = arith.constant 0 : i32
    return %c0_i32, %c0_i32_0 : i32, i32
  }
  func.func @transform_15(%arg0: i32) -> (i32, i32) {
    %c0_i32 = arith.constant 0 : i32
    %c0_i32_0 = arith.constant 0 : i32
    %c0_i32_1 = arith.constant 0 : i32
    return %c0_i32, %c0_i32_0 : i32, i32
  }
  func.func @transform_16(%arg0: i32) -> (i32, i32) {
    %c0_i32 = arith.constant 0 : i32
    %c0_i32_0 = arith.constant 0 : i32
    %c0_i32_1 = arith.constant 0 : i32
    return %c0_i32, %c0_i32_0 : i32, i32
  }
}

</mosaic_0001>

<bundles_post_ra>
// kernel: vit_forward.2
= control target key start
LH: loop header
LB: loop body
LE: loop exit
PB: predicated region body
PF: predicated region fallthrough
CT: control target
= control target key end

     0   :  { %s471_s18 = smov 0   ;;  %s515_s0 = inlined_call_operand.vmem [shape: f32[2,16,64], index: 0, kind: input, shape index: {}]   ;;  %s516_s1 = inlined_call_operand.vmem [shape: bf16[64,128], index: 1, kind: input, shape index: {}]   ;;  %s517_s2 = inlined_call_operand.vmem [shape: f32[1,128], index: 2, kind: input, shape index: {}]   ;;  %s518_s3 = inlined_call_operand.vmem [shape: f32[1,128], index: 3, kind: input, shape index: {}]   ;;  %s519_s4 = inlined_call_operand.vmem [shape: f32[24,128], index: 4, kind: input, shape index: {}]   ;;  %s520_s5 = inlined_call_operand.vmem [shape: f32[48,128], index: 5, kind: output, shape index: {}]  }
   0x1 LB: > { %s383_s19 = sadd.s32 4294967295, %s437_s18   ;;  %p387_p0 = scmp.ge.s32.totalorder %s437_s18, 1  ;;  %s437_s18 = sphi %s471_s18, %s15_s18  }
   0x2   : > { %p187_p1 = scmp.lt.s32.totalorder %s437_s18, 3 }
   0x4   : > { %p188_p2 = pnand %p387_p0, %p187_p1 }
   0x5   : > { %v427_v0 = vld [vmem:[%s516_s1] sm:$0xff] (!%p188_p2)   ;;  %v439_v1 = vmov (!%p188_p2), 0.0   ;;  %v428_v2 = vld [vmem:[%s516_s1 + $0x8] sm:$0xff] (!%p188_p2)   ;;  %vm440_vm0 = vmmov (!%p188_p2), 0   ;;  %p215_p3 = scmp.lt.s32.totalorder (!%p188_p2), %s383_s19, 1  ;;  %s220_s25 = smul.u32 (!%p188_p2), 3, %s383_s19 }
   0x6   : > { %191 = sbr.rel (%p188_p2) target bundleno = 241 (0xf1), region = 40  ;;  %405 = vmatprep.subr.bf16.mxu0 (!%p188_p2), %v439_v1  ;;  %413 = vmatprep.mubr.msk.bf16.mxu0 (!%p188_p2), %vm440_vm0, %v439_v1  ;;  %v429_v3 = vld [vmem:[%s516_s1 + $0x10] sm:$0xff] (!%p188_p2)   ;;  %v430_v4 = vld [vmem:[%s516_s1 + $0x18] sm:$0xff] (!%p188_p2)   ;;  %vm269_vm1 = vcmask (!%p188_p2), 523264   ;;  %v317_v8 = vld [vmem:[%s518_s3] sm:$0x1] (!%p188_p2) }
   0x7   : > { %406 = vmatpush3.bf16.msra.mxu0 (!%p188_p2), %v427_v0  ;;  %p221_p4 = scmp.lt.s32.totalorder (!%p188_p2), %s220_s25, 5  ;;  %v318_v9 = vld [vmem:[%s519_s4] sm:$0x1] (!%p188_p2)  ;;  %v321_v13 = vld [vmem:[%s519_s4 + $0x1] sm:$0xff] (!%p188_p2)  ;;  %v322_v17 = vld [vmem:[%s519_s4 + $0x9] sm:$0xff] (!%p188_p2) }
   0x8   : > { %407 = vmatprep.subr.bf16.mxu0 (!%p188_p2), %v439_v1  ;;  %v319_v10 = vadd.f32 (!%p188_p2), %v318_v9, %v317_v8  ;;  %v391_v11 = vld [vmem:[%s517_s2] ss:$0 sm:$0xff] (!%p188_p2) }
   0xb   : > { %408 = vmatpush3.bf16.msra.mxu0 (!%p188_p2), %v428_v2 }
   0xc   : > { %409 = vmatprep.subr.bf16.mxu0 (!%p188_p2), %v439_v1 }
   0xd   : > { %s216_s24 = scalar_select %p215_p3, %s383_s19, 1 }
   0xe   : > { %s522_s25 = smov (!%p221_p4, %s220_s25), 5 }
   0xf   : > { %s399_s28 = sshll.u32 %s216_s24, 4  ;;  %410 = vmatpush3.bf16.msra.mxu0 %v429_v3  ;;  %s390_s9 = sshll.u32 %s522_s25, 3 }
  0x10   : > { %s219_s6 = scalar_lea.vmem %s515_s0, %s399_s28  ;;  %411 = vmatprep.subr.bf16.mxu0 %v439_v1  ;;  %s224_s12 = scalar_lea.vmem %s520_s5, %s390_s9 }
  0x11   : > { %v227_v5 = vld [vmem:[%s219_s6] sm:$0xff]  ;;  %v228_v6 = vld [vmem:[%s219_s6 + $0x8] sm:$0xff]  ;;  %314 = vst [vmem:[%s224_s12] sm:$0xff] %v439_v1  ;;  %315 = vst [vmem:[%s224_s12 + $0x8] sm:$0xff] %v439_v1 }
  0x12   : > { %v229_v7 = vpack.c.bf16 %v228_v6, %v227_v5  ;;  %316 = vst [vmem:[%s224_s12 + $0x10] sm:$0xff] %v439_v1  ;;  %320 = vst [vmem:[%s224_s12] sm:$0x1] %v319_v10 }
  0x13   : > { %412 = vmatpush3.bf16.msra.mxu0 %v430_v4 }
  0x16   : > { %414 = vmatmul.mubr.msk.bf16.vlgmr.msra.gmra.mrb[0].mxu0 %vm269_vm1, %v229_v7 }
  0xe9   : > { %v307_v12 = vpop.f32.mrb[0].mxu0 }
  0xea   : > { %v308_v14 = vadd.f32 %v391_v11, %v307_v12  ;;  %v415_v15 = vpop.f32.mrb[1].mxu0 }
  0xeb   : > { %v310_v16 = vpop.f32.mrb[2].mxu0 }
  0xec   : > { %v323_v18 = vadd.f32 %v321_v13, %v308_v14  ;;  %v311_v19 = vadd.f32 %v391_v11, %v310_v16  ;;  %v416_v20 = vpop.f32.mrb[3].mxu0 }
  0xee   : > { %325 = vst [vmem:[%s224_s12 + $0x1] sm:$0xff] %v323_v18  ;;  %v324_v21 = vadd.f32 %v322_v17, %v311_v19 }
  0xf0   : > { %326 = vst [vmem:[%s224_s12 + $0x9] sm:$0xff] %v324_v21 }
  0xf1 PF: > { %s15_s18 = sadd.s32 1, %s437_s18  }
  0xf2   : > { %p12_p5 = scmp.ge.s32.totalorder %s15_s18, 4  }
  0xf4   :  { %14 = sbr.rel (!%p12_p5) target bundleno = 1 (0x1), region = 70 }

// kernel: vit_forward.3
= control target key start
LH: loop header
LB: loop body
LE: loop exit
PB: predicated region body
PF: predicated region fallthrough
CT: control target
= control target key end

     0   :  { %s6185_s0 = inlined_call_operand.vmem [shape: f32[48,128], index: 0, kind: input, shape index: {}]   ;;  %s6186_s1 = inlined_call_operand.vmem [shape: f32[2,1,128], index: 1, kind: input, shape index: {}]   ;;  %s6187_s2 = inlined_call_operand.vmem [shape: f32[2,1,128], index: 2, kind: input, shape index: {}]   ;;  %s6188_s3 = inlined_call_operand.vmem [shape: bf16[2,128,384], index: 3, kind: input, shape index: {}]   ;;  %s6189_s4 = inlined_call_operand.vmem [shape: bf16[2,128,128], index: 4, kind: input, shape index: {}]   ;;  %s6190_s5 = inlined_call_operand.vmem [shape: f32[2,1,128], index: 5, kind: input, shape index: {}]   ;;  %s6191_s6 = inlined_call_operand.vmem [shape: f32[2,1,128], index: 6, kind: input, shape index: {}]   ;;  %s6192_s7 = inlined_call_operand.vmem [shape: f32[2,1,128], index: 7, kind: input, shape index: {}]   ;;  %s6193_s8 = inlined_call_operand.vmem [shape: bf16[2,128,512], index: 8, kind: input, shape index: {}]   ;;  %s6194_s9 = inlined_call_operand.vmem [shape: f32[2,1,512], index: 9, kind: input, shape index: {}]   ;;  %s6195_s10 = inlined_call_operand.vmem [shape: bf16[2,512,128], index: 10, kind: input, shape index: {}]   ;;  %s6196_s11 = inlined_call_operand.vmem [shape: f32[2,1,128], index: 11, kind: input, shape index: {}]   ;;  %s6197_s12 = inlined_call_operand.vmem [shape: f32[1,128], index: 12, kind: input, shape index: {}]   ;;  %s6198_s13 = inlined_call_operand.vmem [shape: f32[1,128], index: 13, kind: input, shape index: {}]   ;;  %s6199_s14 = inlined_call_operand.vmem [shape: bf16[128,16], index: 14, kind: input, shape index: {}]   ;;  %s6200_s15 = inlined_call_operand.vmem [shape: f32[1,16], index: 15, kind: input, shape index: {}]   ;;  %s6201_s16 = inlined_call_operand.hbm [shape: f32[2,16], index: 16, kind: output, shape index: {}]  }
   0x1   :  { %6205 = sst [smem:[#allocation7_spill]] %s6185_s0 }
   0x2   :  { %6206 = sst [smem:[#allocation8_spill]] %s6189_s4 }
   0x3   :  { %6207 = sst [smem:[#allocation9_spill]] %s6197_s12 }
   0x4   :  { %6208 = sst [smem:[#allocation10_spill]] %s6198_s13 }
   0x5   :  { %6209 = sst [smem:[#allocation11_spill]] %s6200_s15 }
   0x6   :  { %6210 = sst [smem:[#allocation12_spill]] %s6201_s16 }
   0x7   :  { %21 = vsyncpa [#allocation4], 0  ;;  %s5290_s21 = smov 0  }
   0x8 LB: > { %6211 = sst [smem:[#allocation6_spill]] %s5193_s21  ;;  %s5296_s22 = sadd.s32 4294967295, %s5193_s21   ;;  %s5193_s21 = sphi %s5290_s21, %s27_s21  }
   0x9   : > { %p4201_p0 = scmp.ge.s32.totalorder %s5193_s21, 1  ;;  %p545_p1 = scmp.lt.s32.totalorder %s5193_s21, 3 }
   0xb   : > { %p546_p2 = pnand %p4201_p0, %p545_p1 }
   0xc   : > { %p627_p3 = scmp.lt.s32.totalorder (!%p546_p2), %s5296_s22, 1  ;;  %s6212_s4 = sld [smem:[#allocation8_spill]] (!%p546_p2) }
   0xd   : > { %549 = sbr.rel (%p546_p2) target bundleno = 5796 (0x16a4), region = 84  ;;  %p4210_p4 = scmp.ne.s32.totalorder (!%p546_p2), %s5296_s22, 0 }
  0x14   : > { %s5302_s23 = scalar_select %p627_p3, %s5296_s22, 1 }
  0x15   : > { %673 = sbr.rel (%p4210_p4) target bundleno = 31 (0x1f), region = 88  ;;  %s6213_s12 = sld [smem:[#allocation7_spill]] (!%p4210_p4) }
  0x16   : > { %s4828_s30 = smul.u32 192, %s5302_s23  ;;  %s4377_s0 = sshll.u32 %s5302_s23, 6 }
  0x17   : > { %s5317_s19 = scalar_lea.vmem %s6212_s4, %s4377_s0  ;;  %s4378_s17 = sshll.u32 %s5302_s23, 8 }
  0x18   : > { %s5326_s15 = scalar_lea.vmem %s6188_s3, %s4828_s30  ;;  %s5340_s4 = scalar_lea.vmem %s6193_s8, %s4378_s17 }
  0x19   : > { %s4207_s20 = sshll.u32 %s5302_s23, 2  ;;  %s5351_s13 = scalar_lea.vmem %s6195_s10, %s4378_s17 }
  0x1a   : > { %s5346_s16 = scalar_lea.vmem %s6194_s9, %s4207_s20  ;;  %s668_s28 = scalar_lea.vmem %s6196_s11, %s5302_s23 }
  0x1b   : > { %v674_v0 = vld [vmem:[%s6213_s12] sm:$0xff] (!%p4210_p4)  ;;  %v675_v1 = vld [vmem:[%s6213_s12 + $0x8] sm:$0xff] (!%p4210_p4)  ;;  %v676_v2 = vld [vmem:[%s6213_s12 + $0x10] sm:$0xff] (!%p4210_p4) }
  0x1c   : > { %680 = vst [vmem:[#allocation2] sm:$0xff] %v674_v0  ;;  %681 = vst [vmem:[#allocation2 + $0x8] sm:$0xff] %v675_v1  ;;  %v677_v3 = vld [vmem:[%s6213_s12 + $0x18] sm:$0xff]  ;;  %v678_v4 = vld [vmem:[%s6213_s12 + $0x20] sm:$0xff] }
  0x1d   : > { %682 = vst [vmem:[#allocation2 + $0x10] sm:$0xff] %v676_v2  ;;  %v679_v5 = vld [vmem:[%s6213_s12 + $0x28] sm:$0xff]  ;;  %683 = vst [vmem:[#allocation2 + $0x18] sm:$0xff] %v677_v3 }
  0x1e   : > { %684 = vst [vmem:[#allocation2 + $0x20] sm:$0xff] %v678_v4  ;;  %685 = vst [vmem:[#allocation2 + $0x28] sm:$0xff] %v679_v5 }
  0x1f PF: > { %v4853_v10 = vld [vmem:[%s5326_s15 + $0x4] ss:$12 sps:$4 sm:$0xff]   ;;  %v4855_v11 = vld [vmem:[%s5326_s15] ss:$12 sps:$4 sm:$0xff]   ;;  %v5195_v12 = vmov 0.0   ;;  %v5196_v53 = vmov 0   ;;  %s6214_s18 = scalar_lea.vmem %s6186_s1, %s5302_s23  ;;  %s6215_s24 = scalar_lea.vmem %s6187_s2, %s5302_s23 }
  0x20   : > { %4564 = vmatprep.subr.bf16.mxu1 %v5195_v12  ;;  %v4856_v13 = vld [vmem:[%s5326_s15 + $0x8] ss:$12 sps:$4 sm:$0xff]   ;;  %948 = vmatprep.subr.bf16.mxu0 %v4853_v10  ;;  %v4859_v33 = vld [vmem:[%s5326_s15 + $0x18] ss:$12 sps:$4 sm:$0xff]   ;;  %v4860_v34 = vld [vmem:[%s5326_s15 + $0x20] ss:$12 sps:$4 sm:$0xff]   ;;  %s6216_s29 = scalar_lea.vmem %s6190_s5, %s5302_s23  ;;  %s6218_s25 = scalar_lea.vmem %s6192_s7, %s5302_s23 }
  0x21   : > { %v4857_v14 = vld [vmem:[%s5326_s15 + $0x1c] ss:$12 sps:$4 sm:$0xff]   ;;  %949 = vmatpush1.bf16.msra.mxu0 %v4855_v11  ;;  %4565 = vmatpush3.bf16.msra.mxu1 %v4856_v13  ;;  %v4861_v35 = vld [vmem:[%s5326_s15 + $0x34] ss:$12 sps:$4 sm:$0xff]   ;;  %v4864_v37 = vld [vmem:[%s5326_s15 + $0x38] ss:$12 sps:$4 sm:$0xff]  }
  0x22   : > { %950 = vmatprep.subr.bf16.mxu0 %v4857_v14  ;;  %4566 = vmatprep.subr.bf16.mxu1 %v5195_v12  ;;  %v4863_v36 = vld [vmem:[%s5326_s15 + $0x30] ss:$12 sps:$4 sm:$0xff]   ;;  %v4865_v38 = vld [vmem:[%s5326_s15 + $0x4c] ss:$12 sps:$4 sm:$0xff]   ;;  %v4867_v39 = vld [vmem:[%s5326_s15 + $0x48] ss:$12 sps:$4 sm:$0xff]  }
  0x23   : > { %v4868_v40 = vld [vmem:[%s5326_s15 + $0x50] ss:$12 sps:$4 sm:$0xff]   ;;  %v4871_v42 = vld [vmem:[%s5326_s15 + $0x60] ss:$12 sps:$4 sm:$0xff]   ;;  %v4872_v43 = vld [vmem:[%s5326_s15 + $0x68] ss:$12 sps:$4 sm:$0xff]   ;;  %980 = vmatprep.mubr.bf16.mxu0 %v5196_v53 }
  0x24   : > { %v688_v7 = vld [vmem:[#allocation2 + $0x10] sm:$0xff]  ;;  %v689_v9 = vld [vmem:[#allocation2 + $0x18] sm:$0xff]  ;;  %v4876_v46 = vld [vmem:[%s5326_s15 + $0x80] ss:$12 sps:$4 sm:$0xff]   ;;  %vm5197_vm0 = vmmov 0   ;;  %vm1097_vm1 = vcmask 261120  }
  0x25   : > { %698 = vadd.xlane.f32.xlu1 %v688_v7  ;;  %v5398_v31 = vld [vmem:[#allocation2 + $0x20] sm:$0xff]  ;;  %v5401_v32 = vld [vmem:[#allocation2 + $0x28] sm:$0xff]  ;;  %951 = vmatpush1.bf16.msra.mxu0 %v4859_v33  ;;  %v4879_v48 = vld [vmem:[%s5326_s15 + $0x90] ss:$12 sps:$4 sm:$0xff]   ;;  %s5198_s17 = smov 96   ;;  %vm1200_vm2 = vcmask 1043456  }
  0x26   : > { %v686_v6 = vld [vmem:[#allocation2] sm:$0xff]  ;;  %v687_v8 = vld [vmem:[#allocation2 + $0x8] sm:$0xff]  ;;  %4567 = vmatpush3.bf16.msra.mxu1 %v4860_v34  ;;  %952 = vmatprep.subr.bf16.mxu0 %v4861_v35  ;;  %v4884_v52 = vld [vmem:[%s5326_s15 + $0xb0] ss:$12 sps:$4 sm:$0xff]   ;;  %vm1158_vm4 = vcmask 195584   ;;  %s5200_s21 = smov 64  }
  0x27   : > { %694 = vadd.xlane.f32.xlu0 %v686_v6  ;;  %4568 = vmatprep.subr.bf16.mxu1 %v5195_v12  ;;  %v4869_v41 = vld [vmem:[%s5326_s15 + $0x64] ss:$12 sps:$4 sm:$0xff]   ;;  %v4873_v44 = vld [vmem:[%s5326_s15 + $0x7c] ss:$12 sps:$4 sm:$0xff]   ;;  %v4877_v47 = vld [vmem:[%s5326_s15 + $0x94] ss:$12 sps:$4 sm:$0xff]  }
  0x28   : > { %v4875_v45 = vld [vmem:[%s5326_s15 + $0x78] ss:$12 sps:$4 sm:$0xff]   ;;  %v4883_v51 = vld [vmem:[%s5326_s15 + $0xa8] ss:$12 sps:$4 sm:$0xff]   ;;  %4580 = vmatprep.mubr.msk.bf16.mxu1 %vm5197_vm0, %v5195_v12  ;;  %v4211_v13 = vld [vmem:[%s6214_s18] ss:$0 sm:$0xff] }
  0x29   : > { %700 = vadd.xlane.f32.xlu1 %v689_v9  ;;  %953 = vmatpush1.bf16.msra.mxu0 %v4863_v36  ;;  %v4880_v49 = vld [vmem:[%s5326_s15 + $0x98] ss:$12 sps:$4 sm:$0xff]   ;;  %s5201_s30 = smov 32   ;;  %p4361_p5 = scmp.ne.s32.totalorder %s5296_s22, 1 }
  0x2a   : > { %4569 = vmatpush3.bf16.msra.mxu1 %v4864_v37  ;;  %954 = vmatprep.subr.bf16.mxu0 %v4865_v38  ;;  %v4881_v50 = vld [vmem:[%s5326_s15 + $0xac] ss:$12 sps:$4 sm:$0xff]   ;;  %s6217_s15 = scalar_lea.vmem %s6191_s6, %s5302_s23  ;;  %vm3904_vm5 = vcmask (!%p4361_p5), 1040384   ;;  %vm3908_vm6 = vcmask (!%p4361_p5), 1041408   ;;  %vm5203_vm7 = vmmov (!%p4361_p5), 0   ;;  %s6219_s23 = sld [smem:[#allocation9_spill]] (!%p4361_p5) }
  0x2b   : > { %696 = vadd.xlane.f32.xlu0 %v687_v8  ;;  %4570 = vmatprep.subr.bf16.mxu1 %v5195_v12  ;;  %vm4048_vm8 = vcmask (!%p4361_p5), 123904  }
  0x2d   : > { %955 = vmatpush1.bf16.msra.mxu0 %v4867_v39 }
  0x2e   : > { %4571 = vmatpush3.bf16.msra.mxu1 %v4868_v40  ;;  %956 = vmatprep.subr.bf16.mxu0 %v4869_v41 }
  0x2f   : > { %4572 = vmatprep.subr.bf16.mxu1 %v5195_v12 }
  0x31   : > { %957 = vmatpush1.bf16.msra.mxu0 %v4871_v42 }
  0x32   : > { %4573 = vmatpush3.bf16.msra.mxu1 %v4872_v43  ;;  %958 = vmatprep.subr.bf16.mxu0 %v4873_v44 }
  0x33   : > { %4574 = vmatprep.subr.bf16.mxu1 %v5195_v12 }
  0x35   : > { %959 = vmatpush1.bf16.msra.mxu0 %v4875_v45 }
  0x36   : > { %4575 = vmatpush3.bf16.msra.mxu1 %v4876_v46  ;;  %960 = vmatprep.subr.bf16.mxu0 %v4877_v47 }
  0x37   : > { %4576 = vmatprep.subr.bf16.mxu1 %v5195_v12 }
  0x39   : > { %961 = vmatpush1.bf16.msra.mxu0 %v4879_v48 }
  0x3a   : > { %4577 = vmatpush3.bf16.msra.mxu1 %v4880_v49  ;;  %962 = vmatprep.subr.bf16.mxu0 %v4881_v50 }
  0x3b   : > { %4578 = vmatprep.subr.bf16.mxu1 %v5195_v12 }
  0x3d   : > { %963 = vmatpush1.bf16.msra.mxu0 %v4883_v51 }
  0x3e   : > { %4579 = vmatpush3.bf16.msra.mxu1 %v4884_v52 }
  0xb2   : > { %v699_v16 = vpop.xlane.xlu1 %698 }
  0xb3   : > { %v709_v18 = vmul.f32 0.0078125, %v699_v16 }
  0xb4   : > { %v695_v15 = vpop.xlane.xlu0 %694 }
  0xb5   : > { %v707_v17 = vmul.f32 0.0078125, %v695_v15  ;;  %v5384_v20 = vsub.f32 %v688_v7, %v709_v18  ;;  %v4212_v18 = vld [vmem:[%s6215_s24] ss:$0 sm:$0xff]  ;;  %s6220_s24 = sld [smem:[#allocation10_spill]] (!%p4361_p5) }
  0xb6   : > { %v701_v22 = vpop.xlane.xlu1 %700 }
  0xb7   : > { %v5382_v19 = vsub.f32 %v686_v6, %v707_v17  ;;  %v710_v25 = vmul.f32 0.0078125, %v701_v22  ;;  %v721_v26 = vmul.f32 %v5384_v20, %v5384_v20 }
  0xb8   : > { %v697_v21 = vpop.xlane.xlu0 %696 }
  0xb9   : > { %v708_v23 = vmul.f32 0.0078125, %v697_v21  ;;  %v719_v24 = vmul.f32 %v5382_v19, %v5382_v19  ;;  %v5392_v28 = vsub.f32 %v689_v9, %v710_v25 }
  0xbb   : > { %725 = vadd.xlane.f32.xlu0 %v719_v24  ;;  %v5390_v27 = vsub.f32 %v687_v8, %v708_v23  ;;  %v722_v30 = vmul.f32 %v5392_v28, %v5392_v28 }
  0xbd   : > { %v720_v29 = vmul.f32 %v5390_v27, %v5390_v27 }
  0xbf   : > { %729 = vadd.xlane.f32.xlu0 %v721_v26  ;;  %727 = vadd.xlane.f32.xlu1 %v720_v29 }
  0xc3   : > { %731 = vadd.xlane.f32.xlu1 %v722_v30  ;;  %702 = vadd.xlane.f32.xlu0 %v5398_v31 }
  0xc7   : > { %704 = vadd.xlane.f32.xlu1 %v5401_v32 }
 0x148   : > { %v726_v54 = vpop.xlane.xlu0 %725 }
 0x149   : > { %v737_v55 = vmul.f32 0.0078125, %v726_v54 }
 0x14b   : > { %v743_v56 = vadd.f32 1e-05, %v737_v55 }
 0x14c   : > { %v728_v57 = vpop.xlane.xlu1 %727  ;;  %v730_v58 = vpop.xlane.xlu0 %729 }
 0x14d   : > { %4973 = vrsqrt.f32 %v743_v56  ;;  %v738_v59 = vmul.f32 0.0078125, %v728_v57  ;;  %v739_v60 = vmul.f32 0.0078125, %v730_v58 }
 0x14f   : > { %v744_v61 = vadd.f32 1e-05, %v738_v59  ;;  %v745_v62 = vadd.f32 1e-05, %v739_v60 }
 0x150   : > { %v732_v63 = vpop.xlane.xlu1 %731  ;;  %v703_v0 = vpop.xlane.xlu0 %702 }
 0x151   : > { %4975 = vrsqrt.f32 %v744_v61  ;;  %v740_v1 = vmul.f32 0.0078125, %v732_v63  ;;  %v711_v2 = vmul.f32 0.0078125, %v703_v0 }
 0x152   : > { %4977 = vrsqrt.f32 %v745_v62 }
 0x153   : > { %v746_v3 = vadd.f32 1e-05, %v740_v1  ;;  %v717_v4 = vsub.f32 %v5398_v31, %v711_v2 }
 0x154   : > { %v705_v5 = vpop.xlane.xlu1 %704 }
 0x155   : > { %4979 = vrsqrt.f32 %v746_v3  ;;  %v712_v6 = vmul.f32 0.0078125, %v705_v5  ;;  %v723_v7 = vmul.f32 %v717_v4, %v717_v4 }
 0x157   : > { %v4974_v8 = vpop.eup %4973  ;;  %v718_v9 = vsub.f32 %v5401_v32, %v712_v6  ;;  %733 = vadd.xlane.f32.xlu0 %v723_v7 }
 0x158   : > { %v755_v10 = vmul.f32 %v4974_v8, %v5382_v19 }
 0x159   : > { %v724_v11 = vmul.f32 %v718_v9, %v718_v9 }
 0x15a   : > { %v767_v16 = vmul.f32 %v4211_v13, %v755_v10 }
 0x15b   : > { %v4976_v14 = vpop.eup %4975  ;;  %735 = vadd.xlane.f32.xlu1 %v724_v11 }
 0x15c   : > { %v756_v15 = vmul.f32 %v4976_v14, %v5390_v27  ;;  %v4978_v17 = vpop.eup %4977  ;;  %v779_v19 = vadd.f32 %v4212_v18, %v767_v16 }
 0x15d   : > { %v757_v24 = vmul.f32 %v4978_v17, %v5384_v20 }
 0x15e   : > { %v768_v21 = vmul.f32 %v4211_v13, %v756_v15 }
 0x15f   : > { %v4980_v22 = vpop.eup %4979  ;;  %v769_v27 = vmul.f32 %v4211_v13, %v757_v24 }
 0x160   : > { %v780_v23 = vadd.f32 %v4212_v18, %v768_v21  ;;  %v758_v25 = vmul.f32 %v4980_v22, %v5392_v28 }
 0x161   : > { %v781_v31 = vadd.f32 %v4212_v18, %v769_v27  ;;  %v5199_v27 = vmov -1e+30  }
 0x162   : > { %v785_v26 = vpack.c.bf16 %v780_v23, %v779_v19  ;;  %v770_v29 = vmul.f32 %v4211_v13, %v758_v25 }
 0x164   : > { %981 = vmatmul.mubr.bf16.vlgmr.msra.gmra.mrb[0].mxu0 %v785_v26  ;;  %4581 = vmatmul.mubr.bf16.vlgmr.msra.gmra.mrb[0].mxu1 %v785_v26  ;;  %v782_v30 = vadd.f32 %v4212_v18, %v770_v29  ;;  %v1077_v26 = vlaneseq }
 0x165   : > { %990 = vmatprep.mubr.bf16.mxu0 %v5196_v53  ;;  %4584 = vmatprep.mubr.msk.bf16.mxu1 %vm5197_vm0, %v5195_v12 }
 0x166   : > { %v786_v32 = vpack.c.bf16 %v782_v30, %v781_v31  ;;  %v1078_v29 = vand.u32 127, %v1077_v26 }
 0x168   : > { %vm1079_vm3 = vcmp.lt.s32.totalorder %v1078_v29, 17 }
 0x169   : > { %v5518_v30 = vsel %vm1079_vm3, 0.0, %v5199_v27 }
 0x16c   : > { %991 = vmatmul.mubr.bf16.gmra.mrb[4].mxu0 %v786_v32  ;;  %4585 = vmatmul.mubr.bf16.gmra.mrb[4].mxu1 %v786_v32 }
 0x16d   : > { %1000 = vmatprep.mubr.bf16.mxu0 %v5196_v53  ;;  %4588 = vmatprep.mubr.msk.bf16.mxu1 %vm5197_vm0, %v5195_v12 }
 0x1e4   : > { %v734_v20 = vpop.xlane.xlu0 %733 }
 0x1e5   : > { %v741_v28 = vmul.f32 0.0078125, %v734_v20 }
 0x1e7   : > { %v747_v33 = vadd.f32 1e-05, %v741_v28 }
 0x1e8   : > { %v736_v34 = vpop.xlane.xlu1 %735 }
 0x1e9   : > { %v742_v35 = vmul.f32 0.0078125, %v736_v34  ;;  %4981 = vrsqrt.f32 %v747_v33 }
 0x1eb   : > { %v748_v36 = vadd.f32 1e-05, %v742_v35 }
 0x1ed   : > { %4983 = vrsqrt.f32 %v748_v36 }
 0x1f3   : > { %v4982_v37 = vpop.eup %4981 }
 0x1f4   : > { %v759_v38 = vmul.f32 %v4982_v37, %v717_v4 }
 0x1f6   : > { %v771_v39 = vmul.f32 %v4211_v13, %v759_v38 }
 0x1f7   : > { %v4984_v40 = vpop.eup %4983 }
 0x1f8   : > { %v760_v41 = vmul.f32 %v4984_v40, %v718_v9  ;;  %v783_v43 = vadd.f32 %v4212_v18, %v771_v39 }
 0x1fa   : > { %v772_v42 = vmul.f32 %v4211_v13, %v760_v41 }
 0x1fc   : > { %v784_v44 = vadd.f32 %v4212_v18, %v772_v42 }
 0x1fe   : > { %v787_v45 = vpack.c.bf16 %v784_v44, %v783_v43 }
 0x200   : > { %1001 = vmatmul.mubr.bf16.gmra.mrb[8].mxu0 %v787_v45  ;;  %4589 = vmatmul.mubr.bf16.gmra.mrb[8].mxu1 %v787_v45 }
 0x237   : > { %v982_v12 = vpop.f32.mrb[0].mxu0  ;;  %v1045_v46 = vpop.f32.mrb[0].mxu1 }
 0x238   : > { %v984_v47 = vpop.f32.mrb[1].mxu0  ;;  %v4582_v48 = vpop.f32.mrb[1].mxu1 }
 0x239   : > { %v986_v49 = vpop.f32.mrb[2].mxu0  ;;  %v1048_v50 = vpop.f32.mrb[2].mxu1 }
 0x23a   : > { %v5455_v51 = vpack.c.bf16 %v986_v49, %v982_v12  ;;  %v5457_v52 = vpack.c.bf16 %v1048_v50, %v1045_v46  ;;  %v988_v54 = vpop.f32.mrb[3].mxu0  ;;  %v4583_v55 = vpop.f32.mrb[3].mxu1 }
 0x23b   : > { %v5459_v56 = vpack.c.bf16 %v988_v54, %v984_v47 }
 0x23c   : > { %4596 = vmatprep.mubr.msk.bf16.mxu0 %vm1097_vm1, %v5455_v51  ;;  %4600 = vmatprep.subr.bf16.mxu1 %v5457_v52 }
 0x23d   : > { %4804 = vmatprep.subr.msk.bf16.mxu0 %vm1097_vm1, %v5459_v56  ;;  %4601 = vmatpush3.bf16.msra.mxu1 %v5457_v52  ;;  %v1105_v57 = vsel %vm1097_vm1, %v5459_v56, 0 }
 0x23e   : > { %1262 = vrot.lane.b32.xlu0 %v5459_v56, %s5198_s17  ;;  %4593 = vmatpush3.bf16.xpose.msra.mxu0 %v1105_v57 }
 0x23f   : > { %v992_v58 = vpop.f32.mrb[4].mxu0  ;;  %v1053_v59 = vpop.f32.mrb[4].mxu1 }
 0x240   : > { %v994_v60 = vpop.f32.mrb[5].mxu0  ;;  %v4586_v61 = vpop.f32.mrb[5].mxu1 }
 0x241   : > { %v996_v62 = vpop.f32.mrb[6].mxu0  ;;  %v1056_v63 = vpop.f32.mrb[6].mxu1 }
 0x242   : > { %v5471_v0 = vpack.c.bf16 %v996_v62, %v992_v58  ;;  %v5473_v1 = vpack.c.bf16 %v1056_v63, %v1053_v59  ;;  %v998_v2 = vpop.f32.mrb[7].mxu0  ;;  %v4587_v3 = vpop.f32.mrb[7].mxu1 }
 0x243   : > { %v5475_v4 = vpack.c.bf16 %v998_v2, %v994_v60 }
 0x244   : > { %4806 = vmatprep.subr.msk.bf16.mxu1 %vm1200_vm2, %v5473_v1  ;;  %v1202_v5 = vsel %vm1200_vm2, %v5473_v1, 0 }
 0x245   : > { %4603 = vmatpush3.bf16.msra.mxu1 %v1202_v5  ;;  %1264 = vrot.lane.b32.xlu1 %v5475_v4, %s5198_s17  ;;  %v1108_v6 = vsel %vm1097_vm1, %v5475_v4, 0 }
 0x246   : > { %4805 = vmatprep.subr.msk.bf16.mxu0 %vm1097_vm1, %v5475_v4 }
 0x247   : > { %4595 = vmatpush3.bf16.xpose.msra.mxu0 %v1108_v6 }
 0x249   : > { %1256 = vrot.lane.b32.xlu1 %v5455_v51, %s5198_s17 }
 0x24d   : > { %1258 = vrot.lane.b32.xlu1 %v5471_v0, %s5198_s17 }
 0x24e   : > { %4597 = vmatmul.mubr.msk.bf16.vlgmr.msra.gmra.mrb[12].mxu0 %vm1097_vm1, %v5471_v0 }
 0x2b0   : > { %v1263_v7 = vpop.permute.xlu0 %1262 }
 0x2b1   : > { %v1273_v8 = vsel %vm1097_vm1, %v1263_v7, 0  ;;  %4807 = vmatprep.subr.msk.bf16.mxu0 %vm1097_vm1, %v1263_v7 }
 0x2b2   : > { %4609 = vmatpush3.bf16.xpose.msra.mxu0 %v1273_v8 }
 0x2b7   : > { %v1265_v9 = vpop.permute.xlu1 %1264 }
 0x2b8   : > { %v1276_v10 = vsel %vm1097_vm1, %v1265_v9, 0  ;;  %4808 = vmatprep.subr.msk.bf16.mxu0 %vm1097_vm1, %v1265_v9 }
 0x2ba   : > { %4611 = vmatpush3.bf16.xpose.msra.mxu0 %v1276_v10 }
 0x2bb   : > { %v1257_v11 = vpop.permute.xlu1 %1256 }
 0x2bc   : > { %4612 = vmatprep.mubr.msk.bf16.mxu0 %vm1097_vm1, %v1257_v11 }
 0x2bf   : > { %v1259_v13 = vpop.permute.xlu1 %1258 }
 0x2c1   : > { %4613 = vmatmul.mubr.msk.bf16.vlgmr.msra.gmra.mrb[16].mxu0 %vm1097_vm1, %v1259_v13 }
 0x2d3   : > { %v5499_v14 = vpop.f32.mrb[8].mxu0  ;;  %v5501_v15 = vpop.f32.mrb[8].mxu1 }
 0x2d4   : > { %v5503_v16 = vpop.f32.mrb[9].mxu0  ;;  %v4590_v17 = vpop.f32.mrb[9].mxu1 }
 0x2d5   : > { %v5505_v18 = vpop.f32.mrb[10].mxu0  ;;  %v5507_v21 = vpop.f32.mrb[10].mxu1 }
 0x2d6   : > { %v1074_v22 = vpack.c.bf16 %v5505_v18, %v5499_v14  ;;  %v1076_v19 = vpack.c.bf16 %v5507_v21, %v5501_v15  ;;  %v5513_v23 = vpop.f32.mrb[11].mxu0  ;;  %v4591_v24 = vpop.f32.mrb[11].mxu1 }
 0x2d7   : > { %v1075_v25 = vpack.c.bf16 %v5513_v23, %v5503_v16  ;;  %v2033_v16 = vrot.slane %v5471_v0, 4 }
 0x321   : > { %v4598_v31 = vpop.f32.mrb[12].mxu0 }
 0x322   : > { %v1144_v32 = vpop.f32.mrb[13].mxu0  ;;  %v1153_v34 = vadd.f32 %v4598_v31, %v5518_v30 }
 0x323   : > { %v1145_v20 = vadd.f32 %v1144_v32, %v5518_v30  ;;  %v4599_v28 = vpop.f32.mrb[14].mxu0 }
 0x324   : > { %v1147_v33 = vpop.f32.mrb[15].mxu0  ;;  %v1165_v38 = vsel %vm1158_vm4, %v1153_v34, -inf }
 0x325   : > { %v1148_v35 = vadd.f32 %v1147_v33, %v5518_v30  ;;  %v1159_v36 = vsel %vm1158_vm4, %v1145_v20, -inf }
 0x326   : > { %1160 = vmax.xlane.f32.xlu0 %v1159_v36  ;;  %v5559_v36 = vld [vmem:[%s5317_s19] sm:$0xff]  }
 0x327   : > { %v1162_v37 = vsel %vm1158_vm4, %v1148_v35, -inf  ;;  %4632 = vmatprep.subr.bf16.mxu0 %v5559_v36 }
 0x328   : > { %1163 = vmax.xlane.f32.xlu1 %v1162_v37  ;;  %4633 = vmatpush3.bf16.msra.mxu0 %v5559_v36 }
 0x32a   : > { %1166 = vmax.xlane.f32.xlu0 %v1165_v38 }
 0x394   : > { %v4614_v39 = vpop.f32.mrb[16].mxu0 }
 0x395   : > { %v1321_v40 = vadd.f32 %v4614_v39, %v5518_v30  ;;  %v1312_v41 = vpop.f32.mrb[17].mxu0 }
 0x396   : > { %v1313_v42 = vadd.f32 %v1312_v41, %v5518_v30  ;;  %v4615_v43 = vpop.f32.mrb[18].mxu0 }
 0x397   : > { %v1315_v44 = vpop.f32.mrb[19].mxu0  ;;  %v1332_v45 = vsel %vm1158_vm4, %v1321_v40, -inf }
 0x398   : > { %v1316_v12 = vadd.f32 %v1315_v44, %v5518_v30  ;;  %1333 = vmax.xlane.f32.xlu1 %v1332_v45  ;;  %v1326_v46 = vsel %vm1158_vm4, %v1313_v42, -inf }
 0x399   : > { %1327 = vmax.xlane.f32.xlu0 %v1326_v46 }
 0x39a   : > { %v1329_v47 = vsel %vm1158_vm4, %v1316_v12, -inf }
 0x39d   : > { %1330 = vmax.xlane.f32.xlu0 %v1329_v47 }
 0x3b3   : > { %v1161_v48 = vpop.xlane.xlu0 %1160 }
 0x3b4   : > { %v1168_v50 = vsub.f32 %v1145_v20, %v1161_v48  ;;  %v5572_v48 = vld [vmem:[%s5317_s19 + $0x10] sm:$0xff]  }
 0x3b5   : > { %v1164_v49 = vpop.xlane.xlu1 %1163 }
 0x3b6   : > { %v1169_v54 = vsub.f32 %v1148_v35, %v1164_v49  ;;  %v1171_v59 = vmul.f32 1.442695, %v1168_v50 }
 0x3b7   : > { %v1167_v55 = vpop.xlane.xlu0 %1166 }
 0x3b8   : > { %v1173_v57 = vmul.f32 1.442695, %v1169_v54  ;;  %v1170_v58 = vsub.f32 %v1153_v34, %v1167_v55 }
 0x3ba   : > { %4985 = vpow2.f32 %v1173_v57  ;;  %v1175_v60 = vmul.f32 1.442695, %v1170_v58 }
 0x3bc   : > { %4987 = vpow2.f32 %v1175_v60 }
 0x3bd   : > { %4989 = vpow2.f32 %v1171_v59 }
 0x3c4   : > { %v4986_v61 = vpop.eup %4985 }
 0x3c5   : > { %v1180_v62 = vsel %vm1158_vm4, %v4986_v61, 0.0 }
 0x3c6   : > { %v4988_v63 = vpop.eup %4987  ;;  %1181 = vadd.xlane.f32.xlu1 %v1180_v62  ;;  %v5577_v62 = vld [vmem:[%s5317_s19 + $0x18] sm:$0xff]  }
 0x3c7   : > { %v1183_v2 = vsel %vm1158_vm4, %v4988_v63, 0.0  ;;  %v4990_v3 = vpop.eup %4989 }
 0x3c8   : > { %1184 = vadd.xlane.f32.xlu0 %v1183_v2  ;;  %v1177_v5 = vsel %vm1158_vm4, %v4990_v3, 0.0 }
 0x3cc   : > { %1178 = vadd.xlane.f32.xlu0 %v1177_v5 }
 0x425   : > { %v1334_v6 = vpop.xlane.xlu1 %1333 }
 0x426   : > { %v1337_v7 = vsub.f32 %v1321_v40, %v1334_v6  ;;  %v1328_v8 = vpop.xlane.xlu0 %1327 }
 0x427   : > { %v1335_v9 = vsub.f32 %v1313_v42, %v1328_v8 }
 0x428   : > { %v1342_v10 = vmul.f32 1.442695, %v1337_v7 }
 0x429   : > { %v1338_v11 = vmul.f32 1.442695, %v1335_v9 }
 0x42a   : > { %4991 = vpow2.f32 %v1342_v10  ;;  %v1331_v13 = vpop.xlane.xlu0 %1330 }
 0x42b   : > { %v1336_v17 = vsub.f32 %v1316_v12, %v1331_v13  ;;  %4993 = vpow2.f32 %v1338_v11 }
 0x42d   : > { %v1340_v24 = vmul.f32 1.442695, %v1336_v17 }
 0x42f   : > { %4995 = vpow2.f32 %v1340_v24 }
 0x434   : > { %v4992_v29 = vpop.eup %4991 }
 0x435   : > { %v1350_v27 = vsel %vm1158_vm4, %v4992_v29, 0.0  ;;  %v4994_v31 = vpop.eup %4993 }
 0x436   : > { %1351 = vadd.xlane.f32.xlu1 %v1350_v27  ;;  %v1344_v20 = vsel %vm1158_vm4, %v4994_v31, 0.0 }
 0x439   : > { %v4996_v32 = vpop.eup %4995 }
 0x43a   : > { %1345 = vadd.xlane.f32.xlu1 %v1344_v20  ;;  %v1347_v28 = vsel %vm1158_vm4, %v4996_v32, 0.0 }
 0x43b   : > { %1348 = vadd.xlane.f32.xlu0 %v1347_v28 }
 0x44b   : > { %1365 = vrot.lane.b32.xlu1 %v5473_v1, %s5198_s17 }
 0x44f   : > { %1563 = vrot.lane.b32.xlu1 %v5459_v56, %s5200_s21 }
 0x451   : > { %1363 = vrot.lane.b32.xlu0 %v5457_v52, %s5198_s17 }
 0x453   : > { %1565 = vrot.lane.b32.xlu1 %v5475_v4, %s5200_s21  ;;  %v1182_v33 = vpop.xlane.xlu1 %1181 }
 0x455   : > { %1559 = vrot.lane.b32.xlu0 %v5455_v51, %s5200_s21  ;;  %v1185_v34 = vpop.xlane.xlu0 %1184 }
 0x456   : > { %4997 = vrcp.f32 %v1185_v34 }
 0x457   : > { %1561 = vrot.lane.b32.xlu1 %v5471_v0, %s5200_s21  ;;  %4999 = vrcp.f32 %v1182_v33 }
 0x459   : > { %1799 = vrot.lane.b32.xlu0 %v5459_v56, %s5201_s30  ;;  %v1179_v35 = vpop.xlane.xlu0 %1178 }
 0x45a   : > { %5001 = vrcp.f32 %v1179_v35 }
 0x45b   : > { %1801 = vrot.lane.b32.xlu1 %v5475_v4, %s5201_s30 }
 0x45d   : > { %1795 = vrot.lane.b32.xlu0 %v5455_v51, %s5201_s30  ;;  %v5566_v51 = vld [vmem:[%s5317_s19 + $0x8] sm:$0xff]  }
 0x45e   : > { %4634 = vmatprep.subr.bf16.mxu0 %v5566_v51 }
 0x45f   : > { %1797 = vrot.lane.b32.xlu1 %v5471_v0, %s5201_s30  ;;  %4635 = vmatpush3.bf16.msra.mxu0 %v5566_v51 }
 0x460   : > { %v4998_v37 = vpop.eup %4997 }
 0x461   : > { %v5000_v38 = vpop.eup %4999  ;;  %v1191_v39 = vmul.f32 %v4998_v37, %v4988_v63  ;;  %v5601_v37 = vrot.slane %v1075_v25, 4 }
 0x462   : > { %v1190_v41 = vmul.f32 %v5000_v38, %v4986_v61  ;;  %v2037_v38 = vrot.slane %v5475_v4, 4 }
 0x463   : > { %v1193_v43 = vpack.c.bf16 %v1191_v39, %v1191_v39  ;;  %v2050_v0 = vsel %vm1097_vm1, %v5601_v37, 0 }
 0x464   : > { %v5002_v56 = vpop.eup %5001  ;;  %v5607_v39 = vsel %vm1200_vm2, %v2037_v38, %v5601_v37 }
 0x465   : > { %v1189_v40 = vmul.f32 %v5002_v56, %v4990_v3  ;;  %v2047_v4 = vsel %vm1097_vm1, %v5607_v39, 0 }
 0x467   : > { %v1192_v42 = vpack.c.bf16 %v1190_v41, %v1189_v40  ;;  %v5614_v40 = vrot.slane %v1074_v22, 4 }
 0x469   : > { %4604 = vmatprep.mubr.msk.bf16.mxu1 %vm1158_vm4, %v1192_v42  ;;  %v5622_v25 = vsel %vm1200_vm2, %v2033_v16, %v5614_v40 }
 0x46a   : > { %4605 = vmatmul.mubr.msk.bf16.vlgmr.msra.gmra.mrb[12].mxu1 %vm1158_vm4, %v1193_v43 }
 0x4c3   : > { %v1352_v44 = vpop.xlane.xlu1 %1351 }
 0x4c4   : > { %5003 = vrcp.f32 %v1352_v44 }
 0x4c7   : > { %v1346_v45 = vpop.xlane.xlu1 %1345 }
 0x4c8   : > { %5005 = vrcp.f32 %v1346_v45  ;;  %v1349_v12 = vpop.xlane.xlu0 %1348 }
 0x4c9   : > { %5007 = vrcp.f32 %v1349_v12 }
 0x4cb   : > { %v1366_v47 = vpop.permute.xlu1 %1365 }
 0x4cc   : > { %v1364_v46 = vpop.permute.xlu0 %1363  ;;  %v1375_v50 = vsel %vm1200_vm2, %v1366_v47, 0 }
 0x4cd   : > { %4616 = vmatprep.subr.bf16.mxu1 %v1364_v46 }
 0x4ce   : > { %4617 = vmatpush3.bf16.msra.mxu1 %v1364_v46  ;;  %v5004_v49 = vpop.eup %5003 }
 0x4cf   : > { %4809 = vmatprep.subr.msk.bf16.mxu1 %vm1200_vm2, %v1366_v47  ;;  %v1358_v57 = vmul.f32 %v5004_v49, %v4992_v29  ;;  %v1564_v63 = vpop.permute.xlu1 %1563 }
 0x4d0   : > { %v1574_v29 = vsel %vm1097_vm1, %v1564_v63, 0  ;;  %v1560_v27 = vpop.permute.xlu0 %1559 }
 0x4d1   : > { %v1360_v61 = vpack.c.bf16 %v1358_v57, %v1358_v57 }
 0x4d2   : > { %v5006_v54 = vpop.eup %5005  ;;  %4619 = vmatpush3.bf16.msra.mxu1 %v1375_v50 }
 0x4d3   : > { %v5008_v55 = vpop.eup %5007  ;;  %v1356_v58 = vmul.f32 %v5006_v54, %v4994_v31  ;;  %4624 = vmatprep.subr.bf16.mxu1 %v5572_v48  ;;  %v1566_v31 = vpop.permute.xlu1 %1565 }
 0x4d4   : > { %v1357_v59 = vmul.f32 %v5008_v55, %v4996_v32  ;;  %v1577_v32 = vsel %vm1097_vm1, %v1566_v31, 0  ;;  %v1800_v20 = vpop.permute.xlu0 %1799 }
 0x4d5   : > { %v1810_v33 = vsel %vm1097_vm1, %v1800_v20, 0 }
 0x4d6   : > { %v1359_v60 = vpack.c.bf16 %v1357_v59, %v1356_v58 }
 0x4d7   : > { %v1562_v28 = vpop.permute.xlu1 %1561 }
 0x4d8   : > { %4620 = vmatprep.mubr.msk.bf16.mxu1 %vm1158_vm4, %v1359_v60  ;;  %v1796_v34 = vpop.permute.xlu0 %1795 }
 0x4d9   : > { %4621 = vmatmul.mubr.msk.bf16.vlgmr.msra.gmra.mrb[16].mxu1 %vm1158_vm4, %v1360_v61 }
 0x4da   : > { %4625 = vmatpush3.bf16.msra.mxu1 %v5572_v48 }
 0x4db   : > { %4626 = vmatprep.subr.bf16.mxu1 %v5577_v62  ;;  %v1802_v35 = vpop.permute.xlu1 %1801 }
 0x4dc   : > { %v1813_v56 = vsel %vm1097_vm1, %v1802_v35, 0 }
 0x4de   : > { %4627 = vmatpush3.bf16.msra.mxu1 %v5577_v62 }
 0x4df   : > { %4810 = vmatprep.subr.msk.bf16.mxu1 %vm1097_vm1, %v1564_v63  ;;  %v1798_v23 = vpop.permute.xlu1 %1797 }
 0x53d   : > { %v4606_v2 = vpop.f32.mrb[12].mxu1 }
 0x53e   : > { %v1238_v3 = vpop.f32.mrb[13].mxu1  ;;  %v1253_v8 = vpack.c.bf16 %v4606_v2, %v4606_v2 }
 0x53f   : > { %v4607_v5 = vpop.f32.mrb[14].mxu1 }
 0x540   : > { %v1241_v6 = vpop.f32.mrb[15].mxu1 }
 0x541   : > { %v1252_v7 = vpack.c.bf16 %v1241_v6, %v1238_v3 }
 0x543   : > { %4636 = vmatprep.mubr.msk.bf16.mxu0 %vm1097_vm1, %v1252_v7 }
 0x544   : > { %4637 = vmatmul.mubr.msk.bf16.vlgmr.msra.gmra.mrb[20].mxu0 %vm1097_vm1, %v1253_v8 }
 0x5ac   : > { %v4622_v9 = vpop.f32.mrb[16].mxu1 }
 0x5ad   : > { %v1411_v10 = vpop.f32.mrb[17].mxu1  ;;  %v1426_v24 = vpack.c.bf16 %v4622_v9, %v4622_v9 }
 0x5ae   : > { %v4623_v11 = vpop.f32.mrb[18].mxu1 }
 0x5af   : > { %v1414_v13 = vpop.f32.mrb[19].mxu1 }
 0x5b0   : > { %v1425_v17 = vpack.c.bf16 %v1414_v13, %v1411_v10 }
 0x5b2   : > { %4628 = vmatprep.mubr.msk.bf16.mxu1 %vm1097_vm1, %v1425_v17 }
 0x5b3   : > { %4629 = vmatmul.mubr.msk.bf16.vlgmr.msra.gmra.mrb[20].mxu1 %vm1097_vm1, %v1426_v24 }
 0x5b4   : > { %4641 = vmatpush3.bf16.xpose.msra.mxu1 %v1574_v29  ;;  %4644 = vmatprep.mubr.msk.bf16.mxu1 %vm1097_vm1, %v1560_v27 }
 0x5b5   : > { %4811 = vmatprep.subr.msk.bf16.mxu1 %vm1097_vm1, %v1566_v31 }
 0x5bc   : > { %4643 = vmatpush3.bf16.xpose.msra.mxu1 %v1577_v32 }
 0x5bd   : > { %4813 = vmatprep.subr.msk.bf16.mxu1 %vm1097_vm1, %v1800_v20 }
 0x5c3   : > { %4645 = vmatmul.mubr.msk.bf16.vlgmr.msra.gmra.mrb[24].mxu1 %vm1097_vm1, %v1562_v28 }
 0x5c4   : > { %4665 = vmatpush3.bf16.xpose.msra.mxu1 %v1810_v33  ;;  %4668 = vmatprep.mubr.msk.bf16.mxu1 %vm1097_vm1, %v1796_v34 }
 0x5c5   : > { %4814 = vmatprep.subr.msk.bf16.mxu1 %vm1097_vm1, %v1802_v35 }
 0x5cc   : > { %4667 = vmatpush3.bf16.xpose.msra.mxu1 %v1813_v56 }
 0x5cd   : > { %4816 = vmatprep.subr.msk.bf16.mxu1 %vm1097_vm1, %v5607_v39 }
 0x5d3   : > { %4669 = vmatmul.mubr.msk.bf16.vlgmr.msra.gmra.mrb[28].mxu1 %vm1097_vm1, %v1798_v23 }
 0x5d4   : > { %4689 = vmatpush3.bf16.xpose.msra.mxu1 %v2047_v4  ;;  %4692 = vmatprep.mubr.msk.bf16.mxu1 %vm1097_vm1, %v5622_v25 }
 0x5d5   : > { %4817 = vmatprep.subr.msk.bf16.mxu1 %vm1097_vm1, %v5601_v37 }
 0x5dc   : > { %4691 = vmatpush3.bf16.xpose.msra.mxu1 %v2050_v0 }
 0x5e3   : > { %4693 = vmatmul.mubr.msk.bf16.vlgmr.msra.gmra.mrb[32].mxu1 %vm1097_vm1, %v5614_v40 }
 0x617   : > { %v4638_v14 = vpop.f32.mrb[20].mxu0 }
 0x618   : > { %v1545_v18 = vpop.f32.mrb[21].mxu0 }
 0x619   : > { %v4639_v22 = vpop.f32.mrb[22].mxu0 }
 0x61a   : > { %v1548_v41 = vpop.f32.mrb[23].mxu0 }
 0x686   : > { %v4630_v42 = vpop.f32.mrb[20].mxu1 }
 0x687   : > { %v5632_v43 = vadd.f32 %v4638_v14, %v4630_v42  ;;  %v1479_v44 = vpop.f32.mrb[21].mxu1 }
 0x688   : > { %v5634_v45 = vadd.f32 %v1545_v18, %v1479_v44  ;;  %v4631_v12 = vpop.f32.mrb[22].mxu1 }
 0x689   : > { %v1482_v46 = vpop.f32.mrb[23].mxu1 }
 0x68a   : > { %v5636_v47 = vadd.f32 %v1548_v41, %v1482_v46  ;;  %v5665_v46 = vld [vmem:[%s5317_s19 + $0x20] sm:$0xff]  }
 0x696   : > { %v4646_v49 = vpop.f32.mrb[24].mxu1 }
 0x697   : > { %v1613_v50 = vpop.f32.mrb[25].mxu1  ;;  %v1622_v58 = vadd.f32 %v4646_v49, %v5518_v30 }
 0x698   : > { %v1614_v54 = vadd.f32 %v1613_v50, %v5518_v30  ;;  %v4647_v55 = vpop.f32.mrb[26].mxu1 }
 0x699   : > { %v1616_v57 = vpop.f32.mrb[27].mxu1  ;;  %v1633_v63 = vsel %vm1158_vm4, %v1622_v58, -inf }
 0x69a   : > { %v1617_v59 = vadd.f32 %v1616_v57, %v5518_v30  ;;  %v1627_v60 = vsel %vm1158_vm4, %v1614_v54, -inf }
 0x69b   : > { %1628 = vmax.xlane.f32.xlu0 %v1627_v60 }
 0x69c   : > { %v1630_v61 = vsel %vm1158_vm4, %v1617_v59, -inf }
 0x69d   : > { %1631 = vmax.xlane.f32.xlu1 %v1630_v61 }
 0x69f   : > { %1634 = vmax.xlane.f32.xlu0 %v1633_v63 }
 0x6a6   : > { %v4670_v2 = vpop.f32.mrb[28].mxu1 }
 0x6a7   : > { %v1849_v3 = vpop.f32.mrb[29].mxu1  ;;  %v1858_v4 = vadd.f32 %v4670_v2, %v5518_v30 }
 0x6a8   : > { %v4671_v5 = vpop.f32.mrb[30].mxu1  ;;  %v1850_v16 = vadd.f32 %v1849_v3, %v5518_v30 }
 0x6a9   : > { %v1852_v6 = vpop.f32.mrb[31].mxu1  ;;  %v1869_v18 = vsel %vm1158_vm4, %v1858_v4, -inf }
 0x6aa   : > { %v1853_v23 = vadd.f32 %v1852_v6, %v5518_v30  ;;  %v1863_v14 = vsel %vm1158_vm4, %v1850_v16, -inf }
 0x6ac   : > { %v1866_v0 = vsel %vm1158_vm4, %v1853_v23, -inf }
 0x6b6   : > { %v5644_v7 = vpop.f32.mrb[32].mxu1 }
 0x6b7   : > { %v5646_v8 = vpop.f32.mrb[33].mxu1 }
 0x6b8   : > { %v4695_v9 = vpop.f32.mrb[34].mxu1 }
 0x6b9   : > { %v5648_v10 = vpop.f32.mrb[35].mxu1 }
 0x728   : > { %v1629_v11 = vpop.xlane.xlu0 %1628 }
 0x729   : > { %v1636_v13 = vsub.f32 %v1614_v54, %v1629_v11 }
 0x72a   : > { %v1632_v17 = vpop.xlane.xlu1 %1631 }
 0x72b   : > { %v1639_v24 = vmul.f32 1.442695, %v1636_v13  ;;  %v1637_v29 = vsub.f32 %v1617_v59, %v1632_v17 }
 0x72c   : > { %v1635_v27 = vpop.xlane.xlu0 %1634 }
 0x72d   : > { %5009 = vpow2.f32 %v1639_v24  ;;  %v1641_v31 = vmul.f32 1.442695, %v1637_v29  ;;  %v1638_v32 = vsub.f32 %v1622_v58, %v1635_v27 }
 0x72f   : > { %5011 = vpow2.f32 %v1641_v31  ;;  %v1643_v20 = vmul.f32 1.442695, %v1638_v32 }
 0x731   : > { %5013 = vpow2.f32 %v1643_v20 }
 0x737   : > { %v5010_v28 = vpop.eup %5009 }
 0x738   : > { %v1645_v33 = vsel %vm1158_vm4, %v5010_v28, 0.0 }
 0x739   : > { %v5012_v34 = vpop.eup %5011  ;;  %1646 = vadd.xlane.f32.xlu0 %v1645_v33  ;;  %v2090_v33 = vadd.f32 %v5648_v10, %v5518_v30 }
 0x73a   : > { %v1648_v38 = vsel %vm1158_vm4, %v5012_v34, 0.0 }
 0x73b   : > { %v5014_v35 = vpop.eup %5013 }
 0x73c   : > { %v1651_v56 = vsel %vm1158_vm4, %v5014_v35, 0.0 }
 0x73d   : > { %1649 = vadd.xlane.f32.xlu0 %v1648_v38  ;;  %1652 = vadd.xlane.f32.xlu1 %v1651_v56  ;;  %v2087_v38 = vadd.f32 %v5646_v8, %v5518_v30 }
 0x74e   : > { %1664 = vrot.lane.b32.xlu1 %v5473_v1, %s5200_s21 }
 0x753   : > { %1662 = vrot.lane.b32.xlu0 %v5457_v52, %s5200_s21 }
 0x772   : > { %1867 = vmax.xlane.f32.xlu0 %v1866_v0  ;;  %1864 = vmax.xlane.f32.xlu1 %v1863_v14 }
 0x776   : > { %1870 = vmax.xlane.f32.xlu0 %v1869_v18 }
 0x7c6   : > { %v1647_v22 = vpop.xlane.xlu0 %1646 }
 0x7c7   : > { %5015 = vrcp.f32 %v1647_v22 }
 0x7ca   : > { %v1653_v41 = vpop.xlane.xlu1 %1652  ;;  %v1650_v42 = vpop.xlane.xlu0 %1649 }
 0x7cb   : > { %5017 = vrcp.f32 %v1653_v41 }
 0x7cc   : > { %5019 = vrcp.f32 %v1650_v42 }
 0x7ce   : > { %v1663_v44 = vpop.permute.xlu0 %1662  ;;  %v1665_v12 = vpop.permute.xlu1 %1664 }
 0x7cf   : > { %4648 = vmatprep.subr.bf16.mxu0 %v1663_v44  ;;  %v1674_v49 = vsel %vm1200_vm2, %v1665_v12, 0 }
 0x7d0   : > { %4649 = vmatpush3.bf16.msra.mxu0 %v1663_v44 }
 0x7d1   : > { %4812 = vmatprep.subr.msk.bf16.mxu0 %vm1200_vm2, %v1665_v12  ;;  %v5016_v50 = vpop.eup %5015 }
 0x7d2   : > { %v1657_v58 = vmul.f32 %v5016_v50, %v5010_v28  ;;  %v5676_v28 = vld [vmem:[%s5317_s19 + $0x28] sm:$0xff]  }
 0x7d4   : > { %4651 = vmatpush3.bf16.msra.mxu0 %v1674_v49 }
 0x7d5   : > { %v5018_v54 = vpop.eup %5017  ;;  %4656 = vmatprep.subr.bf16.mxu0 %v5665_v46 }
 0x7d6   : > { %v5020_v55 = vpop.eup %5019  ;;  %v1659_v57 = vmul.f32 %v5018_v54, %v5014_v35  ;;  %v2103_v35 = vsel %vm1158_vm4, %v2090_v33, -inf }
 0x7d7   : > { %v1658_v59 = vmul.f32 %v5020_v55, %v5012_v34  ;;  %v2095_v34 = vadd.f32 %v5644_v7, %v5518_v30 }
 0x7d8   : > { %v1661_v60 = vpack.c.bf16 %v1659_v57, %v1659_v57  ;;  %v5698_v57 = vld [vmem:[%s5317_s19 + $0x30] sm:$0xff]  }
 0x7d9   : > { %v1660_v61 = vpack.c.bf16 %v1658_v59, %v1657_v58  ;;  %v2106_v56 = vsel %vm1158_vm4, %v2095_v34, -inf }
 0x7db   : > { %4652 = vmatprep.mubr.msk.bf16.mxu0 %vm1158_vm4, %v1660_v61  ;;  %v5709_v61 = vrot.slane %v1076_v19, 4 }
 0x7dc   : > { %4653 = vmatmul.mubr.msk.bf16.vlgmr.msra.gmra.mrb[24].mxu0 %vm1158_vm4, %v1661_v60  ;;  %v5703_v60 = vld [vmem:[%s5317_s19 + $0x38] sm:$0xff]  }
 0x7dd   : > { %4657 = vmatpush3.bf16.msra.mxu0 %v5665_v46 }
 0x7de   : > { %4658 = vmatprep.subr.bf16.mxu0 %v5676_v28 }
 0x7e1   : > { %4659 = vmatpush3.bf16.msra.mxu0 %v5676_v28 }
 0x7ff   : > { %v1865_v63 = vpop.xlane.xlu1 %1864  ;;  %v1868_v2 = vpop.xlane.xlu0 %1867 }
 0x800   : > { %v1873_v3 = vsub.f32 %v1853_v23, %v1868_v2  ;;  %v1872_v5 = vsub.f32 %v1850_v16, %v1865_v63  ;;  %v2136_v63 = vrot.slane %v5473_v1, 4 }
 0x802   : > { %v1877_v6 = vmul.f32 1.442695, %v1873_v3  ;;  %v1875_v13 = vmul.f32 1.442695, %v1872_v5  ;;  %v5717_v2 = vsel %vm1200_vm2, %v2136_v63, %v5709_v61 }
 0x803   : > { %v1871_v9 = vpop.xlane.xlu0 %1870 }
 0x804   : > { %v1874_v11 = vsub.f32 %v1858_v4, %v1871_v9  ;;  %5021 = vpow2.f32 %v1877_v6 }
 0x806   : > { %v1879_v17 = vmul.f32 1.442695, %v1874_v11 }
 0x808   : > { %5023 = vpow2.f32 %v1879_v17 }
 0x809   : > { %5025 = vpow2.f32 %v1875_v13 }
 0x80e   : > { %v5022_v24 = vpop.eup %5021 }
 0x80f   : > { %v1884_v29 = vsel %vm1158_vm4, %v5022_v24, 0.0 }
 0x810   : > { %1885 = vadd.xlane.f32.xlu0 %v1884_v29 }
 0x812   : > { %v5024_v27 = vpop.eup %5023 }
 0x813   : > { %v1887_v31 = vsel %vm1158_vm4, %v5024_v27, 0.0  ;;  %v5026_v32 = vpop.eup %5025 }
 0x814   : > { %1888 = vadd.xlane.f32.xlu1 %v1887_v31  ;;  %v1881_v20 = vsel %vm1158_vm4, %v5026_v32, 0.0 }
 0x818   : > { %1882 = vadd.xlane.f32.xlu1 %v1881_v20 }
 0x826   : > { %1898 = vrot.lane.b32.xlu0 %v5457_v52, %s5201_s30  ;;  %v2100_v52 = vsel %vm1158_vm4, %v2087_v38, -inf }
 0x829   : > { %1900 = vrot.lane.b32.xlu1 %v5473_v1, %s5201_s30 }
 0x845   : > { %2104 = vmax.xlane.f32.xlu0 %v2103_v35 }
 0x849   : > { %2107 = vmax.xlane.f32.xlu0 %v2106_v56 }
 0x84d   : > { %2101 = vmax.xlane.f32.xlu1 %v2100_v52 }
 0x89d   : > { %v1886_v16 = vpop.xlane.xlu0 %1885 }
 0x89e   : > { %5027 = vrcp.f32 %v1886_v16 }
 0x8a1   : > { %v1889_v23 = vpop.xlane.xlu1 %1888  ;;  %v1899_v4 = vpop.permute.xlu0 %1898 }
 0x8a2   : > { %4672 = vmatprep.subr.bf16.mxu0 %v1899_v4 }
 0x8a5   : > { %v1883_v10 = vpop.xlane.xlu1 %1882 }
 0x8a6   : > { %5029 = vrcp.f32 %v1883_v10 }
 0x8a7   : > { %5031 = vrcp.f32 %v1889_v23 }
 0x8a8   : > { %v5028_v7 = vpop.eup %5027 }
 0x8a9   : > { %v1894_v41 = vmul.f32 %v5028_v7, %v5022_v24  ;;  %v1901_v54 = vpop.permute.xlu1 %1900 }
 0x8aa   : > { %v1910_v58 = vsel %vm1200_vm2, %v1901_v54, 0 }
 0x8af   : > { %v4654_v0 = vpop.f32.mrb[24].mxu0 }
 0x8b0   : > { %v5030_v14 = vpop.eup %5029  ;;  %v1710_v18 = vpop.f32.mrb[25].mxu0  ;;  %v1725_v49 = vpack.c.bf16 %v4654_v0, %v4654_v0 }
 0x8b1   : > { %v4655_v8 = vpop.f32.mrb[26].mxu0  ;;  %v1893_v22 = vmul.f32 %v5030_v14, %v5026_v32  ;;  %v5032_v50 = vpop.eup %5031 }
 0x8b2   : > { %v1713_v42 = vpop.f32.mrb[27].mxu0  ;;  %v1895_v55 = vmul.f32 %v5032_v50, %v5024_v27 }
 0x8b3   : > { %v1724_v44 = vpack.c.bf16 %v1713_v42, %v1710_v18  ;;  %v1896_v12 = vpack.c.bf16 %v1894_v41, %v1893_v22 }
 0x8b4   : > { %v1897_v59 = vpack.c.bf16 %v1895_v55, %v1895_v55 }
 0x8b5   : > { %4660 = vmatprep.mubr.msk.bf16.mxu0 %vm1097_vm1, %v1724_v44 }
 0x8b6   : > { %4661 = vmatmul.mubr.msk.bf16.vlgmr.msra.gmra.mrb[28].mxu0 %vm1097_vm1, %v1725_v49 }
 0x8b7   : > { %4673 = vmatpush3.bf16.msra.mxu0 %v1899_v4  ;;  %4676 = vmatprep.mubr.msk.bf16.mxu0 %vm1158_vm4, %v1896_v12  ;;  %v2147_v12 = vsel %vm1200_vm2, %v5709_v61, 0 }
 0x8b8   : > { %4815 = vmatprep.subr.msk.bf16.mxu0 %vm1200_vm2, %v1901_v54 }
 0x8bb   : > { %4675 = vmatpush3.bf16.msra.mxu0 %v1910_v58 }
 0x8bc   : > { %4680 = vmatprep.subr.bf16.mxu0 %v5698_v57 }
 0x8be   : > { %4677 = vmatmul.mubr.msk.bf16.vlgmr.msra.gmra.mrb[32].mxu0 %vm1158_vm4, %v1897_v59 }
 0x8bf   : > { %4681 = vmatpush3.bf16.msra.mxu0 %v5698_v57 }
 0x8c0   : > { %4682 = vmatprep.subr.bf16.mxu0 %v5703_v60 }
 0x8c3   : > { %4683 = vmatpush3.bf16.msra.mxu0 %v5703_v60 }
 0x8c4   : > { %4696 = vmatprep.subr.bf16.mxu0 %v5717_v2 }
 0x8d2   : > { %v2105_v3 = vpop.xlane.xlu0 %2104 }
 0x8d3   : > { %v2110_v5 = vsub.f32 %v2090_v33, %v2105_v3 }
 0x8d5   : > { %v2114_v6 = vmul.f32 1.442695, %v2110_v5 }
 0x8d6   : > { %v2108_v15 = vpop.xlane.xlu0 %2107 }
 0x8d7   : > { %5033 = vpow2.f32 %v2114_v6  ;;  %v2111_v21 = vsub.f32 %v2095_v34, %v2108_v15 }
 0x8d9   : > { %v2116_v11 = vmul.f32 1.442695, %v2111_v21 }
 0x8da   : > { %v2102_v19 = vpop.xlane.xlu1 %2101 }
 0x8db   : > { %v2109_v9 = vsub.f32 %v2087_v38, %v2102_v19 }
 0x8dd   : > { %v2112_v13 = vmul.f32 1.442695, %v2109_v9 }
 0x8df   : > { %5035 = vpow2.f32 %v2112_v13 }
 0x8e0   : > { %5037 = vpow2.f32 %v2116_v11 }
 0x8e1   : > { %v5034_v1 = vpop.eup %5033 }
 0x8e2   : > { %v2121_v17 = vsel %vm1158_vm4, %v5034_v1, 0.0 }
 0x8e3   : > { %2122 = vadd.xlane.f32.xlu0 %v2121_v17 }
 0x8e9   : > { %v5036_v24 = vpop.eup %5035 }
 0x8ea   : > { %v2118_v29 = vsel %vm1158_vm4, %v5036_v24, 0.0  ;;  %v5038_v27 = vpop.eup %5037 }
 0x8eb   : > { %2119 = vadd.xlane.f32.xlu1 %v2118_v29  ;;  %v2124_v31 = vsel %vm1158_vm4, %v5038_v27, 0.0 }
 0x8ef   : > { %2125 = vadd.xlane.f32.xlu1 %v2124_v31 }
 0x8f9   : > { %2203 = vrot.lane.b32.xlu0 %v5607_v39, %s5198_s17 }
 0x900   : > { %2205 = vrot.lane.b32.xlu1 %v5601_v37, %s5198_s17 }
 0x904   : > { %2199 = vrot.lane.b32.xlu1 %v5622_v25, %s5198_s17 }
 0x908   : > { %2201 = vrot.lane.b32.xlu1 %v5614_v40, %s5198_s17 }
 0x970   : > { %v2123_v20 = vpop.xlane.xlu0 %2122 }
 0x974   : > { %v2204_v49 = vpop.permute.xlu0 %2203 }
 0x975   : > { %v2214_v55 = vsel %vm1097_vm1, %v2204_v49, 0 }
 0x978   : > { %v2120_v32 = vpop.xlane.xlu1 %2119 }
 0x979   : > { %5039 = vrcp.f32 %v2120_v32 }
 0x97a   : > { %5041 = vrcp.f32 %v2123_v20 }
 0x97c   : > { %v2126_v34 = vpop.xlane.xlu1 %2125 }
 0x97d   : > { %5043 = vrcp.f32 %v2126_v34 }
 0x983   : > { %v5040_v4 = vpop.eup %5039 }
 0x984   : > { %v5042_v7 = vpop.eup %5041  ;;  %v2130_v18 = vmul.f32 %v5040_v4, %v5036_v24 }
 0x985   : > { %v2131_v41 = vmul.f32 %v5042_v7, %v5034_v1 }
 0x987   : > { %v5044_v44 = vpop.eup %5043 }
 0x989   : > { %v4662_v33 = vpop.f32.mrb[28].mxu0 }
 0x98a   : > { %v1794_v35 = vadd.f32 %v4662_v33, %v5632_v43  ;;  %v1778_v38 = vpop.f32.mrb[29].mxu0  ;;  %v2133_v43 = vpack.c.bf16 %v2131_v41, %v2130_v18 }
 0x98b   : > { %v1792_v56 = vadd.f32 %v1778_v38, %v5634_v45  ;;  %v4663_v52 = vpop.f32.mrb[30].mxu0  ;;  %v2132_v45 = vmul.f32 %v5044_v44, %v5038_v27 }
 0x98c   : > { %v1781_v16 = vpop.f32.mrb[31].mxu0 }
 0x98d   : > { %v1793_v23 = vadd.f32 %v1781_v16, %v5636_v47  ;;  %v2206_v47 = vpop.permute.xlu1 %2205  ;;  %v2134_v50 = vpack.c.bf16 %v2132_v45, %v2132_v45 }
 0x98e   : > { %v2217_v58 = vsel %vm1097_vm1, %v2206_v47, 0 }
 0x991   : > { %v4678_v10 = vpop.f32.mrb[32].mxu0  ;;  %v2200_v54 = vpop.permute.xlu1 %2199 }
 0x992   : > { %v1946_v0 = vpop.f32.mrb[33].mxu0  ;;  %v1961_v42 = vpack.c.bf16 %v4678_v10, %v4678_v10 }
 0x993   : > { %v4679_v14 = vpop.f32.mrb[34].mxu0 }
 0x994   : > { %v1949_v8 = vpop.f32.mrb[35].mxu0 }
 0x995   : > { %v1960_v22 = vpack.c.bf16 %v1949_v8, %v1946_v0  ;;  %v2202_v59 = vpop.permute.xlu1 %2201 }
 0x997   : > { %4684 = vmatprep.mubr.msk.bf16.mxu0 %vm1097_vm1, %v1960_v22 }
 0x998   : > { %4685 = vmatmul.mubr.msk.bf16.vlgmr.msra.gmra.mrb[36].mxu0 %vm1097_vm1, %v1961_v42 }
 0x999   : > { %4697 = vmatpush3.bf16.msra.mxu0 %v5717_v2  ;;  %4700 = vmatprep.mubr.msk.bf16.mxu0 %vm1158_vm4, %v2133_v43 }
 0x99a   : > { %4818 = vmatprep.subr.msk.bf16.mxu0 %vm1200_vm2, %v5709_v61 }
 0x99d   : > { %4699 = vmatpush3.bf16.msra.mxu0 %v2147_v12 }
 0x99e   : > { %4819 = vmatprep.subr.msk.bf16.mxu0 %vm1097_vm1, %v2204_v49 }
 0x9a0   : > { %4701 = vmatmul.mubr.msk.bf16.vlgmr.msra.gmra.mrb[40].mxu0 %vm1158_vm4, %v2134_v50 }
 0x9a1   : > { %4708 = vmatprep.mubr.msk.bf16.mxu0 %vm1097_vm1, %v2200_v54 }
 0x9a6   : > { %4705 = vmatpush3.bf16.xpose.msra.mxu0 %v2214_v55 }
 0x9a7   : > { %4820 = vmatprep.subr.msk.bf16.mxu0 %vm1097_vm1, %v2206_v47 }
 0x9ae   : > { %4707 = vmatpush3.bf16.xpose.msra.mxu0 %v2217_v58 }
 0x9af   : > { %4728 = vmatprep.subr.bf16.mxu0 %v5559_v36 }
 0x9b5   : > { %4709 = vmatmul.mubr.msk.bf16.vlgmr.msra.gmra.mrb[44].mxu0 %vm1097_vm1, %v2202_v59 }
 0x9b6   : > { %4729 = vmatpush3.bf16.msra.mxu0 %v5559_v36 }
 0x9b7   : > { %4730 = vmatprep.subr.bf16.mxu0 %v5566_v51 }
 0x9ba   : > { %4731 = vmatpush3.bf16.msra.mxu0 %v5566_v51 }
 0xa6b   : > { %v4686_v63 = vpop.f32.mrb[36].mxu0 }
 0xa6c   : > { %v5753_v3 = vadd.f32 %v4686_v63, %v1794_v35  ;;  %v2014_v5 = vpop.f32.mrb[37].mxu0 }
 0xa6d   : > { %v5755_v6 = vadd.f32 %v2014_v5, %v1792_v56  ;;  %v4687_v15 = vpop.f32.mrb[38].mxu0 }
 0xa6e   : > { %v2017_v21 = vpop.f32.mrb[39].mxu0 }
 0xa6f   : > { %v5757_v19 = vadd.f32 %v2017_v21, %v1793_v23 }
 0xa73   : > { %v4702_v9 = vpop.f32.mrb[40].mxu0 }
 0xa74   : > { %v2183_v11 = vpop.f32.mrb[41].mxu0  ;;  %v2198_v36 = vpack.c.bf16 %v4702_v9, %v4702_v9 }
 0xa75   : > { %v4703_v13 = vpop.f32.mrb[42].mxu0 }
 0xa76   : > { %v2186_v1 = vpop.f32.mrb[43].mxu0 }
 0xa77   : > { %v2197_v17 = vpack.c.bf16 %v2186_v1, %v2183_v11 }
 0xa79   : > { %4732 = vmatprep.mubr.msk.bf16.mxu0 %vm1097_vm1, %v2197_v17 }
 0xa7a   : > { %4733 = vmatmul.mubr.msk.bf16.vlgmr.msra.gmra.mrb[48].mxu0 %vm1097_vm1, %v2198_v36 }
 0xa88   : > { %v4710_v51 = vpop.f32.mrb[44].mxu0 }
 0xa89   : > { %v2253_v24 = vpop.f32.mrb[45].mxu0  ;;  %v2262_v32 = vadd.f32 %v4710_v51, %v5518_v30 }
 0xa8a   : > { %v2254_v29 = vadd.f32 %v2253_v24, %v5518_v30  ;;  %v4711_v27 = vpop.f32.mrb[46].mxu0 }
 0xa8b   : > { %v2256_v31 = vpop.f32.mrb[47].mxu0  ;;  %v2273_v35 = vsel %vm1158_vm4, %v2262_v32, -inf }
 0xa8c   : > { %v2257_v20 = vadd.f32 %v2256_v31, %v5518_v30  ;;  %v2267_v33 = vsel %vm1158_vm4, %v2254_v29, -inf }
 0xa8d   : > { %2268 = vmax.xlane.f32.xlu0 %v2267_v33 }
 0xa8e   : > { %v2270_v34 = vsel %vm1158_vm4, %v2257_v20, -inf }
 0xa8f   : > { %2271 = vmax.xlane.f32.xlu1 %v2270_v34 }
 0xa91   : > { %2274 = vmax.xlane.f32.xlu0 %v2273_v35 }
 0xb1a   : > { %v2269_v38 = vpop.xlane.xlu0 %2268 }
 0xb1b   : > { %v2276_v56 = vsub.f32 %v2254_v29, %v2269_v38 }
 0xb1c   : > { %v2272_v52 = vpop.xlane.xlu1 %2271 }
 0xb1d   : > { %v2279_v16 = vmul.f32 1.442695, %v2276_v56  ;;  %v2277_v23 = vsub.f32 %v2257_v20, %v2272_v52 }
 0xb1e   : > { %v2275_v4 = vpop.xlane.xlu0 %2274 }
 0xb1f   : > { %5045 = vpow2.f32 %v2279_v16  ;;  %v2281_v10 = vmul.f32 1.442695, %v2277_v23  ;;  %v2278_v7 = vsub.f32 %v2262_v32, %v2275_v4 }
 0xb21   : > { %5047 = vpow2.f32 %v2281_v10  ;;  %v2283_v0 = vmul.f32 1.442695, %v2278_v7 }
 0xb23   : > { %5049 = vpow2.f32 %v2283_v0 }
 0xb29   : > { %v5046_v14 = vpop.eup %5045 }
 0xb2a   : > { %v2285_v18 = vsel %vm1158_vm4, %v5046_v14, 0.0 }
 0xb2b   : > { %v5048_v8 = vpop.eup %5047  ;;  %2286 = vadd.xlane.f32.xlu0 %v2285_v18 }
 0xb2c   : > { %v2288_v41 = vsel %vm1158_vm4, %v5048_v8, 0.0 }
 0xb2d   : > { %v5050_v22 = vpop.eup %5049 }
 0xb2e   : > { %v2291_v42 = vsel %vm1158_vm4, %v5050_v22, 0.0 }
 0xb2f   : > { %2289 = vadd.xlane.f32.xlu0 %v2288_v41  ;;  %2292 = vadd.xlane.f32.xlu1 %v2291_v42 }
 0xb40   : > { %2304 = vrot.lane.b32.xlu1 %v5709_v61, %s5198_s17 }
 0xb44   : > { %2478 = vrot.lane.b32.xlu1 %v5607_v39, %s5200_s21 }
 0xb45   : > { %2302 = vrot.lane.b32.xlu0 %v5717_v2, %s5198_s17 }
 0xb48   : > { %2480 = vrot.lane.b32.xlu1 %v5601_v37, %s5200_s21 }
 0xb49   : > { %2474 = vrot.lane.b32.xlu0 %v5622_v25, %s5200_s21 }
 0xb4c   : > { %2476 = vrot.lane.b32.xlu1 %v5614_v40, %s5200_s21 }
 0xb4d   : > { %2702 = vrot.lane.b32.xlu0 %v5607_v39, %s5201_s30  ;;  %v5784_v44 = vpop.f32.mrb[48].mxu0 }
 0xb4e   : > { %v5786_v43 = vpop.f32.mrb[49].mxu0 }
 0xb4f   : > { %v4735_v45 = vpop.f32.mrb[50].mxu0 }
 0xb50   : > { %2704 = vrot.lane.b32.xlu1 %v5601_v37, %s5201_s30  ;;  %v5790_v47 = vpop.f32.mrb[51].mxu0 }
 0xb51   : > { %2698 = vrot.lane.b32.xlu0 %v5622_v25, %s5201_s30 }
 0xb54   : > { %2700 = vrot.lane.b32.xlu1 %v5614_v40, %s5201_s30 }
 0xbb8   : > { %v2287_v12 = vpop.xlane.xlu0 %2286 }
 0xbb9   : > { %5051 = vrcp.f32 %v2287_v12 }
 0xbbc   : > { %v2293_v49 = vpop.xlane.xlu1 %2292  ;;  %v2290_v39 = vpop.xlane.xlu0 %2289 }
 0xbbd   : > { %5053 = vrcp.f32 %v2293_v49 }
 0xbbe   : > { %5055 = vrcp.f32 %v2290_v39 }
 0xbc0   : > { %v2303_v50 = vpop.permute.xlu0 %2302  ;;  %v2305_v54 = vpop.permute.xlu1 %2304 }
 0xbc1   : > { %4712 = vmatprep.subr.bf16.mxu1 %v2303_v50  ;;  %v2314_v37 = vsel %vm1200_vm2, %v2305_v54, 0 }
 0xbc2   : > { %4713 = vmatpush3.bf16.msra.mxu1 %v2303_v50 }
 0xbc3   : > { %4821 = vmatprep.subr.msk.bf16.mxu1 %vm1200_vm2, %v2305_v54  ;;  %v5052_v55 = vpop.eup %5051 }
 0xbc4   : > { %v2297_v59 = vmul.f32 %v5052_v55, %v5046_v14  ;;  %v2479_v21 = vpop.permute.xlu1 %2478  ;;  %v2475_v24 = vpop.permute.xlu0 %2474 }
 0xbc5   : > { %v2489_v51 = vsel %vm1097_vm1, %v2479_v21, 0 }
 0xbc6   : > { %4715 = vmatpush3.bf16.msra.mxu1 %v2314_v37 }
 0xbc7   : > { %v5054_v25 = vpop.eup %5053  ;;  %4720 = vmatprep.subr.bf16.mxu1 %v5572_v48 }
 0xbc8   : > { %v5056_v40 = vpop.eup %5055  ;;  %v2299_v58 = vmul.f32 %v5054_v25, %v5050_v22  ;;  %v2703_v29 = vpop.permute.xlu0 %2702 }
 0xbc9   : > { %v2298_v63 = vmul.f32 %v5056_v40, %v5048_v8  ;;  %v2713_v31 = vsel %vm1097_vm1, %v2703_v29, 0 }
 0xbca   : > { %v2301_v5 = vpack.c.bf16 %v2299_v58, %v2299_v58 }
 0xbcb   : > { %v2300_v15 = vpack.c.bf16 %v2298_v63, %v2297_v59 }
 0xbcc   : > { %v2699_v32 = vpop.permute.xlu0 %2698 }
 0xbcd   : > { %4716 = vmatprep.mubr.msk.bf16.mxu1 %vm1158_vm4, %v2300_v15 }
 0xbce   : > { %4717 = vmatmul.mubr.msk.bf16.vlgmr.msra.gmra.mrb[36].mxu1 %vm1158_vm4, %v2301_v5 }
 0xbcf   : > { %4721 = vmatpush3.bf16.msra.mxu1 %v5572_v48  ;;  %v2481_v48 = vpop.permute.xlu1 %2480 }
 0xbd0   : > { %4722 = vmatprep.subr.bf16.mxu1 %v5577_v62 }
 0xbd3   : > { %4723 = vmatpush3.bf16.msra.mxu1 %v5577_v62  ;;  %v2492_v62 = vsel %vm1097_vm1, %v2481_v48, 0  ;;  %v2477_v27 = vpop.permute.xlu1 %2476 }
 0xbd4   : > { %4822 = vmatprep.subr.msk.bf16.mxu1 %vm1097_vm1, %v2479_v21 }
 0xbd7   : > { %v2705_v20 = vpop.permute.xlu1 %2704 }
 0xbd8   : > { %v2716_v33 = vsel %vm1097_vm1, %v2705_v20, 0 }
 0xbdb   : > { %v2701_v34 = vpop.permute.xlu1 %2700 }
 0xca1   : > { %v4718_v9 = vpop.f32.mrb[36].mxu1 }
 0xca2   : > { %v2350_v11 = vpop.f32.mrb[37].mxu1  ;;  %v2365_v36 = vpack.c.bf16 %v4718_v9, %v4718_v9 }
 0xca3   : > { %v4719_v13 = vpop.f32.mrb[38].mxu1 }
 0xca4   : > { %v2353_v1 = vpop.f32.mrb[39].mxu1 }
 0xca5   : > { %v2364_v17 = vpack.c.bf16 %v2353_v1, %v2350_v11 }
 0xca7   : > { %4724 = vmatprep.mubr.msk.bf16.mxu1 %vm1097_vm1, %v2364_v17 }
 0xca8   : > { %4725 = vmatmul.mubr.msk.bf16.vlgmr.msra.gmra.mrb[40].mxu1 %vm1097_vm1, %v2365_v36 }
 0xca9   : > { %4737 = vmatpush3.bf16.xpose.msra.mxu1 %v2489_v51  ;;  %4740 = vmatprep.mubr.msk.bf16.mxu1 %vm1097_vm1, %v2475_v24 }
 0xcaa   : > { %4823 = vmatprep.subr.msk.bf16.mxu1 %vm1097_vm1, %v2481_v48 }
 0xcb1   : > { %4739 = vmatpush3.bf16.xpose.msra.mxu1 %v2492_v62 }
 0xcb2   : > { %4825 = vmatprep.subr.msk.bf16.mxu1 %vm1097_vm1, %v2703_v29 }
 0xcb8   : > { %4741 = vmatmul.mubr.msk.bf16.vlgmr.msra.gmra.mrb[44].mxu1 %vm1097_vm1, %v2477_v27 }
 0xcb9   : > { %4761 = vmatpush3.bf16.xpose.msra.mxu1 %v2713_v31  ;;  %4764 = vmatprep.mubr.msk.bf16.mxu1 %vm1097_vm1, %v2699_v32 }
 0xcba   : > { %4826 = vmatprep.subr.msk.bf16.mxu1 %vm1097_vm1, %v2705_v20 }
 0xcc1   : > { %4763 = vmatpush3.bf16.xpose.msra.mxu1 %v2716_v33 }
 0xcc8   : > { %4765 = vmatmul.mubr.msk.bf16.vlgmr.msra.gmra.mrb[48].mxu1 %vm1097_vm1, %v2701_v34 }
 0xcc9   : > { %3282 = vmatprep.mubr.bf16.mxu1 %v5196_v53 }
 0xd7b   : > { %v4726_v35 = vpop.f32.mrb[40].mxu1 }
 0xd7c   : > { %v5820_v38 = vadd.f32 %v5784_v44, %v4726_v35  ;;  %v2406_v56 = vpop.f32.mrb[41].mxu1 }
 0xd7d   : > { %v5823_v52 = vadd.f32 %v5786_v43, %v2406_v56  ;;  %v4727_v16 = vpop.f32.mrb[42].mxu1 }
 0xd7e   : > { %v2409_v23 = vpop.f32.mrb[43].mxu1 }
 0xd7f   : > { %v5826_v4 = vadd.f32 %v5790_v47, %v2409_v23 }
 0xd8b   : > { %v4742_v10 = vpop.f32.mrb[44].mxu1 }
 0xd8c   : > { %v2528_v7 = vpop.f32.mrb[45].mxu1  ;;  %v2537_v8 = vadd.f32 %v4742_v10, %v5518_v30 }
 0xd8d   : > { %v2529_v0 = vadd.f32 %v2528_v7, %v5518_v30  ;;  %v4743_v14 = vpop.f32.mrb[46].mxu1 }
 0xd8e   : > { %v2531_v18 = vpop.f32.mrb[47].mxu1  ;;  %v2548_v44 = vsel %vm1158_vm4, %v2537_v8, -inf }
 0xd8f   : > { %v2532_v22 = vadd.f32 %v2531_v18, %v5518_v30  ;;  %v2542_v41 = vsel %vm1158_vm4, %v2529_v0, -inf }
 0xd90   : > { %2543 = vmax.xlane.f32.xlu0 %v2542_v41 }
 0xd91   : > { %v2545_v42 = vsel %vm1158_vm4, %v2532_v22, -inf }
 0xd92   : > { %2546 = vmax.xlane.f32.xlu1 %v2545_v42 }
 0xd94   : > { %2549 = vmax.xlane.f32.xlu0 %v2548_v44 }
 0xd9b   : > { %v4766_v43 = vpop.f32.mrb[48].mxu1 }
 0xd9c   : > { %v2752_v45 = vpop.f32.mrb[49].mxu1  ;;  %v2761_v1 = vadd.f32 %v4766_v43, %v5518_v30 }
 0xd9d   : > { %v4767_v47 = vpop.f32.mrb[50].mxu1  ;;  %v2753_v11 = vadd.f32 %v2752_v45, %v5518_v30 }
 0xd9e   : > { %v2755_v12 = vpop.f32.mrb[51].mxu1  ;;  %v2772_v51 = vsel %vm1158_vm4, %v2761_v1, -inf  ;;  %v5867_v47 = vld [vmem:[%s6216_s29] ss:$0 sm:$0xff] }
 0xd9f   : > { %v2756_v13 = vadd.f32 %v2755_v12, %v5518_v30  ;;  %v2766_v36 = vsel %vm1158_vm4, %v2753_v11, -inf  ;;  %v2930_v12 = vadd.f32 %v5867_v47, %v5757_v19 }
 0xda1   : > { %v2769_v17 = vsel %vm1158_vm4, %v2756_v13, -inf }
 0xe1d   : > { %v2544_v49 = vpop.xlane.xlu0 %2543 }
 0xe1e   : > { %v2551_v39 = vsub.f32 %v2529_v0, %v2544_v49  ;;  %v2931_v49 = vadd.f32 %v5867_v47, %v5753_v3 }
 0xe1f   : > { %v2547_v50 = vpop.xlane.xlu1 %2546 }
 0xe20   : > { %v2554_v54 = vmul.f32 1.442695, %v2551_v39  ;;  %v2552_v37 = vsub.f32 %v2532_v22, %v2547_v50  ;;  %v5141_v39 = vld [vmem:[#allocation2 + $0x8] sm:$0xff] }
 0xe21   : > { %v2550_v55 = vpop.xlane.xlu0 %2549  ;;  %v5873_v50 = vadd.f32 %v5141_v39, %v2930_v12  ;;  %v5144_v12 = vld [vmem:[#allocation2 + $0x18] sm:$0xff] }
 0xe22   : > { %5057 = vpow2.f32 %v2554_v54  ;;  %v2556_v25 = vmul.f32 1.442695, %v2552_v37  ;;  %v2553_v40 = vsub.f32 %v2537_v8, %v2550_v55  ;;  %v5143_v37 = vld [vmem:[#allocation2] sm:$0xff] }
 0xe24   : > { %5059 = vpow2.f32 %v2556_v25  ;;  %v2558_v58 = vmul.f32 1.442695, %v2553_v40 }
 0xe26   : > { %5061 = vpow2.f32 %v2558_v58 }
 0xe2c   : > { %v5058_v59 = vpop.eup %5057 }
 0xe2d   : > { %v2560_v63 = vsel %vm1158_vm4, %v5058_v59, 0.0 }
 0xe2e   : > { %v5060_v5 = vpop.eup %5059  ;;  %2561 = vadd.xlane.f32.xlu0 %v2560_v63 }
 0xe2f   : > { %v2563_v21 = vsel %vm1158_vm4, %v5060_v5, 0.0 }
 0xe30   : > { %v5062_v15 = vpop.eup %5061 }
 0xe31   : > { %v2566_v9 = vsel %vm1158_vm4, %v5062_v15, 0.0 }
 0xe32   : > { %2564 = vadd.xlane.f32.xlu0 %v2563_v21  ;;  %2567 = vadd.xlane.f32.xlu1 %v2566_v9 }
 0xe43   : > { %2579 = vrot.lane.b32.xlu1 %v5709_v61, %s5200_s21 }
 0xe48   : > { %2577 = vrot.lane.b32.xlu0 %v5717_v2, %s5200_s21 }
 0xe67   : > { %2770 = vmax.xlane.f32.xlu0 %v2769_v17  ;;  %2767 = vmax.xlane.f32.xlu1 %v2766_v36 }
 0xe6b   : > { %2773 = vmax.xlane.f32.xlu0 %v2772_v51 }
 0xebb   : > { %v2562_v24 = vpop.xlane.xlu0 %2561 }
 0xebc   : > { %5063 = vrcp.f32 %v2562_v24 }
 0xebf   : > { %v2568_v48 = vpop.xlane.xlu1 %2567  ;;  %v2565_v62 = vpop.xlane.xlu0 %2564 }
 0xec0   : > { %5065 = vrcp.f32 %v2568_v48 }
 0xec1   : > { %5067 = vrcp.f32 %v2565_v62 }
 0xec3   : > { %v2578_v29 = vpop.permute.xlu0 %2577  ;;  %v2580_v27 = vpop.permute.xlu1 %2579 }
 0xec4   : > { %4744 = vmatprep.subr.bf16.mxu0 %v2578_v29  ;;  %v2589_v30 = vsel %vm1200_vm2, %v2580_v27, 0 }
 0xec5   : > { %4745 = vmatpush3.bf16.msra.mxu0 %v2578_v29 }
 0xec6   : > { %4824 = vmatprep.subr.msk.bf16.mxu0 %vm1200_vm2, %v2580_v27  ;;  %v5064_v31 = vpop.eup %5063 }
 0xec7   : > { %v2572_v34 = vmul.f32 %v5064_v31, %v5058_v59 }
 0xec9   : > { %4747 = vmatpush3.bf16.msra.mxu0 %v2589_v30 }
 0xeca   : > { %v5066_v32 = vpop.eup %5065  ;;  %4752 = vmatprep.subr.bf16.mxu0 %v5665_v46 }
 0xecb   : > { %v5068_v20 = vpop.eup %5067  ;;  %v2574_v33 = vmul.f32 %v5066_v32, %v5062_v15 }
 0xecc   : > { %v2573_v35 = vmul.f32 %v5068_v20, %v5060_v5 }
 0xecd   : > { %v2576_v56 = vpack.c.bf16 %v2574_v33, %v2574_v33 }
 0xece   : > { %v2575_v16 = vpack.c.bf16 %v2573_v35, %v2572_v34 }
 0xed0   : > { %4748 = vmatprep.mubr.msk.bf16.mxu0 %vm1158_vm4, %v2575_v16  ;;  %v4895_v16 = vld [vmem:[%s5340_s4 + $0x4] ss:$16 sps:$4 sm:$0xff]  }
 0xed1   : > { %4749 = vmatmul.mubr.msk.bf16.vlgmr.msra.gmra.mrb[52].mxu0 %vm1158_vm4, %v2576_v56  ;;  %3250 = vmatprep.subr.bf16.mxu1 %v4895_v16 }
 0xed2   : > { %4753 = vmatpush3.bf16.msra.mxu0 %v5665_v46 }
 0xed3   : > { %4754 = vmatprep.subr.bf16.mxu0 %v5676_v28 }
 0xed6   : > { %4755 = vmatpush3.bf16.msra.mxu0 %v5676_v28 }
 0xef4   : > { %v2768_v23 = vpop.xlane.xlu1 %2767  ;;  %v2771_v10 = vpop.xlane.xlu0 %2770 }
 0xef5   : > { %v2776_v7 = vsub.f32 %v2756_v13, %v2771_v10  ;;  %v2775_v0 = vsub.f32 %v2753_v11, %v2768_v23  ;;  %v4898_v23 = vld [vmem:[%s5340_s4 + $0xc] ss:$16 sps:$4 sm:$0xff]  }
 0xef7   : > { %v2780_v14 = vmul.f32 1.442695, %v2776_v7  ;;  %v2778_v22 = vmul.f32 1.442695, %v2775_v0 }
 0xef8   : > { %v2774_v18 = vpop.xlane.xlu0 %2773 }
 0xef9   : > { %v2777_v8 = vsub.f32 %v2761_v1, %v2774_v18  ;;  %5069 = vpow2.f32 %v2780_v14 }
 0xefb   : > { %v2782_v41 = vmul.f32 1.442695, %v2777_v8 }
 0xefd   : > { %5071 = vpow2.f32 %v2782_v41 }
 0xefe   : > { %5073 = vpow2.f32 %v2778_v22 }
 0xf03   : > { %v5070_v42 = vpop.eup %5069 }
 0xf04   : > { %v2787_v46 = vsel %vm1158_vm4, %v5070_v42, 0.0 }
 0xf05   : > { %2788 = vadd.xlane.f32.xlu0 %v2787_v46 }
 0xf07   : > { %v5072_v44 = vpop.eup %5071 }
 0xf08   : > { %v2790_v28 = vsel %vm1158_vm4, %v5072_v44, 0.0  ;;  %v5074_v43 = vpop.eup %5073 }
 0xf09   : > { %2791 = vadd.xlane.f32.xlu1 %v2790_v28  ;;  %v2784_v45 = vsel %vm1158_vm4, %v5074_v43, 0.0 }
 0xf0d   : > { %2785 = vadd.xlane.f32.xlu1 %v2784_v45 }
 0xf1b   : > { %2801 = vrot.lane.b32.xlu0 %v5717_v2, %s5201_s30  ;;  %v5142_v2 = vld [vmem:[#allocation2 + $0x10] sm:$0xff] }
 0xf1c   : > { %v5878_v54 = vadd.f32 %v5142_v2, %v2931_v49  ;;  %v5145_v2 = vld [vmem:[#allocation2 + $0x20] sm:$0xff] }
 0xf1e   : > { %2803 = vrot.lane.b32.xlu1 %v5709_v61, %s5201_s30  ;;  %v2929_v61 = vadd.f32 %v5867_v47, %v5755_v6  ;;  %s6221_s30 = sld [smem:[#allocation11_spill]] (!%p4361_p5) }
 0xf20   : > { %v5881_v55 = vadd.f32 %v5143_v37, %v2929_v61 }
 0xf3a   : > { %2945 = vadd.xlane.f32.xlu0 %v5873_v50 }
 0xf3e   : > { %2947 = vadd.xlane.f32.xlu0 %v5878_v54 }
 0xf42   : > { %2943 = vadd.xlane.f32.xlu1 %v5881_v55 }
 0xf92   : > { %v2789_v19 = vpop.xlane.xlu0 %2788 }
 0xf93   : > { %5075 = vrcp.f32 %v2789_v19 }
 0xf96   : > { %v2792_v3 = vpop.xlane.xlu1 %2791  ;;  %v2802_v25 = vpop.permute.xlu0 %2801 }
 0xf97   : > { %4768 = vmatprep.subr.bf16.mxu0 %v2802_v25 }
 0xf9a   : > { %v2786_v40 = vpop.xlane.xlu1 %2785 }
 0xf9b   : > { %5077 = vrcp.f32 %v2786_v40 }
 0xf9c   : > { %5079 = vrcp.f32 %v2792_v3 }
 0xf9d   : > { %v5076_v58 = vpop.eup %5075 }
 0xf9e   : > { %v2797_v21 = vmul.f32 %v5076_v58, %v5070_v42  ;;  %v2804_v36 = vpop.permute.xlu1 %2803 }
 0xf9f   : > { %v2813_v24 = vsel %vm1200_vm2, %v2804_v36, 0 }
 0xfa4   : > { %v4750_v6 = vpop.f32.mrb[52].mxu0 }
 0xfa5   : > { %v5078_v59 = vpop.eup %5077  ;;  %v2625_v63 = vpop.f32.mrb[53].mxu0  ;;  %v2640_v1 = vpack.c.bf16 %v4750_v6, %v4750_v6 }
 0xfa6   : > { %v4751_v5 = vpop.f32.mrb[54].mxu0  ;;  %v2796_v15 = vmul.f32 %v5078_v59, %v5074_v43  ;;  %v5080_v17 = vpop.eup %5079  ;;  %v4901_v59 = vld [vmem:[%s5340_s4 + $0x24] ss:$16 sps:$4 sm:$0xff]  }
 0xfa7   : > { %v2628_v9 = vpop.f32.mrb[55].mxu0  ;;  %v2798_v51 = vmul.f32 %v5080_v17, %v5072_v44  ;;  %v4899_v5 = vld [vmem:[%s5340_s4 + $0x20] ss:$16 sps:$4 sm:$0xff]   ;;  %v4916_v17 = vld [vmem:[%s5340_s4 + $0x6c] ss:$16 sps:$4 sm:$0xff]  }
 0xfa8   : > { %v2639_v11 = vpack.c.bf16 %v2628_v9, %v2625_v63  ;;  %v2799_v13 = vpack.c.bf16 %v2797_v21, %v2796_v15  ;;  %v4904_v63 = vld [vmem:[%s5340_s4 + $0x2c] ss:$16 sps:$4 sm:$0xff]   ;;  %v4902_v15 = vld [vmem:[%s5340_s4 + $0x28] ss:$16 sps:$4 sm:$0xff]   ;;  %v4907_v21 = vld [vmem:[%s5340_s4 + $0x44] ss:$16 sps:$4 sm:$0xff]  }
 0xfa9   : > { %v2800_v48 = vpack.c.bf16 %v2798_v51, %v2798_v51  ;;  %v4910_v9 = vld [vmem:[%s5340_s4 + $0x4c] ss:$16 sps:$4 sm:$0xff]   ;;  %v4914_v51 = vld [vmem:[%s5340_s4 + $0x68] ss:$16 sps:$4 sm:$0xff]  }
 0xfaa   : > { %4756 = vmatprep.mubr.msk.bf16.mxu0 %vm1097_vm1, %v2639_v11  ;;  %v4905_v11 = vld [vmem:[%s5340_s4 + $0x40] ss:$16 sps:$4 sm:$0xff]  }
 0xfab   : > { %4757 = vmatmul.mubr.msk.bf16.vlgmr.msra.gmra.mrb[56].mxu0 %vm1097_vm1, %v2640_v1  ;;  %v4913_v1 = vld [vmem:[%s5340_s4 + $0x64] ss:$16 sps:$4 sm:$0xff]  }
 0xfac   : > { %4769 = vmatpush3.bf16.msra.mxu0 %v2802_v25  ;;  %4772 = vmatprep.mubr.msk.bf16.mxu0 %vm1158_vm4, %v2799_v13  ;;  %v4908_v13 = vld [vmem:[%s5340_s4 + $0x48] ss:$16 sps:$4 sm:$0xff]  }
 0xfad   : > { %4827 = vmatprep.subr.msk.bf16.mxu0 %vm1200_vm2, %v2804_v36  ;;  %v4911_v36 = vld [vmem:[%s5340_s4 + $0x60] ss:$16 sps:$4 sm:$0xff]  }
 0xfb0   : > { %4771 = vmatpush3.bf16.msra.mxu0 %v2813_v24  ;;  %v4919_v24 = vld [vmem:[%s5340_s4 + $0x84] ss:$16 sps:$4 sm:$0xff]  }
 0xfb1   : > { %4776 = vmatprep.subr.bf16.mxu0 %v5698_v57 }
 0xfb3   : > { %4773 = vmatmul.mubr.msk.bf16.vlgmr.msra.gmra.mrb[60].mxu0 %vm1158_vm4, %v2800_v48  ;;  %v4922_v48 = vld [vmem:[%s5340_s4 + $0x8c] ss:$16 sps:$4 sm:$0xff]  }
 0xfb4   : > { %4777 = vmatpush3.bf16.msra.mxu0 %v5698_v57 }
 0xfb5   : > { %4778 = vmatprep.subr.bf16.mxu0 %v5703_v60 }
 0xfb8   : > { %4779 = vmatpush3.bf16.msra.mxu0 %v5703_v60 }
 0xfb9   : > { %3313 = vmatprep.subr.bf16.mxu0 %v4898_v23 }
 0xfcf   : > { %v2944_v7 = vpop.xlane.xlu1 %2943 }
 0xfd0   : > { %v2955_v41 = vmul.f32 0.0078125, %v2944_v7 }
 0xfd2   : > { %v5910_v61 = vsub.f32 %v5881_v55, %v2955_v41 }
 0xfd4   : > { %v2967_v40 = vmul.f32 %v5910_v61, %v5910_v61 }
0x107e   : > { %v4758_v62 = vpop.f32.mrb[56].mxu0 }
0x107f   : > { %v2697_v29 = vadd.f32 %v4758_v62, %v5820_v38  ;;  %v2681_v27 = vpop.f32.mrb[57].mxu0  ;;  %v4893_v38 = vld [vmem:[%s5340_s4] ss:$16 sps:$4 sm:$0xff]  }
0x1080   : > { %v2695_v30 = vadd.f32 %v2681_v27, %v5823_v52  ;;  %v4759_v31 = vpop.f32.mrb[58].mxu0  ;;  %v4896_v52 = vld [vmem:[%s5340_s4 + $0x8] ss:$16 sps:$4 sm:$0xff]   ;;  %3251 = vmatpush1.bf16.msra.mxu1 %v4893_v38  ;;  %v4917_v62 = vld [vmem:[%s5340_s4 + $0x80] ss:$16 sps:$4 sm:$0xff]  }
0x1081   : > { %v2684_v32 = vpop.f32.mrb[59].mxu0  ;;  %3252 = vmatprep.subr.bf16.mxu1 %v4901_v59  ;;  %v4925_v27 = vld [vmem:[%s5340_s4 + $0xa4] ss:$16 sps:$4 sm:$0xff]   ;;  %v4923_v31 = vld [vmem:[%s5340_s4 + $0xa0] ss:$16 sps:$4 sm:$0xff]  }
0x1082   : > { %v2696_v20 = vadd.f32 %v2684_v32, %v5826_v4  ;;  %v2946_v4 = vpop.xlane.xlu0 %2945  ;;  %v4926_v32 = vld [vmem:[%s5340_s4 + $0xa8] ss:$16 sps:$4 sm:$0xff]  }
0x1083   : > { %v2956_v28 = vmul.f32 0.0078125, %v2946_v4  ;;  %v4938_v38 = vld [vmem:[%s5340_s4 + $0xe8] ss:$16 sps:$4 sm:$0xff]  }
0x1084   : > { %3253 = vmatpush1.bf16.msra.mxu1 %v4899_v5 }
0x1085   : > { %v5916_v19 = vsub.f32 %v5873_v50, %v2956_v28  ;;  %3254 = vmatprep.subr.bf16.mxu1 %v4907_v21  ;;  %v4943_v21 = vld [vmem:[%s5351_s13] sm:$0xff]  }
0x1086   : > { %v4774_v33 = vpop.f32.mrb[60].mxu0  ;;  %v2948_v44 = vpop.xlane.xlu0 %2947 }
0x1087   : > { %v2849_v57 = vpop.f32.mrb[61].mxu0  ;;  %v2864_v60 = vpack.c.bf16 %v4774_v33, %v4774_v33  ;;  %v2957_v39 = vmul.f32 0.0078125, %v2948_v44  ;;  %v2968_v58 = vmul.f32 %v5916_v19, %v5916_v19  ;;  %v4934_v33 = vld [vmem:[%s5340_s4 + $0xcc] ss:$16 sps:$4 sm:$0xff]  }
0x1088   : > { %v4775_v34 = vpop.f32.mrb[62].mxu0  ;;  %3255 = vmatpush1.bf16.msra.mxu1 %v4905_v11  ;;  %v4945_v11 = vld [vmem:[%s5351_s13 + $0x48] sm:$0xff]  }
0x1089   : > { %v2852_v35 = vpop.f32.mrb[63].mxu0  ;;  %v5922_v25 = vsub.f32 %v5878_v54, %v2957_v39  ;;  %3256 = vmatprep.subr.bf16.mxu1 %v4913_v1  ;;  %v4932_v34 = vld [vmem:[%s5340_s4 + $0xc8] ss:$16 sps:$4 sm:$0xff]   ;;  %v5979_v39 = vld [vmem:[%s6217_s15] ss:$0 sm:$0xff] }
0x108a   : > { %v2863_v56 = vpack.c.bf16 %v2852_v35, %v2849_v57  ;;  %v4929_v57 = vld [vmem:[%s5340_s4 + $0xc0] ss:$16 sps:$4 sm:$0xff]   ;;  %v4937_v35 = vld [vmem:[%s5340_s4 + $0xe4] ss:$16 sps:$4 sm:$0xff]   ;;  %v4947_v1 = vld [vmem:[%s5351_s13 + $0x8] sm:$0xff]  }
0x108b   : > { %v2969_v6 = vmul.f32 %v5922_v25, %v5922_v25 }
0x108c   : > { %4780 = vmatprep.mubr.msk.bf16.mxu0 %vm1097_vm1, %v2863_v56  ;;  %3257 = vmatpush1.bf16.msra.mxu1 %v4911_v36  ;;  %v4940_v56 = vld [vmem:[%s5340_s4 + $0xec] ss:$16 sps:$4 sm:$0xff]   ;;  %v4949_v36 = vld [vmem:[%s5351_s13 + $0x50] sm:$0xff]  }
0x108d   : > { %4781 = vmatmul.mubr.msk.bf16.vlgmr.msra.gmra.mrb[64].mxu0 %vm1097_vm1, %v2864_v60  ;;  %3258 = vmatprep.subr.bf16.mxu1 %v4919_v24  ;;  %v4935_v60 = vld [vmem:[%s5340_s4 + $0xe0] ss:$16 sps:$4 sm:$0xff]  }
0x108e   : > { %3345 = vmatprep.mubr.bf16.mxu0 %v5196_v53  ;;  %3314 = vmatpush1.bf16.msra.mxu0 %v4896_v52  ;;  %v4951_v24 = vld [vmem:[%s5351_s13 + $0x10] sm:$0xff]  }
0x108f   : > { %3315 = vmatprep.subr.bf16.mxu0 %v4904_v63 }
0x1090   : > { %3259 = vmatpush1.bf16.msra.mxu1 %v4917_v62  ;;  %v4953_v62 = vld [vmem:[%s5351_s13 + $0x58] sm:$0xff]  }
0x1091   : > { %3260 = vmatprep.subr.bf16.mxu1 %v4925_v27  ;;  %v4955_v27 = vld [vmem:[%s5351_s13 + $0x18] sm:$0xff]  }
0x1092   : > { %3316 = vmatpush1.bf16.msra.mxu0 %v4902_v15  ;;  %v4942_v15 = vld [vmem:[%s5351_s13 + $0xc0] sm:$0xff]  }
0x1093   : > { %3317 = vmatprep.subr.bf16.mxu0 %v4910_v9  ;;  %v4944_v9 = vld [vmem:[%s5351_s13 + $0x80] sm:$0xff]  }
0x1094   : > { %3261 = vmatpush1.bf16.msra.mxu1 %v4923_v31  ;;  %v4957_v31 = vld [vmem:[%s5351_s13 + $0x60] sm:$0xff]  }
0x1096   : > { %3318 = vmatpush1.bf16.msra.mxu0 %v4908_v13  ;;  %v4946_v13 = vld [vmem:[%s5351_s13 + $0xc8] sm:$0xff]  }
0x1097   : > { %3319 = vmatprep.subr.bf16.mxu0 %v4916_v17  ;;  %v4948_v17 = vld [vmem:[%s5351_s13 + $0x88] sm:$0xff]  }
0x109a   : > { %3320 = vmatpush1.bf16.msra.mxu0 %v4914_v51  ;;  %v4950_v51 = vld [vmem:[%s5351_s13 + $0xd0] sm:$0xff]  }
0x109b   : > { %3321 = vmatprep.subr.bf16.mxu0 %v4922_v48  ;;  %v4952_v48 = vld [vmem:[%s5351_s13 + $0x90] sm:$0xff]  }
0x1160   : > { %v4782_v10 = vpop.f32.mrb[64].mxu0 }
0x1161   : > { %v2921_v0 = vadd.f32 %v4782_v10, %v2697_v29  ;;  %v2905_v14 = vpop.f32.mrb[65].mxu0  ;;  %v4920_v29 = vld [vmem:[%s5340_s4 + $0x88] ss:$16 sps:$4 sm:$0xff]  }
0x1162   : > { %v2919_v18 = vadd.f32 %v2905_v14, %v2695_v30  ;;  %v4783_v8 = vpop.f32.mrb[66].mxu0  ;;  %3322 = vmatpush1.bf16.msra.mxu0 %v4920_v29  ;;  %v4928_v30 = vld [vmem:[%s5340_s4 + $0xac] ss:$16 sps:$4 sm:$0xff]  }
0x1163   : > { %v2908_v22 = vpop.f32.mrb[67].mxu0  ;;  %v2934_v43 = vadd.f32 %v5867_v47, %v2921_v0  ;;  %3323 = vmatprep.subr.bf16.mxu0 %v4928_v30  ;;  %v4954_v29 = vld [vmem:[%s5351_s13 + $0xd8] sm:$0xff]  }
0x1164   : > { %v2932_v42 = vadd.f32 %v5867_v47, %v2919_v18  ;;  %v2920_v46 = vadd.f32 %v2908_v22, %v2696_v20  ;;  %v4931_v20 = vld [vmem:[%s5340_s4 + $0xc4] ss:$16 sps:$4 sm:$0xff]   ;;  %v4956_v30 = vld [vmem:[%s5351_s13 + $0x98] sm:$0xff]  }
0x1165   : > { %3262 = vmatprep.subr.bf16.mxu1 %v4931_v20  ;;  %v4959_v20 = vld [vmem:[%s5351_s13 + $0x20] sm:$0xff]  }
0x1166   : > { %v2933_v45 = vadd.f32 %v5867_v47, %v2920_v46  ;;  %v5907_v49 = vadd.f32 %v5144_v12, %v2932_v42  ;;  %v5146_v47 = vld [vmem:[#allocation2 + $0x28] sm:$0xff]  ;;  %3324 = vmatpush1.bf16.msra.mxu0 %v4926_v32  ;;  %3263 = vmatpush1.bf16.msra.mxu1 %v4929_v57  ;;  %v4958_v32 = vld [vmem:[%s5351_s13 + $0xe0] sm:$0xff]  }
0x1167   : > { %v5919_v3 = vadd.f32 %v5146_v47, %v2934_v43  ;;  %3325 = vmatprep.subr.bf16.mxu0 %v4934_v33  ;;  %3264 = vmatprep.subr.bf16.mxu1 %v4937_v35  ;;  %v4960_v33 = vld [vmem:[%s5351_s13 + $0xa0] sm:$0xff]   ;;  %v4961_v57 = vld [vmem:[%s5351_s13 + $0x68] sm:$0xff]  }
0x1168   : > { %2949 = vadd.xlane.f32.xlu1 %v5907_v49  ;;  %v5913_v37 = vadd.f32 %v5145_v2, %v2933_v45  ;;  %v4963_v35 = vld [vmem:[%s5351_s13 + $0x28] sm:$0xff]  }
0x116a   : > { %2951 = vadd.xlane.f32.xlu0 %v5913_v37  ;;  %3326 = vmatpush1.bf16.msra.mxu0 %v4932_v34  ;;  %v4962_v34 = vld [vmem:[%s5351_s13 + $0xe8] sm:$0xff]  }
0x116b   : > { %3327 = vmatprep.subr.bf16.mxu0 %v4940_v56  ;;  %3265 = vmatpush1.bf16.msra.mxu1 %v4935_v60  ;;  %v4964_v56 = vld [vmem:[%s5351_s13 + $0xa8] sm:$0xff]   ;;  %v4965_v60 = vld [vmem:[%s5351_s13 + $0x70] sm:$0xff]  }
0x116c   : > { %2953 = vadd.xlane.f32.xlu1 %v5919_v3 }
0x116e   : > { %2973 = vadd.xlane.f32.xlu0 %v2967_v40  ;;  %3328 = vmatpush1.bf16.msra.mxu0 %v4938_v38  ;;  %v4966_v38 = vld [vmem:[%s5351_s13 + $0xf0] sm:$0xff]  }
0x116f   : > { %4521 = vmatprep.subr.bf16.mxu0 %v4942_v15 }
0x1170   : > { %2975 = vadd.xlane.f32.xlu1 %v2968_v58 }
0x1172   : > { %2977 = vadd.xlane.f32.xlu0 %v2969_v6  ;;  %v5989_v6 = vld [vmem:[%s6218_s25] ss:$0 sm:$0xff] }
0x11f5   : > { %v2950_v16 = vpop.xlane.xlu1 %2949 }
0x11f6   : > { %v2958_v52 = vmul.f32 0.0078125, %v2950_v16 }
0x11f7   : > { %v2952_v23 = vpop.xlane.xlu0 %2951 }
0x11f8   : > { %v5960_v4 = vsub.f32 %v5907_v49, %v2958_v52  ;;  %v2959_v10 = vmul.f32 0.0078125, %v2952_v23  ;;  %v4967_v52 = vld [vmem:[%s5351_s13 + $0x30] sm:$0xff]  }
0x11f9   : > { %v2954_v7 = vpop.xlane.xlu1 %2953  ;;  %v4968_v23 = vld [vmem:[%s5351_s13 + $0xb0] sm:$0xff]  }
0x11fa   : > { %v5963_v0 = vsub.f32 %v5913_v37, %v2959_v10  ;;  %v2960_v14 = vmul.f32 0.0078125, %v2954_v7  ;;  %v2970_v18 = vmul.f32 %v5960_v4, %v5960_v4  ;;  %v4969_v7 = vld [vmem:[%s5351_s13 + $0x78] sm:$0xff]  }
0x11fb   : > { %v2974_v8 = vpop.xlane.xlu0 %2973 }
0x11fc   : > { %v5968_v22 = vsub.f32 %v5919_v3, %v2960_v14  ;;  %v2985_v41 = vmul.f32 0.0078125, %v2974_v8  ;;  %2979 = vadd.xlane.f32.xlu1 %v2970_v18  ;;  %v2971_v42 = vmul.f32 %v5963_v0, %v5963_v0  ;;  %v4970_v14 = vld [vmem:[%s5351_s13 + $0xf8] sm:$0xff]  }
0x11fd   : > { %v2976_v46 = vpop.xlane.xlu1 %2975  ;;  %v4971_v18 = vld [vmem:[%s5351_s13 + $0x38] sm:$0xff]  }
0x11fe   : > { %v2991_v44 = vadd.f32 1e-05, %v2985_v41  ;;  %v2986_v28 = vmul.f32 0.0078125, %v2976_v46  ;;  %2981 = vadd.xlane.f32.xlu0 %v2971_v42  ;;  %v2972_v43 = vmul.f32 %v5968_v22, %v5968_v22  ;;  %v4972_v8 = vld [vmem:[%s5351_s13 + $0xb8] sm:$0xff]  }
0x11ff   : > { %v2978_v16 = vpop.xlane.xlu0 %2977 }
0x1200   : > { %5081 = vrsqrt.f32 %v2991_v44  ;;  %v2992_v45 = vadd.f32 1e-05, %v2986_v28  ;;  %2983 = vadd.xlane.f32.xlu1 %v2972_v43  ;;  %v2987_v10 = vmul.f32 0.0078125, %v2978_v16 }
0x1202   : > { %5083 = vrsqrt.f32 %v2992_v45  ;;  %v2993_v41 = vadd.f32 1e-05, %v2987_v10 }
0x1204   : > { %5085 = vrsqrt.f32 %v2993_v41 }
0x120a   : > { %v5082_v12 = vpop.eup %5081 }
0x120b   : > { %v3003_v2 = vmul.f32 %v5082_v12, %v5910_v61 }
0x120c   : > { %v5084_v47 = vpop.eup %5083 }
0x120d   : > { %v3004_v40 = vmul.f32 %v5084_v47, %v5916_v19  ;;  %v3015_v58 = vmul.f32 %v5979_v39, %v3003_v2  ;;  %v4941_v19 = vld [vmem:[%s5351_s13 + $0x40] sm:$0xff]  }
0x120e   : > { %4487 = vmatprep.subr.bf16.mxu1 %v4941_v19 }
0x120f   : > { %v3016_v59 = vmul.f32 %v5979_v39, %v3004_v40  ;;  %v3027_v63 = vadd.f32 %v5989_v6, %v3015_v58  ;;  %v5086_v40 = vpop.eup %5085 }
0x1210   : > { %v3005_v58 = vmul.f32 %v5086_v40, %v5922_v25 }
0x1211   : > { %v3028_v61 = vadd.f32 %v5989_v6, %v3016_v59 }
0x1213   : > { %v3033_v5 = vpack.c.bf16 %v3028_v61, %v3027_v63  ;;  %v3017_v61 = vmul.f32 %v5979_v39, %v3005_v58 }
0x1215   : > { %3283 = vmatmul.mubr.bf16.vlgmr.msra.gmra.mrb[52].mxu1 %v3033_v5  ;;  %3346 = vmatmul.mubr.bf16.vlgmr.msra.gmra.mrb[68].mxu0 %v3033_v5 }
0x1216   : > { %3292 = vmatprep.mubr.bf16.mxu1 %v5196_v53  ;;  %3355 = vmatprep.mubr.bf16.mxu0 %v5196_v53 }
0x1217   : > { %4488 = vmatpush3.bf16.msra.mxu1 %v4943_v21  ;;  %4522 = vmatpush3.bf16.msra.mxu0 %v4944_v9  ;;  %v3029_v21 = vadd.f32 %v5989_v6, %v3017_v61 }
0x1218   : > { %4489 = vmatprep.subr.bf16.mxu1 %v4945_v11  ;;  %4523 = vmatprep.subr.bf16.mxu0 %v4946_v13 }
0x121b   : > { %4490 = vmatpush3.bf16.msra.mxu1 %v4947_v1  ;;  %4524 = vmatpush3.bf16.msra.mxu0 %v4948_v17 }
0x121c   : > { %4491 = vmatprep.subr.bf16.mxu1 %v4949_v36  ;;  %4525 = vmatprep.subr.bf16.mxu0 %v4950_v51 }
0x121f   : > { %4492 = vmatpush3.bf16.msra.mxu1 %v4951_v24  ;;  %4526 = vmatpush3.bf16.msra.mxu0 %v4952_v48  ;;  %v3068_v48 = vld [vmem:[%s5346_s16] sm:$0xf] }
0x1220   : > { %4493 = vmatprep.subr.bf16.mxu1 %v4953_v62  ;;  %4527 = vmatprep.subr.bf16.mxu0 %v4954_v29 }
0x1223   : > { %4494 = vmatpush3.bf16.msra.mxu1 %v4955_v27  ;;  %4528 = vmatpush3.bf16.msra.mxu0 %v4956_v30 }
0x1224   : > { %4495 = vmatprep.subr.bf16.mxu1 %v4957_v31  ;;  %4529 = vmatprep.subr.bf16.mxu0 %v4958_v32 }
0x1227   : > { %4496 = vmatpush3.bf16.msra.mxu1 %v4959_v20  ;;  %4530 = vmatpush3.bf16.msra.mxu0 %v4960_v33 }
0x1228   : > { %4497 = vmatprep.subr.bf16.mxu1 %v4961_v57  ;;  %4531 = vmatprep.subr.bf16.mxu0 %v4962_v34 }
0x122b   : > { %4498 = vmatpush3.bf16.msra.mxu1 %v4963_v35  ;;  %4532 = vmatpush3.bf16.msra.mxu0 %v4964_v56 }
0x122c   : > { %4499 = vmatprep.subr.bf16.mxu1 %v4965_v60  ;;  %4533 = vmatprep.subr.bf16.mxu0 %v4966_v38 }
0x122f   : > { %4500 = vmatpush3.bf16.msra.mxu1 %v4967_v52  ;;  %4534 = vmatpush3.bf16.msra.mxu0 %v4968_v23 }
0x1230   : > { %4501 = vmatprep.subr.bf16.mxu1 %v4969_v7  ;;  %4535 = vmatprep.subr.bf16.mxu0 %v4970_v14 }
0x1233   : > { %4502 = vmatpush3.bf16.msra.mxu1 %v4971_v18  ;;  %4536 = vmatpush3.bf16.msra.mxu0 %v4972_v8 }
0x1289   : > { %v2980_v42 = vpop.xlane.xlu1 %2979 }
0x128a   : > { %v2988_v46 = vmul.f32 0.0078125, %v2980_v42 }
0x128b   : > { %v2982_v44 = vpop.xlane.xlu0 %2981 }
0x128c   : > { %v2994_v28 = vadd.f32 1e-05, %v2988_v46  ;;  %v2989_v43 = vmul.f32 0.0078125, %v2982_v44 }
0x128d   : > { %v2984_v45 = vpop.xlane.xlu1 %2983 }
0x128e   : > { %5087 = vrsqrt.f32 %v2994_v28  ;;  %v2995_v12 = vadd.f32 1e-05, %v2989_v43  ;;  %v2990_v2 = vmul.f32 0.0078125, %v2984_v45 }
0x1290   : > { %5089 = vrsqrt.f32 %v2995_v12  ;;  %v2996_v47 = vadd.f32 1e-05, %v2990_v2 }
0x1292   : > { %5091 = vrsqrt.f32 %v2996_v47 }
0x1298   : > { %v5088_v59 = vpop.eup %5087 }
0x1299   : > { %v3006_v63 = vmul.f32 %v5088_v59, %v5960_v4 }
0x129a   : > { %v5090_v5 = vpop.eup %5089 }
0x129b   : > { %v3018_v19 = vmul.f32 %v5979_v39, %v3006_v63  ;;  %v3007_v11 = vmul.f32 %v5090_v5, %v5963_v0  ;;  %v3071_v0 = vshrl.u32 %v1077_v26, 7 }
0x129c   : > { %v5092_v15 = vpop.eup %5091 }
0x129d   : > { %v3030_v9 = vadd.f32 %v5989_v6, %v3018_v19  ;;  %v3008_v13 = vmul.f32 %v5092_v15, %v5968_v22  ;;  %v3019_v4 = vmul.f32 %v5979_v39, %v3007_v11  ;;  %v3072_v22 = vsub.s32 0, %v3071_v0 }
0x129e   : > { %v3080_v24 = vsub.s32 2, %v3071_v0  ;;  %v3076_v62 = vsub.s32 1, %v3071_v0  ;;  %v3084_v29 = vsub.s32 3, %v3071_v0 }
0x129f   : > { %v3034_v1 = vpack.c.bf16 %v3030_v9, %v3029_v21  ;;  %v3020_v25 = vmul.f32 %v5979_v39, %v3008_v13  ;;  %v3031_v36 = vadd.f32 %v5989_v6, %v3019_v4  ;;  %v6044_v27 = vrot.slane %v3068_v48, %v3072_v22 }
0x12a0   : > { %v6046_v39 = vrot.slane %v3068_v48, %v3080_v24  ;;  %v6048_v30 = vrot.slane %v3068_v48, %v3076_v62 }
0x12a1   : > { %3293 = vmatmul.mubr.bf16.gmra.mrb[56].mxu1 %v3034_v1  ;;  %3356 = vmatmul.mubr.bf16.gmra.mrb[72].mxu0 %v3034_v1  ;;  %v3032_v17 = vadd.f32 %v5989_v6, %v3020_v25 }
0x12a2   : > { %3302 = vmatprep.mubr.bf16.mxu1 %v5196_v53  ;;  %3365 = vmatprep.mubr.bf16.mxu0 %v5196_v53  ;;  %v6050_v53 = vrot.slane %v3068_v48, %v3084_v29 }
0x12a3   : > { %v3035_v51 = vpack.c.bf16 %v3032_v17, %v3031_v36 }
0x12a9   : > { %3303 = vmatmul.mubr.bf16.gmra.mrb[60].mxu1 %v3035_v51  ;;  %3366 = vmatmul.mubr.bf16.gmra.mrb[76].mxu0 %v3035_v51 }
0x12e8   : > { %v3284_v31 = vpop.f32.mrb[52].mxu1  ;;  %v3347_v6 = vpop.f32.mrb[68].mxu0 }
0x12e9   : > { %v3285_v32 = vadd.f32 %v3284_v31, %v6044_v27  ;;  %v3348_v20 = vadd.f32 %v3347_v6, %v6046_v39  ;;  %v3286_v26 = vpop.f32.mrb[53].mxu1  ;;  %v3349_v33 = vpop.f32.mrb[69].mxu0 }
0x12ea   : > { %v3287_v57 = vadd.f32 %v3286_v26, %v6048_v30  ;;  %v3350_v34 = vadd.f32 %v3349_v33, %v6050_v53  ;;  %v3288_v35 = vpop.f32.mrb[54].mxu1  ;;  %v3351_v56 = vpop.f32.mrb[70].mxu0 }
0x12eb   : > { %v3400_v60 = vmul.f32 0.70710677, %v3285_v32  ;;  %v3402_v38 = vmul.f32 0.70710677, %v3348_v20  ;;  %v3289_v23 = vadd.f32 %v3288_v35, %v6044_v27  ;;  %v3352_v10 = vadd.f32 %v3351_v56, %v6046_v39  ;;  %v3290_v7 = vpop.f32.mrb[55].mxu1  ;;  %v3353_v14 = vpop.f32.mrb[71].mxu0 }
0x12ec   : > { %v3401_v16 = vmul.f32 0.70710677, %v3287_v57  ;;  %v3403_v52 = vmul.f32 0.70710677, %v3350_v34  ;;  %v3291_v18 = vadd.f32 %v3290_v7, %v6048_v30  ;;  %v3354_v8 = vadd.f32 %v3353_v14, %v6050_v53 }
0x12ed   : > { %5093 = verf.f32 %v3400_v60  ;;  %v3404_v41 = vmul.f32 0.70710677, %v3289_v23  ;;  %v3406_v42 = vmul.f32 0.70710677, %v3352_v10  ;;  %v3376_v40 = vmul.f32 0.5, %v3285_v32 }
0x12ee   : > { %5095 = verf.f32 %v3402_v38  ;;  %v3405_v46 = vmul.f32 0.70710677, %v3291_v18  ;;  %v3407_v44 = vmul.f32 0.70710677, %v3354_v8  ;;  %v3378_v58 = vmul.f32 0.5, %v3348_v20 }
0x12ef   : > { %5097 = verf.f32 %v3401_v16  ;;  %v3377_v61 = vmul.f32 0.5, %v3287_v57  ;;  %v3380_v19 = vmul.f32 0.5, %v3289_v23  ;;  %v3379_v9 = vmul.f32 0.5, %v3350_v34 }
0x12f0   : > { %5099 = verf.f32 %v3403_v52  ;;  %v3382_v13 = vmul.f32 0.5, %v3352_v10  ;;  %v3381_v36 = vmul.f32 0.5, %v3291_v18  ;;  %v3383_v24 = vmul.f32 0.5, %v3354_v8 }
0x12f1   : > { %5101 = verf.f32 %v3404_v41 }
0x12f2   : > { %5103 = verf.f32 %v3406_v42 }
0x12f3   : > { %5105 = verf.f32 %v3405_v46 }
0x12f4   : > { %5107 = verf.f32 %v3407_v44 }
0x12f7   : > { %v5094_v28 = vpop.eup %5093 }
0x12f8   : > { %v5096_v43 = vpop.eup %5095  ;;  %v3448_v2 = vadd.f32 1.0, %v5094_v28 }
0x12f9   : > { %v5098_v45 = vpop.eup %5097  ;;  %v3450_v59 = vadd.f32 1.0, %v5096_v43 }
0x12fa   : > { %v5100_v12 = vpop.eup %5099  ;;  %v3449_v5 = vadd.f32 1.0, %v5098_v45  ;;  %v3472_v4 = vmul.f32 %v3448_v2, %v3376_v40 }
0x12fb   : > { %v5102_v47 = vpop.eup %5101  ;;  %v3451_v11 = vadd.f32 1.0, %v5100_v12  ;;  %v3474_v0 = vmul.f32 %v3450_v59, %v3378_v58 }
0x12fc   : > { %v5104_v63 = vpop.eup %5103  ;;  %v3452_v15 = vadd.f32 1.0, %v5102_v47  ;;  %v3473_v62 = vmul.f32 %v3449_v5, %v3377_v61 }
0x12fd   : > { %v5106_v21 = vpop.eup %5105  ;;  %v3454_v1 = vadd.f32 1.0, %v5104_v63  ;;  %v3475_v6 = vmul.f32 %v3451_v11, %v3379_v9 }
0x12fe   : > { %v5108_v25 = vpop.eup %5107  ;;  %v3476_v17 = vmul.f32 %v3452_v15, %v3380_v19  ;;  %v3453_v51 = vadd.f32 1.0, %v5106_v21 }
0x12ff   : > { %v3478_v22 = vmul.f32 %v3454_v1, %v3382_v13  ;;  %v3455_v48 = vadd.f32 1.0, %v5108_v25 }
0x1300   : > { %v3496_v29 = vpack.c.bf16 %v3476_v17, %v3472_v4  ;;  %v3477_v31 = vmul.f32 %v3453_v51, %v3381_v36 }
0x1301   : > { %v3498_v32 = vpack.c.bf16 %v3478_v22, %v3474_v0  ;;  %v3479_v20 = vmul.f32 %v3455_v48, %v3383_v24 }
0x1302   : > { %v3497_v26 = vpack.c.bf16 %v3477_v31, %v3473_v62 }
0x1303   : > { %v3499_v33 = vpack.c.bf16 %v3479_v20, %v3475_v6 }
0x1304   : > { %3803 = vmatprep.mubr.bf16.mxu1 %v3497_v26 }
0x1305   : > { %3860 = vmatprep.mubr.bf16.mxu0 %v3499_v33  ;;  %3804 = vmatmul.mubr.bf16.vlgmr.msra.gmra.mrb[64].mxu1 %v3496_v29 }
0x1306   : > { %3861 = vmatmul.mubr.bf16.vlgmr.msra.gmra.mrb[80].mxu0 %v3498_v32 }
0x1374   : > { %v3294_v57 = vpop.f32.mrb[56].mxu1  ;;  %v3357_v34 = vpop.f32.mrb[72].mxu0 }
0x1375   : > { %v3295_v35 = vadd.f32 %v3294_v57, %v6044_v27  ;;  %v3358_v56 = vadd.f32 %v3357_v34, %v6046_v39  ;;  %v3296_v60 = vpop.f32.mrb[57].mxu1  ;;  %v3359_v38 = vpop.f32.mrb[73].mxu0 }
0x1376   : > { %v3297_v16 = vadd.f32 %v3296_v60, %v6048_v30  ;;  %v3360_v52 = vadd.f32 %v3359_v38, %v6050_v53  ;;  %v3298_v23 = vpop.f32.mrb[58].mxu1  ;;  %v3361_v10 = vpop.f32.mrb[74].mxu0 }
0x1377   : > { %v3408_v7 = vmul.f32 0.70710677, %v3295_v35  ;;  %v3410_v14 = vmul.f32 0.70710677, %v3358_v56  ;;  %v3299_v41 = vadd.f32 %v3298_v23, %v6044_v27  ;;  %v6066_v42 = vadd.f32 %v3361_v10, %v6046_v39  ;;  %v3300_v46 = vpop.f32.mrb[59].mxu1  ;;  %v3363_v44 = vpop.f32.mrb[75].mxu0 }
0x1378   : > { %v3409_v18 = vmul.f32 0.70710677, %v3297_v16  ;;  %v3411_v8 = vmul.f32 0.70710677, %v3360_v52  ;;  %v3301_v28 = vadd.f32 %v3300_v46, %v6048_v30  ;;  %v6070_v43 = vadd.f32 %v3363_v44, %v6050_v53 }
0x1379   : > { %5109 = verf.f32 %v3408_v7  ;;  %v3412_v45 = vmul.f32 0.70710677, %v3299_v41  ;;  %v3414_v12 = vmul.f32 0.70710677, %v6066_v42  ;;  %v3384_v31 = vmul.f32 0.5, %v3295_v35 }
0x137a   : > { %5111 = verf.f32 %v3410_v14  ;;  %v3413_v2 = vmul.f32 0.70710677, %v3301_v28  ;;  %v3415_v40 = vmul.f32 0.70710677, %v6070_v43  ;;  %v3386_v6 = vmul.f32 0.5, %v3358_v56 }
0x137b   : > { %5113 = verf.f32 %v3409_v18  ;;  %v3385_v20 = vmul.f32 0.5, %v3297_v16  ;;  %v3387_v57 = vmul.f32 0.5, %v3360_v52  ;;  %v3388_v34 = vmul.f32 0.5, %v3299_v41 }
0x137c   : > { %5115 = verf.f32 %v3411_v8  ;;  %v3304_v47 = vpop.f32.mrb[60].mxu1  ;;  %v3367_v59 = vpop.f32.mrb[76].mxu0  ;;  %v3390_v10 = vmul.f32 0.5, %v6066_v42  ;;  %v3389_v16 = vmul.f32 0.5, %v3301_v28  ;;  %v3391_v44 = vmul.f32 0.5, %v6070_v43 }
0x137d   : > { %5117 = verf.f32 %v3412_v45  ;;  %v6075_v58 = vadd.f32 %v3304_v47, %v6044_v27  ;;  %v3306_v63 = vpop.f32.mrb[61].mxu1  ;;  %v6078_v61 = vadd.f32 %v3367_v59, %v6046_v39  ;;  %v3369_v19 = vpop.f32.mrb[77].mxu0 }
0x137e   : > { %5119 = verf.f32 %v3414_v12  ;;  %v6081_v5 = vadd.f32 %v3306_v63, %v6048_v30  ;;  %v3308_v15 = vpop.f32.mrb[62].mxu1  ;;  %v6085_v9 = vadd.f32 %v3369_v19, %v6050_v53  ;;  %v3371_v11 = vpop.f32.mrb[78].mxu0 }
0x137f   : > { %5121 = verf.f32 %v3413_v2  ;;  %v3416_v21 = vmul.f32 0.70710677, %v6075_v58  ;;  %v3310_v13 = vpop.f32.mrb[63].mxu1  ;;  %v3418_v1 = vmul.f32 0.70710677, %v6078_v61  ;;  %v3373_v25 = vpop.f32.mrb[79].mxu0  ;;  %v3309_v36 = vadd.f32 %v3308_v15, %v6044_v27 }
0x1380   : > { %5123 = verf.f32 %v3415_v40  ;;  %v3417_v4 = vmul.f32 0.70710677, %v6081_v5  ;;  %v3419_v17 = vmul.f32 0.70710677, %v6085_v9  ;;  %v6092_v51 = vadd.f32 %v3371_v11, %v6046_v39 }
0x1381   : > { %5125 = verf.f32 %v3416_v21  ;;  %v6095_v0 = vadd.f32 %v3310_v13, %v6048_v30  ;;  %v3420_v48 = vmul.f32 0.70710677, %v3309_v36  ;;  %v6098_v62 = vadd.f32 %v3373_v25, %v6050_v53 }
0x1382   : > { %5127 = verf.f32 %v3418_v1  ;;  %v3422_v27 = vmul.f32 0.70710677, %v6092_v51  ;;  %v3392_v25 = vmul.f32 0.5, %v6075_v58 }
0x1383   : > { %v5110_v22 = vpop.eup %5109  ;;  %5129 = verf.f32 %v3417_v4  ;;  %v3421_v30 = vmul.f32 0.70710677, %v6095_v0  ;;  %v3423_v35 = vmul.f32 0.70710677, %v6098_v62 }
0x1384   : > { %v5112_v24 = vpop.eup %5111  ;;  %5131 = verf.f32 %v3419_v17  ;;  %v3456_v39 = vadd.f32 1.0, %v5110_v22  ;;  %v3394_v17 = vmul.f32 0.5, %v6078_v61 }
0x1385   : > { %v5114_v29 = vpop.eup %5113  ;;  %5133 = verf.f32 %v3420_v48  ;;  %v3458_v33 = vadd.f32 1.0, %v5112_v24  ;;  %v3396_v24 = vmul.f32 0.5, %v3309_v36  ;;  %v3395_v36 = vmul.f32 0.5, %v6085_v9  ;;  %v4328_v9 = vld [vmem:[%s668_s28] ss:$0 sm:$0xff] }
0x1386   : > { %v5116_v32 = vpop.eup %5115  ;;  %5135 = verf.f32 %v3422_v27  ;;  %v3457_v53 = vadd.f32 1.0, %v5114_v29  ;;  %v3480_v18 = vmul.f32 %v3456_v39, %v3384_v31  ;;  %v3393_v31 = vmul.f32 0.5, %v6081_v5 }
0x1387   : > { %v5118_v26 = vpop.eup %5117  ;;  %5137 = verf.f32 %v3421_v30  ;;  %v3459_v23 = vadd.f32 1.0, %v5116_v32  ;;  %v3482_v52 = vmul.f32 %v3458_v33, %v3386_v6  ;;  %v3398_v6 = vmul.f32 0.5, %v6092_v51 }
0x1388   : > { %v5120_v60 = vpop.eup %5119  ;;  %v3460_v38 = vadd.f32 1.0, %v5118_v26  ;;  %5139 = verf.f32 %v3423_v35  ;;  %v3481_v2 = vmul.f32 %v3457_v53, %v3385_v20  ;;  %v3397_v32 = vmul.f32 0.5, %v6095_v0 }
0x1389   : > { %v5122_v56 = vpop.eup %5121  ;;  %v3462_v7 = vadd.f32 1.0, %v5120_v60  ;;  %v3483_v63 = vmul.f32 %v3459_v23, %v3387_v57  ;;  %v3399_v57 = vmul.f32 0.5, %v6098_v62 }
0x138a   : > { %v5124_v14 = vpop.eup %5123  ;;  %v3484_v8 = vmul.f32 %v3460_v38, %v3388_v34  ;;  %v3461_v46 = vadd.f32 1.0, %v5122_v56 }
0x138b   : > { %v3486_v41 = vmul.f32 %v3462_v7, %v3390_v10  ;;  %v3463_v45 = vadd.f32 1.0, %v5124_v14  ;;  %v5126_v12 = vpop.eup %5125 }
0x138c   : > { %v3485_v47 = vmul.f32 %v3461_v46, %v3389_v16  ;;  %v3500_v40 = vpack.c.bf16 %v3484_v8, %v3480_v18  ;;  %v5128_v59 = vpop.eup %5127  ;;  %v3464_v11 = vadd.f32 1.0, %v5126_v12 }
0x138d   : > { %v3487_v19 = vmul.f32 %v3463_v45, %v3391_v44  ;;  %v3502_v42 = vpack.c.bf16 %v3486_v41, %v3482_v52  ;;  %v5130_v15 = vpop.eup %5129  ;;  %v3466_v4 = vadd.f32 1.0, %v5128_v59 }
0x138e   : > { %v3501_v28 = vpack.c.bf16 %v3485_v47, %v3481_v2  ;;  %v5132_v21 = vpop.eup %5131  ;;  %v3465_v22 = vadd.f32 1.0, %v5130_v15  ;;  %v3488_v58 = vmul.f32 %v3464_v11, %v3392_v25 }
0x138f   : > { %v3503_v13 = vpack.c.bf16 %v3487_v19, %v3483_v63  ;;  %v5134_v1 = vpop.eup %5133  ;;  %v3467_v39 = vadd.f32 1.0, %v5132_v21  ;;  %v3490_v61 = vmul.f32 %v3466_v4, %v3394_v17 }
0x1390   : > { %3811 = vmatprep.mubr.bf16.mxu1 %v3501_v28  ;;  %v5136_v43 = vpop.eup %5135  ;;  %v3468_v48 = vadd.f32 1.0, %v5134_v1  ;;  %v3489_v34 = vmul.f32 %v3465_v22, %v3393_v31 }
0x1391   : > { %3868 = vmatprep.mubr.bf16.mxu0 %v3503_v13  ;;  %3812 = vmatmul.mubr.bf16.gmra.mrb[68].mxu1 %v3500_v40  ;;  %v5138_v29 = vpop.eup %5137  ;;  %v3470_v27 = vadd.f32 1.0, %v5136_v43  ;;  %v3491_v38 = vmul.f32 %v3467_v39, %v3395_v36 }
0x1392   : > { %3869 = vmatmul.mubr.bf16.gmra.mrb[84].mxu0 %v3502_v42  ;;  %v3492_v20 = vmul.f32 %v3468_v48, %v3396_v24  ;;  %v3469_v30 = vadd.f32 1.0, %v5138_v29  ;;  %v5140_v26 = vpop.eup %5139 }
0x1393   : > { %v3494_v33 = vmul.f32 %v3470_v27, %v3398_v6  ;;  %v3471_v60 = vadd.f32 1.0, %v5140_v26 }
0x1394   : > { %v3493_v5 = vmul.f32 %v3469_v30, %v3397_v32  ;;  %v3504_v51 = vpack.c.bf16 %v3492_v20, %v3488_v58 }
0x1395   : > { %v3506_v53 = vpack.c.bf16 %v3494_v33, %v3490_v61  ;;  %v3495_v0 = vmul.f32 %v3471_v60, %v3399_v57 }
0x1396   : > { %v3505_v35 = vpack.c.bf16 %v3493_v5, %v3489_v34 }
0x1397   : > { %v3507_v56 = vpack.c.bf16 %v3495_v0, %v3491_v38  ;;  %v5147_v38 = vld [vmem:[%s6199_s14] sm:$0xff] (!%p4361_p5)  }
0x1398   : > { %3819 = vmatprep.mubr.bf16.mxu1 %v3505_v35 }
0x1399   : > { %3820 = vmatmul.mubr.bf16.gmra.mrb[72].mxu1 %v3504_v51  ;;  %3876 = vmatprep.mubr.bf16.mxu0 %v3507_v56 }
0x139a   : > { %3877 = vmatmul.mubr.bf16.gmra.mrb[88].mxu0 %v3506_v53 }
0x13d8   : > { %v4503_v23 = vpop.f32.mrb[64].mxu1 }
0x13d9   : > { %v4537_v10 = vpop.f32.mrb[80].mxu0  ;;  %v4504_v62 = vpop.f32.mrb[65].mxu1 }
0x13da   : > { %v4505_v7 = vadd.f32 %v4504_v62, %v4503_v23  ;;  %v4538_v16 = vpop.f32.mrb[81].mxu0  ;;  %v4506_v14 = vpop.f32.mrb[66].mxu1  ;;  %v5150_v62 = vld [vmem:[%s6199_s14 + $0x18] sm:$0xff] (!%p4361_p5)  }
0x13db   : > { %v4539_v18 = vadd.f32 %v4538_v16, %v4537_v10  ;;  %v4540_v8 = vpop.f32.mrb[82].mxu0  ;;  %v4507_v46 = vpop.f32.mrb[67].mxu1  ;;  %v5152_v16 = vld [vmem:[%s6199_s14 + $0x28] sm:$0xff] (!%p4361_p5)  }
0x13dc   : > { %v3806_v52 = vadd.f32 %v4505_v7, %v4328_v9  ;;  %v4508_v41 = vadd.f32 %v4507_v46, %v4506_v14  ;;  %v4541_v44 = vpop.f32.mrb[83].mxu0  ;;  %v5151_v7 = vld [vmem:[%s6199_s14 + $0x20] sm:$0xff] (!%p4361_p5)   ;;  %v5153_v14 = vld [vmem:[%s6199_s14 + $0x30] sm:$0xff] (!%p4361_p5)  }
0x13dd   : > { %v4542_v45 = vadd.f32 %v4541_v44, %v4540_v8  ;;  %v4362_v44 = vld [vmem:[%s6219_s23] ss:$0 sm:$0xff] (!%p4361_p5) }
0x13de   : > { %v3863_v12 = vadd.f32 %v4539_v18, %v3806_v52  ;;  %v3809_v2 = vadd.f32 %v4508_v41, %v4328_v9  ;;  %v5154_v18 = vld [vmem:[%s6199_s14 + $0x38] sm:$0xff] (!%p4361_p5)  }
0x13e0   : > { %v3885_v47 = vadd.f32 %v3863_v12, %v5881_v55  ;;  %v3866_v40 = vadd.f32 %v4542_v45, %v3809_v2  ;;  %v4363_v12 = vld [vmem:[%s6220_s24] ss:$0 sm:$0xff] (!%p4361_p5) }
0x13e2   : > { %3891 = vst [vmem:[#allocation2] sm:$0xff] %v3885_v47  ;;  %v3886_v59 = vadd.f32 %v3866_v40, %v5873_v50 }
0x13e4   : > { %3892 = vst [vmem:[#allocation2 + $0x8] sm:$0xff] %v3886_v59  ;;  %v4364_v59 = vld [vmem:[%s6221_s30] ss:$0 sm:$0xff] (!%p4361_p5) }
0x1464   : > { %v4509_v63 = vpop.f32.mrb[68].mxu1 }
0x1465   : > { %v4543_v19 = vpop.f32.mrb[84].mxu0  ;;  %v4510_v42 = vpop.f32.mrb[69].mxu1 }
0x1466   : > { %v4511_v15 = vadd.f32 %v4510_v42, %v4509_v63  ;;  %v4544_v28 = vpop.f32.mrb[85].mxu0  ;;  %v4512_v21 = vpop.f32.mrb[70].mxu1 }
0x1467   : > { %v4545_v11 = vadd.f32 %v4544_v28, %v4543_v19  ;;  %v4546_v13 = vpop.f32.mrb[86].mxu0  ;;  %v4513_v1 = vpop.f32.mrb[71].mxu1 }
0x1468   : > { %v3814_v25 = vadd.f32 %v4511_v15, %v4328_v9  ;;  %v4514_v4 = vadd.f32 %v4513_v1, %v4512_v21  ;;  %v4547_v43 = vpop.f32.mrb[87].mxu0 }
0x1469   : > { %v4548_v17 = vadd.f32 %v4547_v43, %v4546_v13 }
0x146a   : > { %v3871_v22 = vadd.f32 %v4545_v11, %v3814_v25  ;;  %v3817_v55 = vadd.f32 %v4514_v4, %v4328_v9 }
0x146c   : > { %v3887_v24 = vadd.f32 %v3871_v22, %v5878_v54  ;;  %v3874_v48 = vadd.f32 %v4548_v17, %v3817_v55  ;;  %v4515_v50 = vpop.f32.mrb[72].mxu1 }
0x146d   : > { %v4516_v31 = vpop.f32.mrb[73].mxu1  ;;  %v4549_v6 = vpop.f32.mrb[88].mxu0 }
0x146e   : > { %3893 = vst [vmem:[#allocation2 + $0x10] sm:$0xff] %v3887_v24  ;;  %v3888_v29 = vadd.f32 %v3874_v48, %v5907_v49  ;;  %v4517_v27 = vadd.f32 %v4516_v31, %v4515_v50  ;;  %v4518_v32 = vpop.f32.mrb[74].mxu1  ;;  %v4550_v58 = vpop.f32.mrb[89].mxu0 }
0x146f   : > { %v4519_v39 = vpop.f32.mrb[75].mxu1  ;;  %v4551_v30 = vadd.f32 %v4550_v58, %v4549_v6  ;;  %v4552_v26 = vpop.f32.mrb[90].mxu0 }
0x1470   : > { %3894 = vst [vmem:[#allocation2 + $0x18] sm:$0xff] %v3888_v29  ;;  %v3822_v20 = vadd.f32 %v4517_v27, %v4328_v9  ;;  %v4520_v61 = vadd.f32 %v4519_v39, %v4518_v32  ;;  %v4553_v36 = vpop.f32.mrb[91].mxu0  ;;  %v3902_v60 = vrot.slane (!%p4361_p5), %v3888_v29, 7 }
0x1471   : > { %v4554_v54 = vadd.f32 %v4553_v36, %v4552_v26 }
0x1472   : > { %v3879_v33 = vadd.f32 %v4551_v30, %v3822_v20  ;;  %v3825_v57 = vadd.f32 %v4520_v61, %v4328_v9  ;;  %3900 = sbr.rel (%p4361_p5) target bundleno = 5765 (0x1685), region = 92  ;;  %v3905_v51 = vsel (!%p4361_p5), %vm3904_vm5, %v3885_v47, %v3902_v60  ;;  %v5149_v9 = vld [vmem:[%s6199_s14 + $0x10] sm:$0xff] (!%p4361_p5)  }
0x1473   : > { %v3909_v53 = vsel (!%p4361_p5), %vm3908_vm6, %v3905_v51, 0.0 }
0x1474   : > { %v3889_v34 = vadd.f32 %v3879_v33, %v5913_v37  ;;  %v3882_v5 = vadd.f32 %v4554_v54, %v3825_v57  ;;  %3910 = vadd.xlane.f32.xlu0 (!%p4361_p5), %v3909_v53  ;;  %v5202_v37 = vmov (!%p4361_p5), 0.0  }
0x1475   : > { %4784 = vmatprep.subr.bf16.mxu0 (!%p4361_p5), %v5202_v37  ;;  %4800 = vmatprep.mubr.msk.bf16.mxu0 (!%p4361_p5), %vm5203_vm7, %v5202_v37 }
0x1476   : > { %3895 = vst [vmem:[#allocation2 + $0x20] sm:$0xff] %v3889_v34  ;;  %v3890_v49 = vadd.f32 %v3882_v5, %v5919_v3  ;;  %4785 = vmatpush3.bf16.msra.mxu0 (!%p4361_p5), %v5147_v38  ;;  %v5148_v3 = vld [vmem:[%s6199_s14 + $0x8] sm:$0xff] (!%p4361_p5)  }
0x1477   : > { %4786 = vmatprep.subr.bf16.mxu0 (!%p4361_p5), %v5202_v37 }
0x1478   : > { %3896 = vst [vmem:[#allocation2 + $0x28] sm:$0xff] %v3890_v49 }
0x147a   : > { %4787 = vmatpush3.bf16.msra.mxu0 %v5148_v3 }
0x147b   : > { %4788 = vmatprep.subr.bf16.mxu0 %v5202_v37 }
0x147e   : > { %4789 = vmatpush3.bf16.msra.mxu0 %v5149_v9 }
0x147f   : > { %4790 = vmatprep.subr.bf16.mxu0 %v5202_v37 }
0x1482   : > { %4791 = vmatpush3.bf16.msra.mxu0 %v5150_v62 }
0x1483   : > { %4792 = vmatprep.subr.bf16.mxu0 %v5202_v37 }
0x1486   : > { %4793 = vmatpush3.bf16.msra.mxu0 %v5151_v7 }
0x1487   : > { %4794 = vmatprep.subr.bf16.mxu0 %v5202_v37 }
0x148a   : > { %4795 = vmatpush3.bf16.msra.mxu0 %v5152_v16 }
0x148b   : > { %4796 = vmatprep.subr.bf16.mxu0 %v5202_v37 }
0x148e   : > { %4797 = vmatpush3.bf16.msra.mxu0 %v5153_v14 }
0x148f   : > { %4798 = vmatprep.subr.bf16.mxu0 %v5202_v37 }
0x1492   : > { %4799 = vmatpush3.bf16.msra.mxu0 %v5154_v18 }
0x1501   : > { %v3911_v0 = vpop.xlane.xlu0 %3910 }
0x1502   : > { %v3912_v35 = vmul.f32 0.0078125, %v3911_v0 }
0x1504   : > { %v3913_v56 = vsub.f32 %v3905_v51, %v3912_v35 }
0x1506   : > { %v3914_v23 = vmul.f32 %v3913_v56, %v3913_v56 }
0x1508   : > { %v3915_v10 = vsel %vm3908_vm6, %v3914_v23, 0.0 }
0x1509   : > { %3916 = vadd.xlane.f32.xlu0 %v3915_v10 }
0x1596   : > { %v3917_v8 = vpop.xlane.xlu0 %3916 }
0x1597   : > { %v3918_v46 = vmul.f32 0.0078125, %v3917_v8 }
0x1599   : > { %v3919_v52 = vadd.f32 1e-05, %v3918_v46 }
0x159b   : > { %5155 = vrsqrt.f32 %v3919_v52 }
0x15a5   : > { %v5156_v41 = vpop.eup %5155 }
0x15a6   : > { %v3921_v45 = vmul.f32 %v5156_v41, %v3913_v56 }
0x15a8   : > { %v3928_v2 = vmul.f32 %v4362_v44, %v3921_v45 }
0x15aa   : > { %v3935_v47 = vadd.f32 %v4363_v12, %v3928_v2 }
0x15ac   : > { %v3936_v40 = vpack.c.bf16 %v3935_v47, %v3935_v47 }
0x15ae   : > { %4801 = vmatmul.mubr.bf16.vlgmr.msra.gmra.mrb[0].mxu0 %v3936_v40 }
0x1681   : > { %v4042_v63 = vpop.f32.mrb[0].mxu0 }
0x1682   : > { %v4043_v19 = vadd.f32 %v4364_v59, %v4042_v63  ;;  %v4802_v42 = vpop.f32.mrb[1].mxu0 }
0x1683   : > { %v4045_v15 = vpop.f32.mrb[2].mxu0 }
0x1684   : > { %4049 = vst.msk [vmem:[#allocation3] sm:$0x3] %vm4048_vm8, %v4043_v19  ;;  %v4803_v28 = vpop.f32.mrb[3].mxu0 }
0x1685 PF: > { %p4833_p6 = scmp.eq.s32.totalorder %s5296_s22, 1  ;;  %s5204_s19 = smov [#allocation3]  }
0x1686   : > { %s4057_s26 = sshll.u32 %s5204_s19, 4  ;;  %s4058_s26 = int_to_ptr.vmem [resolvable:$true] %s4057_s26 }
0x1687   : > { %s5157_s29 = scalar_lea.vmem %s4058_s26, 32  ;;  %p5164_p10 = scmp.lt.s32.totalorder %s4058_s26, %s4058_s26 }
0x1688   : > { %p5158_p7 = scmp.ne.s32.totalorder %s4058_s26, %s5157_s29  ;;  %p5165_p11 = scmp.lt.s32.totalorder %s5157_s29, %s5157_s29 }
0x168a   : > { %p5159_p8 = pnand %p5158_p7, %p4833_p6  ;;  %p5166_p12 = por %p5165_p11, %p5164_p10 }
0x168c   : > { %p5160_p9 = pneg %p5159_p8 }
0x168e   : > { %p5167_p13 = pnand %p5166_p12, %p5160_p9 }
0x1690   : > { %5170 = shalt.err (!%p5167_p13)
}
0x1691   : > { %s6222_s15 = sld [smem:[#allocation12_spill]] }
0x1697   : > { %s5171_s27 = scalar_lea.hbm %s6222_s15, 32 }
0x1698   : > { %p5172_p0 = scmp.ne.s32.totalorder %s6222_s15, %s5171_s27  ;;  %p5177_p3 = scmp.lt.u32.totalorder %s5171_s27, %s6222_s15 }
0x169a   : > { %p5173_p1 = pnand %p5172_p0, %p4833_p6 }
0x169c   : > { %p5174_p2 = pneg %p5173_p1 }
0x169e   : > { %p5179_p4 = pnand %p5177_p3, %p5174_p2 }
0x16a0   : > { %5182 = shalt.err (!%p5179_p4)
}
0x16a1   : > { %4830 = dma.vmem_to_hbm [thread:$0]  (%p4833_p6), %s4058_s26, 32, %s6222_s15, [#allocation4]  }
0x16a2   : > { %5188 = dma.done.wait (%p4833_p6), [#allocation4], 32  }
0x16a3   : > { %5190 = vsyncadd (%p4833_p6), [#allocation4], 4294967264 }
0x16a4 PF: > { %s6223_s20 = sld [smem:[#allocation6_spill]] }
0x16aa   : > { %s27_s21 = sadd.s32 1, %s6223_s20  }
0x16ab   : > { %p24_p5 = scmp.ge.s32.totalorder %s27_s21, 4  }
0x16ad   :  { %26 = sbr.rel (!%p24_p5) target bundleno = 8 (0x8), region = 149 }
0x16b4   :  { %4070 = vsyncpa [#allocation4], 1 }
0x16b5   :  { %4072 = vsyncpa [#allocation4 + $0x1], 1 }

</bundles_post_ra>
